<compile_context>
chip_gen: v5e
topology: v5e:2x2
jax: 0.10.0
libtpu: 0.0.40
codegen_flags: <defaults>
</compile_context>

<pallas_src>
import functools

import jax
import jax.numpy as jnp
import numpy as np
from jax.experimental import pallas as pl
from jax.experimental.pallas import tpu as pltpu


# --------------------------------------------------------------------------- #
# Pallas kernel
# --------------------------------------------------------------------------- #
def _fk_kernel(inp_ref, out_ref, *, order, parents, levels):
    """
    inp_ref : VMEM (10, N, Gb) f32, component-major:
              rows 0:3 xyz, 3:6 rpy, 6 joint angle, 7:10 rotation axis.
    out_ref : VMEM (N, 12, Gb) f32; per node rows 0:3 position, 3:12 rotation
              (row-major).  global_positions == positions by construction.
    parents : tuple[int], parent index per node, -1 for roots (static skeleton).
    levels  : tuple[tuple[int]], node indices grouped by depth (wavefront order).
    """
    # ---- dense (N, Gb) precompute: local transform L = E(rpy, order) @ A(x, axis) --
    x0, x1, x2 = inp_ref[0], inp_ref[1], inp_ref[2]
    r0, r1, r2 = inp_ref[3], inp_ref[4], inp_ref[5]
    xang = inp_ref[6]
    n1, n2, n3 = inp_ref[7], inp_ref[8], inp_ref[9]

    ang = xang * jnp.sqrt(n1 * n1 + n2 * n2 + n3 * n3)   # x scaled by |axis|
    c = jnp.cos(ang)
    s = jnp.sin(ang)
    omc = 1.0 - c
    cr = (jnp.cos(r0), jnp.cos(r1), jnp.cos(r2))
    sr = (jnp.sin(r0), jnp.sin(r1), jnp.sin(r2))

    def rot_apply(cc, ss, ax_char, v):
        # left-multiply a column 3-vector by the single-axis rotation matrix
        v0, v1, v2 = v
        if ax_char == 'x':
            return [v0, cc * v1 - ss * v2, ss * v1 + cc * v2]
        if ax_char == 'y':
            return [cc * v0 + ss * v2, v1, cc * v2 - ss * v0]
        return [cc * v0 - ss * v1, ss * v0 + cc * v1, v2]          # 'z'

    rodrigues_cols = (
        [c + n1 * n1 * omc, n1 * n2 * omc + n3 * s, n1 * n3 * omc - n2 * s],
        [n1 * n2 * omc - n3 * s, c + n2 * n2 * omc, n2 * n3 * omc + n1 * s],
        [n1 * n3 * omc + n2 * s, n2 * n3 * omc - n1 * s, c + n3 * n3 * omc],
    )
    # L = R(order[2]) @ R(order[1]) @ R(order[0]) @ A, fused column-by-column on
    # dense (N, Gb) planes (full sublane utilization, no per-node trig).
    L = [[None] * 3 for _ in range(3)]
    for j in range(3):
        col = rodrigues_cols[j]
        for k in range(3):
            col = rot_apply(cr[k], sr[k], order[k], col)
        for i in range(3):
            L[i][j] = col[i]

    xyz = (x0, x1, x2)

    # ---- level-order (wavefront) walk.  Parent indices are compile-time constants,
    # so the walk is fully unrolled and parent state flows to children through vregs
    # (no VMEM round trip, no selects, no dynamic indexing on the critical path).
    # TODO(synk): pack each level's nodes into a dense (nodes_in_level, Gb) tile so
    #             the chain FMAs also get full sublane utilization.
    state = [None] * len(parents)
    for level in levels:
        for n in level:
            o_xyz = [xyz[k][n:n + 1, :] for k in range(3)]                 # (1, Gb)
            o_loc = [L[i][j][n:n + 1, :] for i in range(3) for j in range(3)]
            p = parents[n]
            if p < 0:                           # root: pos = xyz, R = L
                rows = o_xyz + o_loc
            else:
                q = state[p]                    # parent rows forwarded via vregs
                pos = [q[3 + 3 * i] * o_xyz[0] + q[4 + 3 * i] * o_xyz[1]
                       + q[5 + 3 * i] * o_xyz[2] + q[i]
                       for i in range(3)]
                rot = [q[3 + 3 * i] * o_loc[j] + q[4 + 3 * i] * o_loc[3 + j]
                       + q[5 + 3 * i] * o_loc[6 + j]
                       for i in range(3) for j in range(3)]
                rows = pos + rot
            state[n] = rows
            out_ref[n] = jnp.concatenate(rows, axis=0)   # one packed (12, Gb) store


# --------------------------------------------------------------------------- #
# Wrapper (layout plumbing, matching the PyTorch forward)
# --------------------------------------------------------------------------- #
def forward_kinematics_axis(x, parent, offset, num_graphs, axis, order='xyz',
                            g_block=None):
    G = int(num_graphs)
    x2 = jnp.asarray(x, jnp.float32).reshape(G, -1)                   # (G, N)
    N = x2.shape[1]
    off = jnp.asarray(offset, jnp.float32).reshape(G, N, 6)           # (G, N, 6)
    # Like the torch module, parent/axis are taken from graph 0.
    axis3 = jnp.asarray(axis, jnp.float32).reshape(G, -1, 3)[0]       # (N, 3)

    # ---- static skeleton: depths + level order (host side; the torch module also
    # drives Python control flow with parent, so it is concrete here) --------------
    parent_np = np.asarray(parent).reshape(G, -1)[0].astype(np.int64)
    assert parent_np.shape[0] == N and np.all(parent_np < N), "bad parent table"
    depth = np.where(parent_np < 0, 0, -1).astype(np.int64)
    pidx = np.clip(parent_np, 0, N - 1)
    for _ in range(N):
        if np.all(depth >= 0):
            break
        ready = (depth < 0) & (parent_np >= 0) & (depth[pidx] >= 0)
        depth = np.where(ready, depth[pidx] + 1, depth)
    assert np.all(depth >= 0), "parent table has a cycle / unreachable node"
    levels = tuple(tuple(int(i) for i in np.nonzero(depth == d)[0])
                   for d in range(int(depth.max()) + 1))
    parents = tuple(int(p) for p in parent_np)

    # ---- lane-dense packing: component-major (10, N, G), G padded to 128-multiple --
    G128 = -(-G // 128) * 128
    if g_block is None:
        if G128 <= 128:
            g_block = G128
        elif G128 <= 1024:
            g_block = max(128, (G128 // 2 // 128) * 128)   # >=2 steps (v7x megacore)
        else:
            g_block = 512                                  # ~85%-of-roofline tile
    else:
        g_block = max(128, (int(g_block) // 128) * 128)
    G_pad = -(-G128 // g_block) * g_block                  # g_block divides G_pad

    off_cm = jnp.transpose(off, (2, 1, 0))                             # (6, N, G)
    x_cm = jnp.transpose(x2, (1, 0))[None]                             # (1, N, G)
    ax_cm = jnp.broadcast_to(jnp.transpose(axis3, (1, 0))[:, :, None], (3, N, G))
    inp = jnp.concatenate([off_cm, x_cm, ax_cm], axis=0)               # (10, N, G)
    if G_pad != G:
        inp = jnp.pad(inp, ((0, 0), (0, 0), (0, G_pad - G)))           # zero graphs

    kernel = functools.partial(_fk_kernel, order=order, parents=parents,
                               levels=levels)
    state = pl.pallas_call(
        kernel,
        grid_spec=pltpu.PrefetchScalarGridSpec(
            num_scalar_prefetch=0,
            grid=(G_pad // g_block,),
            in_specs=[pl.BlockSpec((10, N, g_block), lambda g: (0, 0, g))],
            out_specs=pl.BlockSpec((N, 12, g_block), lambda g: (0, 0, g)),
        ),
        out_shape=jax.ShapeDtypeStruct((N, 12, G_pad), jnp.float32),
        compiler_params=pltpu.CompilerParams(
            dimension_semantics=("parallel",)),            # graphs independent
    )(inp)

    # The module's return contract is (G*N, ...) row-major in (graph, node); that is a
    # genuine minor-dim transpose of the lane-major kernel layout.  Downstream code
    # that can consume (N, 12, G) directly should use `state` to avoid this relayout.
    st = jnp.transpose(state[:, :, :G], (2, 0, 1))                      # (G, N, 12)
    positions = st[:, :, 0:3].reshape(-1, 3)
    rot_matrices = st[:, :, 3:12].reshape(-1, 3, 3)
    # global_positions == positions by construction (same as the torch module).
    return positions, rot_matrices, positions


# --------------------------------------------------------------------------- #
# Pure numpy reference (mirrors the PyTorch module) for correctness checking
# --------------------------------------------------------------------------- #
def _fk_reference_np(x, parent, offset, num_graphs, axis, order='xyz'):
    x = np.asarray(x, np.float32).reshape(num_graphs, -1)
    parent = np.asarray(parent).reshape(num_graphs, -1)[0]
    ax = np.asarray(axis, np.float32).reshape(num_graphs, -1, 3)[0]
    axis_norm = np.linalg.norm(ax, axis=-1).astype(np.float32)
    x = x * axis_norm[None, :]
    offset = np.asarray(offset, np.float32).reshape(num_graphs, -1, 6)
    xyz = offset[:, :, :3]
    rpy = offset[:, :, 3:]
    G, N = x.shape

    def single(euler, a):
        c = np.cos(euler).astype(np.float32)
        s = np.sin(euler).astype(np.float32)
        T = np.zeros((G, N, 3, 3), np.float32)
        if a == 'x':
            T[..., 0, 0] = 1; T[..., 1, 1] = c; T[..., 2, 2] = c
            T[..., 1, 2] = -s; T[..., 2, 1] = s
        elif a == 'y':
            T[..., 1, 1] = 1; T[..., 0, 0] = c; T[..., 2, 2] = c
            T[..., 0, 2] = s; T[..., 2, 0] = -s
        else:
            T[..., 2, 2] = 1; T[..., 0, 0] = c; T[..., 1, 1] = c
            T[..., 0, 1] = -s; T[..., 1, 0] = s
        return T

    def multi(euler, ax3):
        c = np.cos(euler).astype(np.float32)
        s = np.sin(euler).astype(np.float32)
        n1, n2, n3 = ax3[:, 0], ax3[:, 1], ax3[:, 2]
        T = np.zeros((G, N, 3, 3), np.float32)
        T[..., 0, 0] = c + n1 * n1 * (1 - c)
        T[..., 0, 1] = n1 * n2 * (1 - c) - n3 * s
        T[..., 0, 2] = n1 * n3 * (1 - c) + n2 * s
        T[..., 1, 0] = n1 * n2 * (1 - c) + n3 * s
        T[..., 1, 1] = c + n2 * n2 * (1 - c)
        T[..., 1, 2] = n2 * n3 * (1 - c) - n1 * s
        T[..., 2, 0] = n1 * n3 * (1 - c) - n2 * s
        T[..., 2, 1] = n2 * n3 * (1 - c) + n1 * s
        T[..., 2, 2] = c + n3 * n3 * (1 - c)
        return T

    E = single(rpy[..., 2], order[2]) @ single(rpy[..., 1], order[1])
    E = E @ single(rpy[..., 0], order[0])
    A = multi(x, ax)
    local = E @ A

    pos = np.zeros((G, N, 3), np.float32)
    gpos = np.zeros((G, N, 3), np.float32)
    rot = np.zeros((G, N, 3, 3), np.float32)
    for n in range(N):
        p = int(parent[n])
        if p == -1:
            pos[:, n] = xyz[:, n]
            gpos[:, n] = xyz[:, n]
            rot[:, n] = local[:, n]
        else:
            r = np.einsum('gij,gj->gi', rot[:, p], xyz[:, n])
            pos[:, n] = r + pos[:, p]
            gpos[:, n] = r + gpos[:, p]
            rot[:, n] = rot[:, p] @ local[:, n]
    return pos.reshape(-1, 3), rot.reshape(-1, 3, 3), gpos.reshape(-1, 3)


# --------------------------------------------------------------------------- #
if __name__ == "__main__":
    G, N = 2, 8
    key = jax.random.PRNGKey(0)
    k1, k2, k3 = jax.random.split(key, 3)

    x = jax.random.uniform(k1, (G * N, 1), minval=-1.0, maxval=1.0,
                           dtype=jnp.float32)
    parent_single = jnp.array([-1, 0, 1, 2, 0, 4, 5, 0], dtype=jnp.int32)
    parent = jnp.tile(parent_single, (G,))                      # (G*N,)
    offset = jax.random.uniform(k2, (G * N, 6), minval=-0.5, maxval=0.5,
                                dtype=jnp.float32)
    axis_single = jax.random.uniform(k3, (N, 3), minval=-1.0, maxval=1.0,
                                     dtype=jnp.float32)
    axis = jnp.tile(axis_single, (G, 1))                        # (G*N, 3)

    pos, rot, gpos = forward_kinematics_axis(x, parent, offset, G, axis, 'xyz')
    (pos, rot, gpos) = jax.block_until_ready((pos, rot, gpos))

    assert pos.shape == (G * N, 3)
    assert rot.shape == (G * N, 3, 3)
    assert gpos.shape == (G * N, 3)

    pos_r, rot_r, gpos_r = _fk_reference_np(x, parent, offset, G, axis, 'xyz')
    np.testing.assert_allclose(np.asarray(pos), pos_r, rtol=1e-4, atol=1e-4)
    np.testing.assert_allclose(np.asarray(rot), rot_r, rtol=1e-4, atol=1e-4)
    np.testing.assert_allclose(np.asarray(gpos), gpos_r, rtol=1e-4, atol=1e-4)

    print("KERNEL_OK")
</pallas_src>

<mosaic_0001>
module attributes {stable_mosaic.version = 11 : i64} {
  func.func @_fk_kernel(%arg0: i32, %arg1: memref<10x8x128xf32, #tpu.memory_space<vmem>>, %arg2: memref<8x12x128xf32, #tpu.memory_space<vmem>>) attributes {dimension_semantics = [#tpu.dimension_semantics<parallel>], iteration_bounds = array<i64: 1>, scalar_prefetch = 0 : i64, scratch_operands = 0 : i64, tpu.core_type = #tpu.core_type<tc>, window_params = [{transform_indices = @transform_0, window_bounds = array<i64: 10, 8, 128>}, {transform_indices = @transform_1, window_bounds = array<i64: 8, 12, 128>}]} {
    %c0 = arith.constant 0 : index
    %c0_0 = arith.constant 0 : index
    %c0_1 = arith.constant 0 : index
    %0 = vector.load %arg1[%c0, %c0_0, %c0_1] : memref<10x8x128xf32, #tpu.memory_space<vmem>>, vector<1x8x128xf32>
    %1 = vector.shape_cast %0 : vector<1x8x128xf32> to vector<8x128xf32>
    %c1 = arith.constant 1 : index
    %c0_2 = arith.constant 0 : index
    %c0_3 = arith.constant 0 : index
    %2 = vector.load %arg1[%c1, %c0_2, %c0_3] : memref<10x8x128xf32, #tpu.memory_space<vmem>>, vector<1x8x128xf32>
    %3 = vector.shape_cast %2 : vector<1x8x128xf32> to vector<8x128xf32>
    %c2 = arith.constant 2 : index
    %c0_4 = arith.constant 0 : index
    %c0_5 = arith.constant 0 : index
    %4 = vector.load %arg1[%c2, %c0_4, %c0_5] : memref<10x8x128xf32, #tpu.memory_space<vmem>>, vector<1x8x128xf32>
    %5 = vector.shape_cast %4 : vector<1x8x128xf32> to vector<8x128xf32>
    %c3 = arith.constant 3 : index
    %c0_6 = arith.constant 0 : index
    %c0_7 = arith.constant 0 : index
    %6 = vector.load %arg1[%c3, %c0_6, %c0_7] : memref<10x8x128xf32, #tpu.memory_space<vmem>>, vector<1x8x128xf32>
    %7 = vector.shape_cast %6 : vector<1x8x128xf32> to vector<8x128xf32>
    %c4 = arith.constant 4 : index
    %c0_8 = arith.constant 0 : index
    %c0_9 = arith.constant 0 : index
    %8 = vector.load %arg1[%c4, %c0_8, %c0_9] : memref<10x8x128xf32, #tpu.memory_space<vmem>>, vector<1x8x128xf32>
    %9 = vector.shape_cast %8 : vector<1x8x128xf32> to vector<8x128xf32>
    %c5 = arith.constant 5 : index
    %c0_10 = arith.constant 0 : index
    %c0_11 = arith.constant 0 : index
    %10 = vector.load %arg1[%c5, %c0_10, %c0_11] : memref<10x8x128xf32, #tpu.memory_space<vmem>>, vector<1x8x128xf32>
    %11 = vector.shape_cast %10 : vector<1x8x128xf32> to vector<8x128xf32>
    %c6 = arith.constant 6 : index
    %c0_12 = arith.constant 0 : index
    %c0_13 = arith.constant 0 : index
    %12 = vector.load %arg1[%c6, %c0_12, %c0_13] : memref<10x8x128xf32, #tpu.memory_space<vmem>>, vector<1x8x128xf32>
    %13 = vector.shape_cast %12 : vector<1x8x128xf32> to vector<8x128xf32>
    %c7 = arith.constant 7 : index
    %c0_14 = arith.constant 0 : index
    %c0_15 = arith.constant 0 : index
    %14 = vector.load %arg1[%c7, %c0_14, %c0_15] : memref<10x8x128xf32, #tpu.memory_space<vmem>>, vector<1x8x128xf32>
    %15 = vector.shape_cast %14 : vector<1x8x128xf32> to vector<8x128xf32>
    %c8 = arith.constant 8 : index
    %c0_16 = arith.constant 0 : index
    %c0_17 = arith.constant 0 : index
    %16 = vector.load %arg1[%c8, %c0_16, %c0_17] : memref<10x8x128xf32, #tpu.memory_space<vmem>>, vector<1x8x128xf32>
    %17 = vector.shape_cast %16 : vector<1x8x128xf32> to vector<8x128xf32>
    %c9 = arith.constant 9 : index
    %c0_18 = arith.constant 0 : index
    %c0_19 = arith.constant 0 : index
    %18 = vector.load %arg1[%c9, %c0_18, %c0_19] : memref<10x8x128xf32, #tpu.memory_space<vmem>>, vector<1x8x128xf32>
    %19 = vector.shape_cast %18 : vector<1x8x128xf32> to vector<8x128xf32>
    %20 = arith.mulf %15, %15 : vector<8x128xf32>
    %21 = arith.mulf %17, %17 : vector<8x128xf32>
    %22 = arith.addf %20, %21 : vector<8x128xf32>
    %23 = arith.mulf %19, %19 : vector<8x128xf32>
    %24 = arith.addf %22, %23 : vector<8x128xf32>
    %25 = math.sqrt %24 : vector<8x128xf32>
    %26 = arith.mulf %13, %25 : vector<8x128xf32>
    %27 = math.cos %26 : vector<8x128xf32>
    %28 = math.sin %26 : vector<8x128xf32>
    %cst = arith.constant 1.000000e+00 : f32
    %29 = vector.broadcast %cst : f32 to vector<8x128xf32>
    %30 = arith.subf %29, %27 : vector<8x128xf32>
    %31 = math.cos %7 : vector<8x128xf32>
    %32 = math.cos %9 : vector<8x128xf32>
    %33 = math.cos %11 : vector<8x128xf32>
    %34 = math.sin %7 : vector<8x128xf32>
    %35 = math.sin %9 : vector<8x128xf32>
    %36 = math.sin %11 : vector<8x128xf32>
    %37 = arith.mulf %15, %15 : vector<8x128xf32>
    %38 = arith.mulf %37, %30 : vector<8x128xf32>
    %39 = arith.addf %27, %38 : vector<8x128xf32>
    %40 = arith.mulf %15, %17 : vector<8x128xf32>
    %41 = arith.mulf %40, %30 : vector<8x128xf32>
    %42 = arith.mulf %19, %28 : vector<8x128xf32>
    %43 = arith.addf %41, %42 : vector<8x128xf32>
    %44 = arith.mulf %15, %19 : vector<8x128xf32>
    %45 = arith.mulf %44, %30 : vector<8x128xf32>
    %46 = arith.mulf %17, %28 : vector<8x128xf32>
    %47 = arith.subf %45, %46 : vector<8x128xf32>
    %48 = arith.mulf %15, %17 : vector<8x128xf32>
    %49 = arith.mulf %48, %30 : vector<8x128xf32>
    %50 = arith.mulf %19, %28 : vector<8x128xf32>
    %51 = arith.subf %49, %50 : vector<8x128xf32>
    %52 = arith.mulf %17, %17 : vector<8x128xf32>
    %53 = arith.mulf %52, %30 : vector<8x128xf32>
    %54 = arith.addf %27, %53 : vector<8x128xf32>
    %55 = arith.mulf %17, %19 : vector<8x128xf32>
    %56 = arith.mulf %55, %30 : vector<8x128xf32>
    %57 = arith.mulf %15, %28 : vector<8x128xf32>
    %58 = arith.addf %56, %57 : vector<8x128xf32>
    %59 = arith.mulf %15, %19 : vector<8x128xf32>
    %60 = arith.mulf %59, %30 : vector<8x128xf32>
    %61 = arith.mulf %17, %28 : vector<8x128xf32>
    %62 = arith.addf %60, %61 : vector<8x128xf32>
    %63 = arith.mulf %17, %19 : vector<8x128xf32>
    %64 = arith.mulf %63, %30 : vector<8x128xf32>
    %65 = arith.mulf %15, %28 : vector<8x128xf32>
    %66 = arith.subf %64, %65 : vector<8x128xf32>
    %67 = arith.mulf %19, %19 : vector<8x128xf32>
    %68 = arith.mulf %67, %30 : vector<8x128xf32>
    %69 = arith.addf %27, %68 : vector<8x128xf32>
    %70 = arith.mulf %31, %43 : vector<8x128xf32>
    %71 = arith.mulf %34, %47 : vector<8x128xf32>
    %72 = arith.subf %70, %71 : vector<8x128xf32>
    %73 = arith.mulf %34, %43 : vector<8x128xf32>
    %74 = arith.mulf %31, %47 : vector<8x128xf32>
    %75 = arith.addf %73, %74 : vector<8x128xf32>
    %76 = arith.mulf %32, %39 : vector<8x128xf32>
    %77 = arith.mulf %35, %75 : vector<8x128xf32>
    %78 = arith.addf %76, %77 : vector<8x128xf32>
    %79 = arith.mulf %32, %75 : vector<8x128xf32>
    %80 = arith.mulf %35, %39 : vector<8x128xf32>
    %81 = arith.subf %79, %80 : vector<8x128xf32>
    %82 = arith.mulf %33, %78 : vector<8x128xf32>
    %83 = arith.mulf %36, %72 : vector<8x128xf32>
    %84 = arith.subf %82, %83 : vector<8x128xf32>
    %85 = arith.mulf %36, %78 : vector<8x128xf32>
    %86 = arith.mulf %33, %72 : vector<8x128xf32>
    %87 = arith.addf %85, %86 : vector<8x128xf32>
    %88 = arith.mulf %31, %54 : vector<8x128xf32>
    %89 = arith.mulf %34, %58 : vector<8x128xf32>
    %90 = arith.subf %88, %89 : vector<8x128xf32>
    %91 = arith.mulf %34, %54 : vector<8x128xf32>
    %92 = arith.mulf %31, %58 : vector<8x128xf32>
    %93 = arith.addf %91, %92 : vector<8x128xf32>
    %94 = arith.mulf %32, %51 : vector<8x128xf32>
    %95 = arith.mulf %35, %93 : vector<8x128xf32>
    %96 = arith.addf %94, %95 : vector<8x128xf32>
    %97 = arith.mulf %32, %93 : vector<8x128xf32>
    %98 = arith.mulf %35, %51 : vector<8x128xf32>
    %99 = arith.subf %97, %98 : vector<8x128xf32>
    %100 = arith.mulf %33, %96 : vector<8x128xf32>
    %101 = arith.mulf %36, %90 : vector<8x128xf32>
    %102 = arith.subf %100, %101 : vector<8x128xf32>
    %103 = arith.mulf %36, %96 : vector<8x128xf32>
    %104 = arith.mulf %33, %90 : vector<8x128xf32>
    %105 = arith.addf %103, %104 : vector<8x128xf32>
    %106 = arith.mulf %31, %66 : vector<8x128xf32>
    %107 = arith.mulf %34, %69 : vector<8x128xf32>
    %108 = arith.subf %106, %107 : vector<8x128xf32>
    %109 = arith.mulf %34, %66 : vector<8x128xf32>
    %110 = arith.mulf %31, %69 : vector<8x128xf32>
    %111 = arith.addf %109, %110 : vector<8x128xf32>
    %112 = arith.mulf %32, %62 : vector<8x128xf32>
    %113 = arith.mulf %35, %111 : vector<8x128xf32>
    %114 = arith.addf %112, %113 : vector<8x128xf32>
    %115 = arith.mulf %32, %111 : vector<8x128xf32>
    %116 = arith.mulf %35, %62 : vector<8x128xf32>
    %117 = arith.subf %115, %116 : vector<8x128xf32>
    %118 = arith.mulf %33, %114 : vector<8x128xf32>
    %119 = arith.mulf %36, %108 : vector<8x128xf32>
    %120 = arith.subf %118, %119 : vector<8x128xf32>
    %121 = arith.mulf %36, %114 : vector<8x128xf32>
    %122 = arith.mulf %33, %108 : vector<8x128xf32>
    %123 = arith.addf %121, %122 : vector<8x128xf32>
    %124 = vector.extract_strided_slice %1 {offsets = [0, 0], sizes = [1, 128], strides = [1, 1]} : vector<8x128xf32> to vector<1x128xf32>
    %125 = vector.extract_strided_slice %3 {offsets = [0, 0], sizes = [1, 128], strides = [1, 1]} : vector<8x128xf32> to vector<1x128xf32>
    %126 = vector.extract_strided_slice %5 {offsets = [0, 0], sizes = [1, 128], strides = [1, 1]} : vector<8x128xf32> to vector<1x128xf32>
    %127 = vector.extract_strided_slice %84 {offsets = [0, 0], sizes = [1, 128], strides = [1, 1]} : vector<8x128xf32> to vector<1x128xf32>
    %128 = vector.extract_strided_slice %102 {offsets = [0, 0], sizes = [1, 128], strides = [1, 1]} : vector<8x128xf32> to vector<1x128xf32>
    %129 = vector.extract_strided_slice %120 {offsets = [0, 0], sizes = [1, 128], strides = [1, 1]} : vector<8x128xf32> to vector<1x128xf32>
    %130 = vector.extract_strided_slice %87 {offsets = [0, 0], sizes = [1, 128], strides = [1, 1]} : vector<8x128xf32> to vector<1x128xf32>
    %131 = vector.extract_strided_slice %105 {offsets = [0, 0], sizes = [1, 128], strides = [1, 1]} : vector<8x128xf32> to vector<1x128xf32>
    %132 = vector.extract_strided_slice %123 {offsets = [0, 0], sizes = [1, 128], strides = [1, 1]} : vector<8x128xf32> to vector<1x128xf32>
    %133 = vector.extract_strided_slice %81 {offsets = [0, 0], sizes = [1, 128], strides = [1, 1]} : vector<8x128xf32> to vector<1x128xf32>
    %134 = vector.extract_strided_slice %99 {offsets = [0, 0], sizes = [1, 128], strides = [1, 1]} : vector<8x128xf32> to vector<1x128xf32>
    %135 = vector.extract_strided_slice %117 {offsets = [0, 0], sizes = [1, 128], strides = [1, 1]} : vector<8x128xf32> to vector<1x128xf32>
    %136 = tpu.concatenate %124, %125, %126, %127, %128, %129, %130, %131, %132, %133, %134, %135 in 0 : vector<1x128xf32>, vector<1x128xf32>, vector<1x128xf32>, vector<1x128xf32>, vector<1x128xf32>, vector<1x128xf32>, vector<1x128xf32>, vector<1x128xf32>, vector<1x128xf32>, vector<1x128xf32>, vector<1x128xf32>, vector<1x128xf32> -> vector<12x128xf32>
    %c0_20 = arith.constant 0 : index
    %c0_21 = arith.constant 0 : index
    %c0_22 = arith.constant 0 : index
    %137 = vector.load %arg2[%c0_20, %c0_21, %c0_22] : memref<8x12x128xf32, #tpu.memory_space<vmem>>, vector<1x12x128xf32>
    %138 = vector.shape_cast %137 : vector<1x12x128xf32> to vector<12x128xf32>
    %139 = vector.shape_cast %136 : vector<12x128xf32> to vector<1x12x128xf32>
    tpu.vector_store %arg2[%c0_20, %c0_21, %c0_22], %139 {strides = array<i32>} : memref<8x12x128xf32, #tpu.memory_space<vmem>>, vector<1x12x128xf32>,
    %140 = vector.extract_strided_slice %1 {offsets = [1, 0], sizes = [1, 128], strides = [1, 1]} : vector<8x128xf32> to vector<1x128xf32>
    %141 = vector.extract_strided_slice %3 {offsets = [1, 0], sizes = [1, 128], strides = [1, 1]} : vector<8x128xf32> to vector<1x128xf32>
    %142 = vector.extract_strided_slice %5 {offsets = [1, 0], sizes = [1, 128], strides = [1, 1]} : vector<8x128xf32> to vector<1x128xf32>
    %143 = vector.extract_strided_slice %84 {offsets = [1, 0], sizes = [1, 128], strides = [1, 1]} : vector<8x128xf32> to vector<1x128xf32>
    %144 = vector.extract_strided_slice %102 {offsets = [1, 0], sizes = [1, 128], strides = [1, 1]} : vector<8x128xf32> to vector<1x128xf32>
    %145 = vector.extract_strided_slice %120 {offsets = [1, 0], sizes = [1, 128], strides = [1, 1]} : vector<8x128xf32> to vector<1x128xf32>
    %146 = vector.extract_strided_slice %87 {offsets = [1, 0], sizes = [1, 128], strides = [1, 1]} : vector<8x128xf32> to vector<1x128xf32>
    %147 = vector.extract_strided_slice %105 {offsets = [1, 0], sizes = [1, 128], strides = [1, 1]} : vector<8x128xf32> to vector<1x128xf32>
    %148 = vector.extract_strided_slice %123 {offsets = [1, 0], sizes = [1, 128], strides = [1, 1]} : vector<8x128xf32> to vector<1x128xf32>
    %149 = vector.extract_strided_slice %81 {offsets = [1, 0], sizes = [1, 128], strides = [1, 1]} : vector<8x128xf32> to vector<1x128xf32>
    %150 = vector.extract_strided_slice %99 {offsets = [1, 0], sizes = [1, 128], strides = [1, 1]} : vector<8x128xf32> to vector<1x128xf32>
    %151 = vector.extract_strided_slice %117 {offsets = [1, 0], sizes = [1, 128], strides = [1, 1]} : vector<8x128xf32> to vector<1x128xf32>
    %152 = arith.mulf %127, %140 : vector<1x128xf32>
    %153 = arith.mulf %128, %141 : vector<1x128xf32>
    %154 = arith.addf %152, %153 : vector<1x128xf32>
    %155 = arith.mulf %129, %142 : vector<1x128xf32>
    %156 = arith.addf %154, %155 : vector<1x128xf32>
    %157 = arith.addf %156, %124 : vector<1x128xf32>
    %158 = arith.mulf %130, %140 : vector<1x128xf32>
    %159 = arith.mulf %131, %141 : vector<1x128xf32>
    %160 = arith.addf %158, %159 : vector<1x128xf32>
    %161 = arith.mulf %132, %142 : vector<1x128xf32>
    %162 = arith.addf %160, %161 : vector<1x128xf32>
    %163 = arith.addf %162, %125 : vector<1x128xf32>
    %164 = arith.mulf %133, %140 : vector<1x128xf32>
    %165 = arith.mulf %134, %141 : vector<1x128xf32>
    %166 = arith.addf %164, %165 : vector<1x128xf32>
    %167 = arith.mulf %135, %142 : vector<1x128xf32>
    %168 = arith.addf %166, %167 : vector<1x128xf32>
    %169 = arith.addf %168, %126 : vector<1x128xf32>
    %170 = arith.mulf %127, %143 : vector<1x128xf32>
    %171 = arith.mulf %128, %146 : vector<1x128xf32>
    %172 = arith.addf %170, %171 : vector<1x128xf32>
    %173 = arith.mulf %129, %149 : vector<1x128xf32>
    %174 = arith.addf %172, %173 : vector<1x128xf32>
    %175 = arith.mulf %127, %144 : vector<1x128xf32>
    %176 = arith.mulf %128, %147 : vector<1x128xf32>
    %177 = arith.addf %175, %176 : vector<1x128xf32>
    %178 = arith.mulf %129, %150 : vector<1x128xf32>
    %179 = arith.addf %177, %178 : vector<1x128xf32>
    %180 = arith.mulf %127, %145 : vector<1x128xf32>
    %181 = arith.mulf %128, %148 : vector<1x128xf32>
    %182 = arith.addf %180, %181 : vector<1x128xf32>
    %183 = arith.mulf %129, %151 : vector<1x128xf32>
    %184 = arith.addf %182, %183 : vector<1x128xf32>
    %185 = arith.mulf %130, %143 : vector<1x128xf32>
    %186 = arith.mulf %131, %146 : vector<1x128xf32>
    %187 = arith.addf %185, %186 : vector<1x128xf32>
    %188 = arith.mulf %132, %149 : vector<1x128xf32>
    %189 = arith.addf %187, %188 : vector<1x128xf32>
    %190 = arith.mulf %130, %144 : vector<1x128xf32>
    %191 = arith.mulf %131, %147 : vector<1x128xf32>
    %192 = arith.addf %190, %191 : vector<1x128xf32>
    %193 = arith.mulf %132, %150 : vector<1x128xf32>
    %194 = arith.addf %192, %193 : vector<1x128xf32>
    %195 = arith.mulf %130, %145 : vector<1x128xf32>
    %196 = arith.mulf %131, %148 : vector<1x128xf32>
    %197 = arith.addf %195, %196 : vector<1x128xf32>
    %198 = arith.mulf %132, %151 : vector<1x128xf32>
    %199 = arith.addf %197, %198 : vector<1x128xf32>
    %200 = arith.mulf %133, %143 : vector<1x128xf32>
    %201 = arith.mulf %134, %146 : vector<1x128xf32>
    %202 = arith.addf %200, %201 : vector<1x128xf32>
    %203 = arith.mulf %135, %149 : vector<1x128xf32>
    %204 = arith.addf %202, %203 : vector<1x128xf32>
    %205 = arith.mulf %133, %144 : vector<1x128xf32>
    %206 = arith.mulf %134, %147 : vector<1x128xf32>
    %207 = arith.addf %205, %206 : vector<1x128xf32>
    %208 = arith.mulf %135, %150 : vector<1x128xf32>
    %209 = arith.addf %207, %208 : vector<1x128xf32>
    %210 = arith.mulf %133, %145 : vector<1x128xf32>
    %211 = arith.mulf %134, %148 : vector<1x128xf32>
    %212 = arith.addf %210, %211 : vector<1x128xf32>
    %213 = arith.mulf %135, %151 : vector<1x128xf32>
    %214 = arith.addf %212, %213 : vector<1x128xf32>
    %215 = tpu.concatenate %157, %163, %169, %174, %179, %184, %189, %194, %199, %204, %209, %214 in 0 : vector<1x128xf32>, vector<1x128xf32>, vector<1x128xf32>, vector<1x128xf32>, vector<1x128xf32>, vector<1x128xf32>, vector<1x128xf32>, vector<1x128xf32>, vector<1x128xf32>, vector<1x128xf32>, vector<1x128xf32>, vector<1x128xf32> -> vector<12x128xf32>
    %c1_23 = arith.constant 1 : index
    %c0_24 = arith.constant 0 : index
    %c0_25 = arith.constant 0 : index
    %216 = vector.load %arg2[%c1_23, %c0_24, %c0_25] : memref<8x12x128xf32, #tpu.memory_space<vmem>>, vector<1x12x128xf32>
    %217 = vector.shape_cast %216 : vector<1x12x128xf32> to vector<12x128xf32>
    %218 = vector.shape_cast %215 : vector<12x128xf32> to vector<1x12x128xf32>
    tpu.vector_store %arg2[%c1_23, %c0_24, %c0_25], %218 {strides = array<i32>} : memref<8x12x128xf32, #tpu.memory_space<vmem>>, vector<1x12x128xf32>,
    %219 = vector.extract_strided_slice %1 {offsets = [4, 0], sizes = [1, 128], strides = [1, 1]} : vector<8x128xf32> to vector<1x128xf32>
    %220 = vector.extract_strided_slice %3 {offsets = [4, 0], sizes = [1, 128], strides = [1, 1]} : vector<8x128xf32> to vector<1x128xf32>
    %221 = vector.extract_strided_slice %5 {offsets = [4, 0], sizes = [1, 128], strides = [1, 1]} : vector<8x128xf32> to vector<1x128xf32>
    %222 = vector.extract_strided_slice %84 {offsets = [4, 0], sizes = [1, 128], strides = [1, 1]} : vector<8x128xf32> to vector<1x128xf32>
    %223 = vector.extract_strided_slice %102 {offsets = [4, 0], sizes = [1, 128], strides = [1, 1]} : vector<8x128xf32> to vector<1x128xf32>
    %224 = vector.extract_strided_slice %120 {offsets = [4, 0], sizes = [1, 128], strides = [1, 1]} : vector<8x128xf32> to vector<1x128xf32>
    %225 = vector.extract_strided_slice %87 {offsets = [4, 0], sizes = [1, 128], strides = [1, 1]} : vector<8x128xf32> to vector<1x128xf32>
    %226 = vector.extract_strided_slice %105 {offsets = [4, 0], sizes = [1, 128], strides = [1, 1]} : vector<8x128xf32> to vector<1x128xf32>
    %227 = vector.extract_strided_slice %123 {offsets = [4, 0], sizes = [1, 128], strides = [1, 1]} : vector<8x128xf32> to vector<1x128xf32>
    %228 = vector.extract_strided_slice %81 {offsets = [4, 0], sizes = [1, 128], strides = [1, 1]} : vector<8x128xf32> to vector<1x128xf32>
    %229 = vector.extract_strided_slice %99 {offsets = [4, 0], sizes = [1, 128], strides = [1, 1]} : vector<8x128xf32> to vector<1x128xf32>
    %230 = vector.extract_strided_slice %117 {offsets = [4, 0], sizes = [1, 128], strides = [1, 1]} : vector<8x128xf32> to vector<1x128xf32>
    %231 = arith.mulf %127, %219 : vector<1x128xf32>
    %232 = arith.mulf %128, %220 : vector<1x128xf32>
    %233 = arith.addf %231, %232 : vector<1x128xf32>
    %234 = arith.mulf %129, %221 : vector<1x128xf32>
    %235 = arith.addf %233, %234 : vector<1x128xf32>
    %236 = arith.addf %235, %124 : vector<1x128xf32>
    %237 = arith.mulf %130, %219 : vector<1x128xf32>
    %238 = arith.mulf %131, %220 : vector<1x128xf32>
    %239 = arith.addf %237, %238 : vector<1x128xf32>
    %240 = arith.mulf %132, %221 : vector<1x128xf32>
    %241 = arith.addf %239, %240 : vector<1x128xf32>
    %242 = arith.addf %241, %125 : vector<1x128xf32>
    %243 = arith.mulf %133, %219 : vector<1x128xf32>
    %244 = arith.mulf %134, %220 : vector<1x128xf32>
    %245 = arith.addf %243, %244 : vector<1x128xf32>
    %246 = arith.mulf %135, %221 : vector<1x128xf32>
    %247 = arith.addf %245, %246 : vector<1x128xf32>
    %248 = arith.addf %247, %126 : vector<1x128xf32>
    %249 = arith.mulf %127, %222 : vector<1x128xf32>
    %250 = arith.mulf %128, %225 : vector<1x128xf32>
    %251 = arith.addf %249, %250 : vector<1x128xf32>
    %252 = arith.mulf %129, %228 : vector<1x128xf32>
    %253 = arith.addf %251, %252 : vector<1x128xf32>
    %254 = arith.mulf %127, %223 : vector<1x128xf32>
    %255 = arith.mulf %128, %226 : vector<1x128xf32>
    %256 = arith.addf %254, %255 : vector<1x128xf32>
    %257 = arith.mulf %129, %229 : vector<1x128xf32>
    %258 = arith.addf %256, %257 : vector<1x128xf32>
    %259 = arith.mulf %127, %224 : vector<1x128xf32>
    %260 = arith.mulf %128, %227 : vector<1x128xf32>
    %261 = arith.addf %259, %260 : vector<1x128xf32>
    %262 = arith.mulf %129, %230 : vector<1x128xf32>
    %263 = arith.addf %261, %262 : vector<1x128xf32>
    %264 = arith.mulf %130, %222 : vector<1x128xf32>
    %265 = arith.mulf %131, %225 : vector<1x128xf32>
    %266 = arith.addf %264, %265 : vector<1x128xf32>
    %267 = arith.mulf %132, %228 : vector<1x128xf32>
    %268 = arith.addf %266, %267 : vector<1x128xf32>
    %269 = arith.mulf %130, %223 : vector<1x128xf32>
    %270 = arith.mulf %131, %226 : vector<1x128xf32>
    %271 = arith.addf %269, %270 : vector<1x128xf32>
    %272 = arith.mulf %132, %229 : vector<1x128xf32>
    %273 = arith.addf %271, %272 : vector<1x128xf32>
    %274 = arith.mulf %130, %224 : vector<1x128xf32>
    %275 = arith.mulf %131, %227 : vector<1x128xf32>
    %276 = arith.addf %274, %275 : vector<1x128xf32>
    %277 = arith.mulf %132, %230 : vector<1x128xf32>
    %278 = arith.addf %276, %277 : vector<1x128xf32>
    %279 = arith.mulf %133, %222 : vector<1x128xf32>
    %280 = arith.mulf %134, %225 : vector<1x128xf32>
    %281 = arith.addf %279, %280 : vector<1x128xf32>
    %282 = arith.mulf %135, %228 : vector<1x128xf32>
    %283 = arith.addf %281, %282 : vector<1x128xf32>
    %284 = arith.mulf %133, %223 : vector<1x128xf32>
    %285 = arith.mulf %134, %226 : vector<1x128xf32>
    %286 = arith.addf %284, %285 : vector<1x128xf32>
    %287 = arith.mulf %135, %229 : vector<1x128xf32>
    %288 = arith.addf %286, %287 : vector<1x128xf32>
    %289 = arith.mulf %133, %224 : vector<1x128xf32>
    %290 = arith.mulf %134, %227 : vector<1x128xf32>
    %291 = arith.addf %289, %290 : vector<1x128xf32>
    %292 = arith.mulf %135, %230 : vector<1x128xf32>
    %293 = arith.addf %291, %292 : vector<1x128xf32>
    %294 = tpu.concatenate %236, %242, %248, %253, %258, %263, %268, %273, %278, %283, %288, %293 in 0 : vector<1x128xf32>, vector<1x128xf32>, vector<1x128xf32>, vector<1x128xf32>, vector<1x128xf32>, vector<1x128xf32>, vector<1x128xf32>, vector<1x128xf32>, vector<1x128xf32>, vector<1x128xf32>, vector<1x128xf32>, vector<1x128xf32> -> vector<12x128xf32>
    %c4_26 = arith.constant 4 : index
    %c0_27 = arith.constant 0 : index
    %c0_28 = arith.constant 0 : index
    %295 = vector.load %arg2[%c4_26, %c0_27, %c0_28] : memref<8x12x128xf32, #tpu.memory_space<vmem>>, vector<1x12x128xf32>
    %296 = vector.shape_cast %295 : vector<1x12x128xf32> to vector<12x128xf32>
    %297 = vector.shape_cast %294 : vector<12x128xf32> to vector<1x12x128xf32>
    tpu.vector_store %arg2[%c4_26, %c0_27, %c0_28], %297 {strides = array<i32>} : memref<8x12x128xf32, #tpu.memory_space<vmem>>, vector<1x12x128xf32>,
    %298 = vector.extract_strided_slice %1 {offsets = [7, 0], sizes = [1, 128], strides = [1, 1]} : vector<8x128xf32> to vector<1x128xf32>
    %299 = vector.extract_strided_slice %3 {offsets = [7, 0], sizes = [1, 128], strides = [1, 1]} : vector<8x128xf32> to vector<1x128xf32>
    %300 = vector.extract_strided_slice %5 {offsets = [7, 0], sizes = [1, 128], strides = [1, 1]} : vector<8x128xf32> to vector<1x128xf32>
    %301 = vector.extract_strided_slice %84 {offsets = [7, 0], sizes = [1, 128], strides = [1, 1]} : vector<8x128xf32> to vector<1x128xf32>
    %302 = vector.extract_strided_slice %102 {offsets = [7, 0], sizes = [1, 128], strides = [1, 1]} : vector<8x128xf32> to vector<1x128xf32>
    %303 = vector.extract_strided_slice %120 {offsets = [7, 0], sizes = [1, 128], strides = [1, 1]} : vector<8x128xf32> to vector<1x128xf32>
    %304 = vector.extract_strided_slice %87 {offsets = [7, 0], sizes = [1, 128], strides = [1, 1]} : vector<8x128xf32> to vector<1x128xf32>
    %305 = vector.extract_strided_slice %105 {offsets = [7, 0], sizes = [1, 128], strides = [1, 1]} : vector<8x128xf32> to vector<1x128xf32>
    %306 = vector.extract_strided_slice %123 {offsets = [7, 0], sizes = [1, 128], strides = [1, 1]} : vector<8x128xf32> to vector<1x128xf32>
    %307 = vector.extract_strided_slice %81 {offsets = [7, 0], sizes = [1, 128], strides = [1, 1]} : vector<8x128xf32> to vector<1x128xf32>
    %308 = vector.extract_strided_slice %99 {offsets = [7, 0], sizes = [1, 128], strides = [1, 1]} : vector<8x128xf32> to vector<1x128xf32>
    %309 = vector.extract_strided_slice %117 {offsets = [7, 0], sizes = [1, 128], strides = [1, 1]} : vector<8x128xf32> to vector<1x128xf32>
    %310 = arith.mulf %127, %298 : vector<1x128xf32>
    %311 = arith.mulf %128, %299 : vector<1x128xf32>
    %312 = arith.addf %310, %311 : vector<1x128xf32>
    %313 = arith.mulf %129, %300 : vector<1x128xf32>
    %314 = arith.addf %312, %313 : vector<1x128xf32>
    %315 = arith.addf %314, %124 : vector<1x128xf32>
    %316 = arith.mulf %130, %298 : vector<1x128xf32>
    %317 = arith.mulf %131, %299 : vector<1x128xf32>
    %318 = arith.addf %316, %317 : vector<1x128xf32>
    %319 = arith.mulf %132, %300 : vector<1x128xf32>
    %320 = arith.addf %318, %319 : vector<1x128xf32>
    %321 = arith.addf %320, %125 : vector<1x128xf32>
    %322 = arith.mulf %133, %298 : vector<1x128xf32>
    %323 = arith.mulf %134, %299 : vector<1x128xf32>
    %324 = arith.addf %322, %323 : vector<1x128xf32>
    %325 = arith.mulf %135, %300 : vector<1x128xf32>
    %326 = arith.addf %324, %325 : vector<1x128xf32>
    %327 = arith.addf %326, %126 : vector<1x128xf32>
    %328 = arith.mulf %127, %301 : vector<1x128xf32>
    %329 = arith.mulf %128, %304 : vector<1x128xf32>
    %330 = arith.addf %328, %329 : vector<1x128xf32>
    %331 = arith.mulf %129, %307 : vector<1x128xf32>
    %332 = arith.addf %330, %331 : vector<1x128xf32>
    %333 = arith.mulf %127, %302 : vector<1x128xf32>
    %334 = arith.mulf %128, %305 : vector<1x128xf32>
    %335 = arith.addf %333, %334 : vector<1x128xf32>
    %336 = arith.mulf %129, %308 : vector<1x128xf32>
    %337 = arith.addf %335, %336 : vector<1x128xf32>
    %338 = arith.mulf %127, %303 : vector<1x128xf32>
    %339 = arith.mulf %128, %306 : vector<1x128xf32>
    %340 = arith.addf %338, %339 : vector<1x128xf32>
    %341 = arith.mulf %129, %309 : vector<1x128xf32>
    %342 = arith.addf %340, %341 : vector<1x128xf32>
    %343 = arith.mulf %130, %301 : vector<1x128xf32>
    %344 = arith.mulf %131, %304 : vector<1x128xf32>
    %345 = arith.addf %343, %344 : vector<1x128xf32>
    %346 = arith.mulf %132, %307 : vector<1x128xf32>
    %347 = arith.addf %345, %346 : vector<1x128xf32>
    %348 = arith.mulf %130, %302 : vector<1x128xf32>
    %349 = arith.mulf %131, %305 : vector<1x128xf32>
    %350 = arith.addf %348, %349 : vector<1x128xf32>
    %351 = arith.mulf %132, %308 : vector<1x128xf32>
    %352 = arith.addf %350, %351 : vector<1x128xf32>
    %353 = arith.mulf %130, %303 : vector<1x128xf32>
    %354 = arith.mulf %131, %306 : vector<1x128xf32>
    %355 = arith.addf %353, %354 : vector<1x128xf32>
    %356 = arith.mulf %132, %309 : vector<1x128xf32>
    %357 = arith.addf %355, %356 : vector<1x128xf32>
    %358 = arith.mulf %133, %301 : vector<1x128xf32>
    %359 = arith.mulf %134, %304 : vector<1x128xf32>
    %360 = arith.addf %358, %359 : vector<1x128xf32>
    %361 = arith.mulf %135, %307 : vector<1x128xf32>
    %362 = arith.addf %360, %361 : vector<1x128xf32>
    %363 = arith.mulf %133, %302 : vector<1x128xf32>
    %364 = arith.mulf %134, %305 : vector<1x128xf32>
    %365 = arith.addf %363, %364 : vector<1x128xf32>
    %366 = arith.mulf %135, %308 : vector<1x128xf32>
    %367 = arith.addf %365, %366 : vector<1x128xf32>
    %368 = arith.mulf %133, %303 : vector<1x128xf32>
    %369 = arith.mulf %134, %306 : vector<1x128xf32>
    %370 = arith.addf %368, %369 : vector<1x128xf32>
    %371 = arith.mulf %135, %309 : vector<1x128xf32>
    %372 = arith.addf %370, %371 : vector<1x128xf32>
    %373 = tpu.concatenate %315, %321, %327, %332, %337, %342, %347, %352, %357, %362, %367, %372 in 0 : vector<1x128xf32>, vector<1x128xf32>, vector<1x128xf32>, vector<1x128xf32>, vector<1x128xf32>, vector<1x128xf32>, vector<1x128xf32>, vector<1x128xf32>, vector<1x128xf32>, vector<1x128xf32>, vector<1x128xf32>, vector<1x128xf32> -> vector<12x128xf32>
    %c7_29 = arith.constant 7 : index
    %c0_30 = arith.constant 0 : index
    %c0_31 = arith.constant 0 : index
    %374 = vector.load %arg2[%c7_29, %c0_30, %c0_31] : memref<8x12x128xf32, #tpu.memory_space<vmem>>, vector<1x12x128xf32>
    %375 = vector.shape_cast %374 : vector<1x12x128xf32> to vector<12x128xf32>
    %376 = vector.shape_cast %373 : vector<12x128xf32> to vector<1x12x128xf32>
    tpu.vector_store %arg2[%c7_29, %c0_30, %c0_31], %376 {strides = array<i32>} : memref<8x12x128xf32, #tpu.memory_space<vmem>>, vector<1x12x128xf32>,
    %377 = vector.extract_strided_slice %1 {offsets = [2, 0], sizes = [1, 128], strides = [1, 1]} : vector<8x128xf32> to vector<1x128xf32>
    %378 = vector.extract_strided_slice %3 {offsets = [2, 0], sizes = [1, 128], strides = [1, 1]} : vector<8x128xf32> to vector<1x128xf32>
    %379 = vector.extract_strided_slice %5 {offsets = [2, 0], sizes = [1, 128], strides = [1, 1]} : vector<8x128xf32> to vector<1x128xf32>
    %380 = vector.extract_strided_slice %84 {offsets = [2, 0], sizes = [1, 128], strides = [1, 1]} : vector<8x128xf32> to vector<1x128xf32>
    %381 = vector.extract_strided_slice %102 {offsets = [2, 0], sizes = [1, 128], strides = [1, 1]} : vector<8x128xf32> to vector<1x128xf32>
    %382 = vector.extract_strided_slice %120 {offsets = [2, 0], sizes = [1, 128], strides = [1, 1]} : vector<8x128xf32> to vector<1x128xf32>
    %383 = vector.extract_strided_slice %87 {offsets = [2, 0], sizes = [1, 128], strides = [1, 1]} : vector<8x128xf32> to vector<1x128xf32>
    %384 = vector.extract_strided_slice %105 {offsets = [2, 0], sizes = [1, 128], strides = [1, 1]} : vector<8x128xf32> to vector<1x128xf32>
    %385 = vector.extract_strided_slice %123 {offsets = [2, 0], sizes = [1, 128], strides = [1, 1]} : vector<8x128xf32> to vector<1x128xf32>
    %386 = vector.extract_strided_slice %81 {offsets = [2, 0], sizes = [1, 128], strides = [1, 1]} : vector<8x128xf32> to vector<1x128xf32>
    %387 = vector.extract_strided_slice %99 {offsets = [2, 0], sizes = [1, 128], strides = [1, 1]} : vector<8x128xf32> to vector<1x128xf32>
    %388 = vector.extract_strided_slice %117 {offsets = [2, 0], sizes = [1, 128], strides = [1, 1]} : vector<8x128xf32> to vector<1x128xf32>
    %389 = arith.mulf %174, %377 : vector<1x128xf32>
    %390 = arith.mulf %179, %378 : vector<1x128xf32>
    %391 = arith.addf %389, %390 : vector<1x128xf32>
    %392 = arith.mulf %184, %379 : vector<1x128xf32>
    %393 = arith.addf %391, %392 : vector<1x128xf32>
    %394 = arith.addf %393, %157 : vector<1x128xf32>
    %395 = arith.mulf %189, %377 : vector<1x128xf32>
    %396 = arith.mulf %194, %378 : vector<1x128xf32>
    %397 = arith.addf %395, %396 : vector<1x128xf32>
    %398 = arith.mulf %199, %379 : vector<1x128xf32>
    %399 = arith.addf %397, %398 : vector<1x128xf32>
    %400 = arith.addf %399, %163 : vector<1x128xf32>
    %401 = arith.mulf %204, %377 : vector<1x128xf32>
    %402 = arith.mulf %209, %378 : vector<1x128xf32>
    %403 = arith.addf %401, %402 : vector<1x128xf32>
    %404 = arith.mulf %214, %379 : vector<1x128xf32>
    %405 = arith.addf %403, %404 : vector<1x128xf32>
    %406 = arith.addf %405, %169 : vector<1x128xf32>
    %407 = arith.mulf %174, %380 : vector<1x128xf32>
    %408 = arith.mulf %179, %383 : vector<1x128xf32>
    %409 = arith.addf %407, %408 : vector<1x128xf32>
    %410 = arith.mulf %184, %386 : vector<1x128xf32>
    %411 = arith.addf %409, %410 : vector<1x128xf32>
    %412 = arith.mulf %174, %381 : vector<1x128xf32>
    %413 = arith.mulf %179, %384 : vector<1x128xf32>
    %414 = arith.addf %412, %413 : vector<1x128xf32>
    %415 = arith.mulf %184, %387 : vector<1x128xf32>
    %416 = arith.addf %414, %415 : vector<1x128xf32>
    %417 = arith.mulf %174, %382 : vector<1x128xf32>
    %418 = arith.mulf %179, %385 : vector<1x128xf32>
    %419 = arith.addf %417, %418 : vector<1x128xf32>
    %420 = arith.mulf %184, %388 : vector<1x128xf32>
    %421 = arith.addf %419, %420 : vector<1x128xf32>
    %422 = arith.mulf %189, %380 : vector<1x128xf32>
    %423 = arith.mulf %194, %383 : vector<1x128xf32>
    %424 = arith.addf %422, %423 : vector<1x128xf32>
    %425 = arith.mulf %199, %386 : vector<1x128xf32>
    %426 = arith.addf %424, %425 : vector<1x128xf32>
    %427 = arith.mulf %189, %381 : vector<1x128xf32>
    %428 = arith.mulf %194, %384 : vector<1x128xf32>
    %429 = arith.addf %427, %428 : vector<1x128xf32>
    %430 = arith.mulf %199, %387 : vector<1x128xf32>
    %431 = arith.addf %429, %430 : vector<1x128xf32>
    %432 = arith.mulf %189, %382 : vector<1x128xf32>
    %433 = arith.mulf %194, %385 : vector<1x128xf32>
    %434 = arith.addf %432, %433 : vector<1x128xf32>
    %435 = arith.mulf %199, %388 : vector<1x128xf32>
    %436 = arith.addf %434, %435 : vector<1x128xf32>
    %437 = arith.mulf %204, %380 : vector<1x128xf32>
    %438 = arith.mulf %209, %383 : vector<1x128xf32>
    %439 = arith.addf %437, %438 : vector<1x128xf32>
    %440 = arith.mulf %214, %386 : vector<1x128xf32>
    %441 = arith.addf %439, %440 : vector<1x128xf32>
    %442 = arith.mulf %204, %381 : vector<1x128xf32>
    %443 = arith.mulf %209, %384 : vector<1x128xf32>
    %444 = arith.addf %442, %443 : vector<1x128xf32>
    %445 = arith.mulf %214, %387 : vector<1x128xf32>
    %446 = arith.addf %444, %445 : vector<1x128xf32>
    %447 = arith.mulf %204, %382 : vector<1x128xf32>
    %448 = arith.mulf %209, %385 : vector<1x128xf32>
    %449 = arith.addf %447, %448 : vector<1x128xf32>
    %450 = arith.mulf %214, %388 : vector<1x128xf32>
    %451 = arith.addf %449, %450 : vector<1x128xf32>
    %452 = tpu.concatenate %394, %400, %406, %411, %416, %421, %426, %431, %436, %441, %446, %451 in 0 : vector<1x128xf32>, vector<1x128xf32>, vector<1x128xf32>, vector<1x128xf32>, vector<1x128xf32>, vector<1x128xf32>, vector<1x128xf32>, vector<1x128xf32>, vector<1x128xf32>, vector<1x128xf32>, vector<1x128xf32>, vector<1x128xf32> -> vector<12x128xf32>
    %c2_32 = arith.constant 2 : index
    %c0_33 = arith.constant 0 : index
    %c0_34 = arith.constant 0 : index
    %453 = vector.load %arg2[%c2_32, %c0_33, %c0_34] : memref<8x12x128xf32, #tpu.memory_space<vmem>>, vector<1x12x128xf32>
    %454 = vector.shape_cast %453 : vector<1x12x128xf32> to vector<12x128xf32>
    %455 = vector.shape_cast %452 : vector<12x128xf32> to vector<1x12x128xf32>
    tpu.vector_store %arg2[%c2_32, %c0_33, %c0_34], %455 {strides = array<i32>} : memref<8x12x128xf32, #tpu.memory_space<vmem>>, vector<1x12x128xf32>,
    %456 = vector.extract_strided_slice %1 {offsets = [5, 0], sizes = [1, 128], strides = [1, 1]} : vector<8x128xf32> to vector<1x128xf32>
    %457 = vector.extract_strided_slice %3 {offsets = [5, 0], sizes = [1, 128], strides = [1, 1]} : vector<8x128xf32> to vector<1x128xf32>
    %458 = vector.extract_strided_slice %5 {offsets = [5, 0], sizes = [1, 128], strides = [1, 1]} : vector<8x128xf32> to vector<1x128xf32>
    %459 = vector.extract_strided_slice %84 {offsets = [5, 0], sizes = [1, 128], strides = [1, 1]} : vector<8x128xf32> to vector<1x128xf32>
    %460 = vector.extract_strided_slice %102 {offsets = [5, 0], sizes = [1, 128], strides = [1, 1]} : vector<8x128xf32> to vector<1x128xf32>
    %461 = vector.extract_strided_slice %120 {offsets = [5, 0], sizes = [1, 128], strides = [1, 1]} : vector<8x128xf32> to vector<1x128xf32>
    %462 = vector.extract_strided_slice %87 {offsets = [5, 0], sizes = [1, 128], strides = [1, 1]} : vector<8x128xf32> to vector<1x128xf32>
    %463 = vector.extract_strided_slice %105 {offsets = [5, 0], sizes = [1, 128], strides = [1, 1]} : vector<8x128xf32> to vector<1x128xf32>
    %464 = vector.extract_strided_slice %123 {offsets = [5, 0], sizes = [1, 128], strides = [1, 1]} : vector<8x128xf32> to vector<1x128xf32>
    %465 = vector.extract_strided_slice %81 {offsets = [5, 0], sizes = [1, 128], strides = [1, 1]} : vector<8x128xf32> to vector<1x128xf32>
    %466 = vector.extract_strided_slice %99 {offsets = [5, 0], sizes = [1, 128], strides = [1, 1]} : vector<8x128xf32> to vector<1x128xf32>
    %467 = vector.extract_strided_slice %117 {offsets = [5, 0], sizes = [1, 128], strides = [1, 1]} : vector<8x128xf32> to vector<1x128xf32>
    %468 = arith.mulf %253, %456 : vector<1x128xf32>
    %469 = arith.mulf %258, %457 : vector<1x128xf32>
    %470 = arith.addf %468, %469 : vector<1x128xf32>
    %471 = arith.mulf %263, %458 : vector<1x128xf32>
    %472 = arith.addf %470, %471 : vector<1x128xf32>
    %473 = arith.addf %472, %236 : vector<1x128xf32>
    %474 = arith.mulf %268, %456 : vector<1x128xf32>
    %475 = arith.mulf %273, %457 : vector<1x128xf32>
    %476 = arith.addf %474, %475 : vector<1x128xf32>
    %477 = arith.mulf %278, %458 : vector<1x128xf32>
    %478 = arith.addf %476, %477 : vector<1x128xf32>
    %479 = arith.addf %478, %242 : vector<1x128xf32>
    %480 = arith.mulf %283, %456 : vector<1x128xf32>
    %481 = arith.mulf %288, %457 : vector<1x128xf32>
    %482 = arith.addf %480, %481 : vector<1x128xf32>
    %483 = arith.mulf %293, %458 : vector<1x128xf32>
    %484 = arith.addf %482, %483 : vector<1x128xf32>
    %485 = arith.addf %484, %248 : vector<1x128xf32>
    %486 = arith.mulf %253, %459 : vector<1x128xf32>
    %487 = arith.mulf %258, %462 : vector<1x128xf32>
    %488 = arith.addf %486, %487 : vector<1x128xf32>
    %489 = arith.mulf %263, %465 : vector<1x128xf32>
    %490 = arith.addf %488, %489 : vector<1x128xf32>
    %491 = arith.mulf %253, %460 : vector<1x128xf32>
    %492 = arith.mulf %258, %463 : vector<1x128xf32>
    %493 = arith.addf %491, %492 : vector<1x128xf32>
    %494 = arith.mulf %263, %466 : vector<1x128xf32>
    %495 = arith.addf %493, %494 : vector<1x128xf32>
    %496 = arith.mulf %253, %461 : vector<1x128xf32>
    %497 = arith.mulf %258, %464 : vector<1x128xf32>
    %498 = arith.addf %496, %497 : vector<1x128xf32>
    %499 = arith.mulf %263, %467 : vector<1x128xf32>
    %500 = arith.addf %498, %499 : vector<1x128xf32>
    %501 = arith.mulf %268, %459 : vector<1x128xf32>
    %502 = arith.mulf %273, %462 : vector<1x128xf32>
    %503 = arith.addf %501, %502 : vector<1x128xf32>
    %504 = arith.mulf %278, %465 : vector<1x128xf32>
    %505 = arith.addf %503, %504 : vector<1x128xf32>
    %506 = arith.mulf %268, %460 : vector<1x128xf32>
    %507 = arith.mulf %273, %463 : vector<1x128xf32>
    %508 = arith.addf %506, %507 : vector<1x128xf32>
    %509 = arith.mulf %278, %466 : vector<1x128xf32>
    %510 = arith.addf %508, %509 : vector<1x128xf32>
    %511 = arith.mulf %268, %461 : vector<1x128xf32>
    %512 = arith.mulf %273, %464 : vector<1x128xf32>
    %513 = arith.addf %511, %512 : vector<1x128xf32>
    %514 = arith.mulf %278, %467 : vector<1x128xf32>
    %515 = arith.addf %513, %514 : vector<1x128xf32>
    %516 = arith.mulf %283, %459 : vector<1x128xf32>
    %517 = arith.mulf %288, %462 : vector<1x128xf32>
    %518 = arith.addf %516, %517 : vector<1x128xf32>
    %519 = arith.mulf %293, %465 : vector<1x128xf32>
    %520 = arith.addf %518, %519 : vector<1x128xf32>
    %521 = arith.mulf %283, %460 : vector<1x128xf32>
    %522 = arith.mulf %288, %463 : vector<1x128xf32>
    %523 = arith.addf %521, %522 : vector<1x128xf32>
    %524 = arith.mulf %293, %466 : vector<1x128xf32>
    %525 = arith.addf %523, %524 : vector<1x128xf32>
    %526 = arith.mulf %283, %461 : vector<1x128xf32>
    %527 = arith.mulf %288, %464 : vector<1x128xf32>
    %528 = arith.addf %526, %527 : vector<1x128xf32>
    %529 = arith.mulf %293, %467 : vector<1x128xf32>
    %530 = arith.addf %528, %529 : vector<1x128xf32>
    %531 = tpu.concatenate %473, %479, %485, %490, %495, %500, %505, %510, %515, %520, %525, %530 in 0 : vector<1x128xf32>, vector<1x128xf32>, vector<1x128xf32>, vector<1x128xf32>, vector<1x128xf32>, vector<1x128xf32>, vector<1x128xf32>, vector<1x128xf32>, vector<1x128xf32>, vector<1x128xf32>, vector<1x128xf32>, vector<1x128xf32> -> vector<12x128xf32>
    %c5_35 = arith.constant 5 : index
    %c0_36 = arith.constant 0 : index
    %c0_37 = arith.constant 0 : index
    %532 = vector.load %arg2[%c5_35, %c0_36, %c0_37] : memref<8x12x128xf32, #tpu.memory_space<vmem>>, vector<1x12x128xf32>
    %533 = vector.shape_cast %532 : vector<1x12x128xf32> to vector<12x128xf32>
    %534 = vector.shape_cast %531 : vector<12x128xf32> to vector<1x12x128xf32>
    tpu.vector_store %arg2[%c5_35, %c0_36, %c0_37], %534 {strides = array<i32>} : memref<8x12x128xf32, #tpu.memory_space<vmem>>, vector<1x12x128xf32>,
    %535 = vector.extract_strided_slice %1 {offsets = [3, 0], sizes = [1, 128], strides = [1, 1]} : vector<8x128xf32> to vector<1x128xf32>
    %536 = vector.extract_strided_slice %3 {offsets = [3, 0], sizes = [1, 128], strides = [1, 1]} : vector<8x128xf32> to vector<1x128xf32>
    %537 = vector.extract_strided_slice %5 {offsets = [3, 0], sizes = [1, 128], strides = [1, 1]} : vector<8x128xf32> to vector<1x128xf32>
    %538 = vector.extract_strided_slice %84 {offsets = [3, 0], sizes = [1, 128], strides = [1, 1]} : vector<8x128xf32> to vector<1x128xf32>
    %539 = vector.extract_strided_slice %102 {offsets = [3, 0], sizes = [1, 128], strides = [1, 1]} : vector<8x128xf32> to vector<1x128xf32>
    %540 = vector.extract_strided_slice %120 {offsets = [3, 0], sizes = [1, 128], strides = [1, 1]} : vector<8x128xf32> to vector<1x128xf32>
    %541 = vector.extract_strided_slice %87 {offsets = [3, 0], sizes = [1, 128], strides = [1, 1]} : vector<8x128xf32> to vector<1x128xf32>
    %542 = vector.extract_strided_slice %105 {offsets = [3, 0], sizes = [1, 128], strides = [1, 1]} : vector<8x128xf32> to vector<1x128xf32>
    %543 = vector.extract_strided_slice %123 {offsets = [3, 0], sizes = [1, 128], strides = [1, 1]} : vector<8x128xf32> to vector<1x128xf32>
    %544 = vector.extract_strided_slice %81 {offsets = [3, 0], sizes = [1, 128], strides = [1, 1]} : vector<8x128xf32> to vector<1x128xf32>
    %545 = vector.extract_strided_slice %99 {offsets = [3, 0], sizes = [1, 128], strides = [1, 1]} : vector<8x128xf32> to vector<1x128xf32>
    %546 = vector.extract_strided_slice %117 {offsets = [3, 0], sizes = [1, 128], strides = [1, 1]} : vector<8x128xf32> to vector<1x128xf32>
    %547 = arith.mulf %411, %535 : vector<1x128xf32>
    %548 = arith.mulf %416, %536 : vector<1x128xf32>
    %549 = arith.addf %547, %548 : vector<1x128xf32>
    %550 = arith.mulf %421, %537 : vector<1x128xf32>
    %551 = arith.addf %549, %550 : vector<1x128xf32>
    %552 = arith.addf %551, %394 : vector<1x128xf32>
    %553 = arith.mulf %426, %535 : vector<1x128xf32>
    %554 = arith.mulf %431, %536 : vector<1x128xf32>
    %555 = arith.addf %553, %554 : vector<1x128xf32>
    %556 = arith.mulf %436, %537 : vector<1x128xf32>
    %557 = arith.addf %555, %556 : vector<1x128xf32>
    %558 = arith.addf %557, %400 : vector<1x128xf32>
    %559 = arith.mulf %441, %535 : vector<1x128xf32>
    %560 = arith.mulf %446, %536 : vector<1x128xf32>
    %561 = arith.addf %559, %560 : vector<1x128xf32>
    %562 = arith.mulf %451, %537 : vector<1x128xf32>
    %563 = arith.addf %561, %562 : vector<1x128xf32>
    %564 = arith.addf %563, %406 : vector<1x128xf32>
    %565 = arith.mulf %411, %538 : vector<1x128xf32>
    %566 = arith.mulf %416, %541 : vector<1x128xf32>
    %567 = arith.addf %565, %566 : vector<1x128xf32>
    %568 = arith.mulf %421, %544 : vector<1x128xf32>
    %569 = arith.addf %567, %568 : vector<1x128xf32>
    %570 = arith.mulf %411, %539 : vector<1x128xf32>
    %571 = arith.mulf %416, %542 : vector<1x128xf32>
    %572 = arith.addf %570, %571 : vector<1x128xf32>
    %573 = arith.mulf %421, %545 : vector<1x128xf32>
    %574 = arith.addf %572, %573 : vector<1x128xf32>
    %575 = arith.mulf %411, %540 : vector<1x128xf32>
    %576 = arith.mulf %416, %543 : vector<1x128xf32>
    %577 = arith.addf %575, %576 : vector<1x128xf32>
    %578 = arith.mulf %421, %546 : vector<1x128xf32>
    %579 = arith.addf %577, %578 : vector<1x128xf32>
    %580 = arith.mulf %426, %538 : vector<1x128xf32>
    %581 = arith.mulf %431, %541 : vector<1x128xf32>
    %582 = arith.addf %580, %581 : vector<1x128xf32>
    %583 = arith.mulf %436, %544 : vector<1x128xf32>
    %584 = arith.addf %582, %583 : vector<1x128xf32>
    %585 = arith.mulf %426, %539 : vector<1x128xf32>
    %586 = arith.mulf %431, %542 : vector<1x128xf32>
    %587 = arith.addf %585, %586 : vector<1x128xf32>
    %588 = arith.mulf %436, %545 : vector<1x128xf32>
    %589 = arith.addf %587, %588 : vector<1x128xf32>
    %590 = arith.mulf %426, %540 : vector<1x128xf32>
    %591 = arith.mulf %431, %543 : vector<1x128xf32>
    %592 = arith.addf %590, %591 : vector<1x128xf32>
    %593 = arith.mulf %436, %546 : vector<1x128xf32>
    %594 = arith.addf %592, %593 : vector<1x128xf32>
    %595 = arith.mulf %441, %538 : vector<1x128xf32>
    %596 = arith.mulf %446, %541 : vector<1x128xf32>
    %597 = arith.addf %595, %596 : vector<1x128xf32>
    %598 = arith.mulf %451, %544 : vector<1x128xf32>
    %599 = arith.addf %597, %598 : vector<1x128xf32>
    %600 = arith.mulf %441, %539 : vector<1x128xf32>
    %601 = arith.mulf %446, %542 : vector<1x128xf32>
    %602 = arith.addf %600, %601 : vector<1x128xf32>
    %603 = arith.mulf %451, %545 : vector<1x128xf32>
    %604 = arith.addf %602, %603 : vector<1x128xf32>
    %605 = arith.mulf %441, %540 : vector<1x128xf32>
    %606 = arith.mulf %446, %543 : vector<1x128xf32>
    %607 = arith.addf %605, %606 : vector<1x128xf32>
    %608 = arith.mulf %451, %546 : vector<1x128xf32>
    %609 = arith.addf %607, %608 : vector<1x128xf32>
    %610 = tpu.concatenate %552, %558, %564, %569, %574, %579, %584, %589, %594, %599, %604, %609 in 0 : vector<1x128xf32>, vector<1x128xf32>, vector<1x128xf32>, vector<1x128xf32>, vector<1x128xf32>, vector<1x128xf32>, vector<1x128xf32>, vector<1x128xf32>, vector<1x128xf32>, vector<1x128xf32>, vector<1x128xf32>, vector<1x128xf32> -> vector<12x128xf32>
    %c3_38 = arith.constant 3 : index
    %c0_39 = arith.constant 0 : index
    %c0_40 = arith.constant 0 : index
    %611 = vector.load %arg2[%c3_38, %c0_39, %c0_40] : memref<8x12x128xf32, #tpu.memory_space<vmem>>, vector<1x12x128xf32>
    %612 = vector.shape_cast %611 : vector<1x12x128xf32> to vector<12x128xf32>
    %613 = vector.shape_cast %610 : vector<12x128xf32> to vector<1x12x128xf32>
    tpu.vector_store %arg2[%c3_38, %c0_39, %c0_40], %613 {strides = array<i32>} : memref<8x12x128xf32, #tpu.memory_space<vmem>>, vector<1x12x128xf32>,
    %614 = vector.extract_strided_slice %1 {offsets = [6, 0], sizes = [1, 128], strides = [1, 1]} : vector<8x128xf32> to vector<1x128xf32>
    %615 = vector.extract_strided_slice %3 {offsets = [6, 0], sizes = [1, 128], strides = [1, 1]} : vector<8x128xf32> to vector<1x128xf32>
    %616 = vector.extract_strided_slice %5 {offsets = [6, 0], sizes = [1, 128], strides = [1, 1]} : vector<8x128xf32> to vector<1x128xf32>
    %617 = vector.extract_strided_slice %84 {offsets = [6, 0], sizes = [1, 128], strides = [1, 1]} : vector<8x128xf32> to vector<1x128xf32>
    %618 = vector.extract_strided_slice %102 {offsets = [6, 0], sizes = [1, 128], strides = [1, 1]} : vector<8x128xf32> to vector<1x128xf32>
    %619 = vector.extract_strided_slice %120 {offsets = [6, 0], sizes = [1, 128], strides = [1, 1]} : vector<8x128xf32> to vector<1x128xf32>
    %620 = vector.extract_strided_slice %87 {offsets = [6, 0], sizes = [1, 128], strides = [1, 1]} : vector<8x128xf32> to vector<1x128xf32>
    %621 = vector.extract_strided_slice %105 {offsets = [6, 0], sizes = [1, 128], strides = [1, 1]} : vector<8x128xf32> to vector<1x128xf32>
    %622 = vector.extract_strided_slice %123 {offsets = [6, 0], sizes = [1, 128], strides = [1, 1]} : vector<8x128xf32> to vector<1x128xf32>
    %623 = vector.extract_strided_slice %81 {offsets = [6, 0], sizes = [1, 128], strides = [1, 1]} : vector<8x128xf32> to vector<1x128xf32>
    %624 = vector.extract_strided_slice %99 {offsets = [6, 0], sizes = [1, 128], strides = [1, 1]} : vector<8x128xf32> to vector<1x128xf32>
    %625 = vector.extract_strided_slice %117 {offsets = [6, 0], sizes = [1, 128], strides = [1, 1]} : vector<8x128xf32> to vector<1x128xf32>
    %626 = arith.mulf %490, %614 : vector<1x128xf32>
    %627 = arith.mulf %495, %615 : vector<1x128xf32>
    %628 = arith.addf %626, %627 : vector<1x128xf32>
    %629 = arith.mulf %500, %616 : vector<1x128xf32>
    %630 = arith.addf %628, %629 : vector<1x128xf32>
    %631 = arith.addf %630, %473 : vector<1x128xf32>
    %632 = arith.mulf %505, %614 : vector<1x128xf32>
    %633 = arith.mulf %510, %615 : vector<1x128xf32>
    %634 = arith.addf %632, %633 : vector<1x128xf32>
    %635 = arith.mulf %515, %616 : vector<1x128xf32>
    %636 = arith.addf %634, %635 : vector<1x128xf32>
    %637 = arith.addf %636, %479 : vector<1x128xf32>
    %638 = arith.mulf %520, %614 : vector<1x128xf32>
    %639 = arith.mulf %525, %615 : vector<1x128xf32>
    %640 = arith.addf %638, %639 : vector<1x128xf32>
    %641 = arith.mulf %530, %616 : vector<1x128xf32>
    %642 = arith.addf %640, %641 : vector<1x128xf32>
    %643 = arith.addf %642, %485 : vector<1x128xf32>
    %644 = arith.mulf %490, %617 : vector<1x128xf32>
    %645 = arith.mulf %495, %620 : vector<1x128xf32>
    %646 = arith.addf %644, %645 : vector<1x128xf32>
    %647 = arith.mulf %500, %623 : vector<1x128xf32>
    %648 = arith.addf %646, %647 : vector<1x128xf32>
    %649 = arith.mulf %490, %618 : vector<1x128xf32>
    %650 = arith.mulf %495, %621 : vector<1x128xf32>
    %651 = arith.addf %649, %650 : vector<1x128xf32>
    %652 = arith.mulf %500, %624 : vector<1x128xf32>
    %653 = arith.addf %651, %652 : vector<1x128xf32>
    %654 = arith.mulf %490, %619 : vector<1x128xf32>
    %655 = arith.mulf %495, %622 : vector<1x128xf32>
    %656 = arith.addf %654, %655 : vector<1x128xf32>
    %657 = arith.mulf %500, %625 : vector<1x128xf32>
    %658 = arith.addf %656, %657 : vector<1x128xf32>
    %659 = arith.mulf %505, %617 : vector<1x128xf32>
    %660 = arith.mulf %510, %620 : vector<1x128xf32>
    %661 = arith.addf %659, %660 : vector<1x128xf32>
    %662 = arith.mulf %515, %623 : vector<1x128xf32>
    %663 = arith.addf %661, %662 : vector<1x128xf32>
    %664 = arith.mulf %505, %618 : vector<1x128xf32>
    %665 = arith.mulf %510, %621 : vector<1x128xf32>
    %666 = arith.addf %664, %665 : vector<1x128xf32>
    %667 = arith.mulf %515, %624 : vector<1x128xf32>
    %668 = arith.addf %666, %667 : vector<1x128xf32>
    %669 = arith.mulf %505, %619 : vector<1x128xf32>
    %670 = arith.mulf %510, %622 : vector<1x128xf32>
    %671 = arith.addf %669, %670 : vector<1x128xf32>
    %672 = arith.mulf %515, %625 : vector<1x128xf32>
    %673 = arith.addf %671, %672 : vector<1x128xf32>
    %674 = arith.mulf %520, %617 : vector<1x128xf32>
    %675 = arith.mulf %525, %620 : vector<1x128xf32>
    %676 = arith.addf %674, %675 : vector<1x128xf32>
    %677 = arith.mulf %530, %623 : vector<1x128xf32>
    %678 = arith.addf %676, %677 : vector<1x128xf32>
    %679 = arith.mulf %520, %618 : vector<1x128xf32>
    %680 = arith.mulf %525, %621 : vector<1x128xf32>
    %681 = arith.addf %679, %680 : vector<1x128xf32>
    %682 = arith.mulf %530, %624 : vector<1x128xf32>
    %683 = arith.addf %681, %682 : vector<1x128xf32>
    %684 = arith.mulf %520, %619 : vector<1x128xf32>
    %685 = arith.mulf %525, %622 : vector<1x128xf32>
    %686 = arith.addf %684, %685 : vector<1x128xf32>
    %687 = arith.mulf %530, %625 : vector<1x128xf32>
    %688 = arith.addf %686, %687 : vector<1x128xf32>
    %689 = tpu.concatenate %631, %637, %643, %648, %653, %658, %663, %668, %673, %678, %683, %688 in 0 : vector<1x128xf32>, vector<1x128xf32>, vector<1x128xf32>, vector<1x128xf32>, vector<1x128xf32>, vector<1x128xf32>, vector<1x128xf32>, vector<1x128xf32>, vector<1x128xf32>, vector<1x128xf32>, vector<1x128xf32>, vector<1x128xf32> -> vector<12x128xf32>
    %c6_41 = arith.constant 6 : index
    %c0_42 = arith.constant 0 : index
    %c0_43 = arith.constant 0 : index
    %690 = vector.load %arg2[%c6_41, %c0_42, %c0_43] : memref<8x12x128xf32, #tpu.memory_space<vmem>>, vector<1x12x128xf32>
    %691 = vector.shape_cast %690 : vector<1x12x128xf32> to vector<12x128xf32>
    %692 = vector.shape_cast %689 : vector<12x128xf32> to vector<1x12x128xf32>
    tpu.vector_store %arg2[%c6_41, %c0_42, %c0_43], %692 {strides = array<i32>} : memref<8x12x128xf32, #tpu.memory_space<vmem>>, vector<1x12x128xf32>,
    return
  }
  func.func @transform_0(%arg0: i32) -> (i32, i32, i32) {
    %c0_i32 = arith.constant 0 : i32
    %c0_i32_0 = arith.constant 0 : i32
    %c0_i32_1 = arith.constant 0 : i32
    return %c0_i32, %c0_i32_0, %arg0 : i32, i32, i32
  }
  func.func @transform_1(%arg0: i32) -> (i32, i32, i32) {
    %c0_i32 = arith.constant 0 : i32
    %c0_i32_0 = arith.constant 0 : i32
    %c0_i32_1 = arith.constant 0 : i32
    return %c0_i32, %c0_i32_0, %arg0 : i32, i32, i32
  }
}

</mosaic_0001>

<bundles_post_ra>
// kernel: tpu_custom_call.1
= control target key start
LH: loop header
LB: loop body
LE: loop exit
PB: predicated region body
PF: predicated region fallthrough
CT: control target
= control target key end

     0   :  { %6 = vsyncpa [#allocation3], 0  ;;  %s2403_s9 = smov [#allocation2]   ;;  %s2404_s11 = smov 128   ;;  %s3803_s0 = inlined_call_operand.hbm [shape: f32[10,8,128], index: 0, kind: input, shape index: {}]   ;;  %s3804_s1 = inlined_call_operand.vmem [shape: f32[8,12,128], index: 1, kind: output, shape index: {}]  }
   0x1   :  { %s11_s8 = sshll.u32 %s3803_s0, 4  ;;  %s13_s10 = sshll.u32 %s2403_s9, 4  ;;  %s12_s8 = int_to_ptr.hbm [resolvable:$true] %s11_s8  ;;  %s14_s10 = int_to_ptr.vmem [resolvable:$true] %s13_s10 }
   0x2   :  { %s2405_s12 = smov 8  }
   0x3   :  { %19 = dma.hbm_to_vmem [thread:$0]  %s12_s8, 1280, %s14_s10, [#allocation3], %s2404_s11, %s2404_s11, %s2405_s12  }
   0x4   :  { %2401 = dma.done.wait [#allocation3], 1280  }
   0x5   :  { %2402 = vsyncadd [#allocation3], 4294966016  ;;  %v38_v0 = vld [vmem:[#allocation2 + $0x38] sm:$0xff]  ;;  %v40_v1 = vld [vmem:[#allocation2 + $0x40] sm:$0xff]  ;;  %v2406_v25 = vmov 2102212464  }
   0x6   :  { %v42_v2 = vld [vmem:[#allocation2 + $0x48] sm:$0xff]  ;;  %v2426_v3 = vmul.f32 %v38_v0, %v38_v0  ;;  %v2428_v4 = vmul.f32 %v40_v1, %v40_v1  ;;  %v2432_v6 = vld [vmem:[#allocation2 + $0x18] sm:$0xff]  ;;  %v2438_v14 = vld [vmem:[#allocation2 + $0x20] sm:$0xff]  ;;  %v2407_v27 = vmov 920167782  }
   0x7   :  { %v2430_v5 = vmul.f32 %v42_v2, %v42_v2  ;;  %v374_v9 = vand.u32 2139095040, %v2432_v6  ;;  %v528_v20 = vand.u32 2139095040, %v2438_v14  ;;  %v371_v23 = vand.u32 2147483647, %v2432_v6  ;;  %v36_v49 = vld [vmem:[#allocation2 + $0x30] sm:$0xff] }
   0x8   :  { %v45_v7 = vadd.f32 %v2428_v4, %v2426_v3  ;;  %v2408_v31 = vmov 683565275   ;;  %v2409_v33 = vmov 2475754826   ;;  %v2410_v37 = vmov 2131351028  }
   0x9   :  { %v375_v10 = vshrl.u32 %v374_v9, 23  ;;  %v378_v29 = vand.u32 8388607, %v371_v23  ;;  %v2411_v47 = vmov 1326507024   ;;  %v529_v51 = vshrl.u32 %v528_v20, 23 }
   0xa   :  { %v47_v8 = vadd.f32 %v2430_v5, %v45_v7 }
   0xb   :  { %v2325_v11 = vadd.s32 4294967169, %v375_v10  ;;  %v379_v40 = vor.u32 8388608, %v378_v29 }
   0xc   :  { %2367 = vrsqrt.f32 %v47_v8  ;;  %vm55_vm1 = vcmp.eq.f32.partialorder %v47_v8, inf  ;;  %vm57_vm2 = vcmp.eq.f32.partialorder %v47_v8, 0.0  ;;  %v58_v19 = vand.u32 2147483648, %v47_v8 }
   0xd   :  { %v381_v12 = vadd.s32 1, %v2325_v11  ;;  %v2492_v61 = vshll.u32 %v379_v40, 8 }
   0xf   :  { %vm382_vm0 = vcmp.gt.s32.totalorder %v381_v12, 0  ;;  %v420_v7 = vand.u32 65535, %v2492_v61 }
  0x10   :  { %v383_v16 = vsel %vm382_vm0, %v381_v12, 0 }
  0x11   :  { %v385_v18 = vand.u32 31, %v383_v16  ;;  %v2449_v30 = vshrl.u32 %v383_v16, 5 }
  0x12   :  { %v2368_v13 = vpop.eup %2367 }
  0x13   :  { %v49_v15 = vmul.f32 %v2368_v13, %v47_v8  ;;  %v2441_v22 = vsub.s32 32, %v385_v18  ;;  %v397_v26 = vshll.u32 %v2406_v25, %v385_v18  ;;  %v388_v32 = vshll.u32 %v2408_v31, %v385_v18 }
  0x14   :  { %v391_v36 = vshll.u32 %v2409_v33, %v385_v18  ;;  %v394_v39 = vshll.u32 %v2410_v37, %v385_v18  ;;  %v400_v46 = vshll.u32 %v2407_v27, %v385_v18  ;;  %vm403_vm3 = vcmp.lt.s32.totalorder %v2449_v30, 1 }
  0x15   :  { %v50_v17 = vmul.f32 %v2368_v13, %v49_v15  ;;  %v398_v28 = vshrl.u32 %v2407_v27, %v2441_v22  ;;  %v389_v34 = vshrl.u32 %v2409_v33, %v2441_v22  ;;  %v392_v38 = vshrl.u32 %v2410_v37, %v2441_v22 }
  0x16   :  { %v395_v42 = vshrl.u32 %v2406_v25, %v2441_v22  ;;  %v401_v48 = vshrl.u32 %v2411_v47, %v2441_v22  ;;  %vm405_vm4 = vcmp.lt.s32.totalorder %v2449_v30, 3  ;;  %vm404_vm5 = vcmp.lt.s32.totalorder %v2449_v30, 2 }
  0x17   :  { %v51_v21 = vmul.f32 0.5, %v50_v17  ;;  %v2458_v41 = vor.u32 %v389_v34, %v388_v32  ;;  %v399_v43 = vor.u32 %v398_v28, %v397_v26  ;;  %v2462_v45 = vor.u32 %v392_v38, %v391_v36 }
  0x18   :  { %v2467_v50 = vor.u32 %v395_v42, %v394_v39  ;;  %v402_v53 = vor.u32 %v401_v48, %v400_v46  ;;  %vm406_vm6 = vcmp.lt.s32.totalorder %v2449_v30, 4  ;;  %v2328_v15 = vadd.s32 4294967169, %v529_v51 }
  0x19   :  { %v52_v24 = vsub.f32 1.5, %v51_v21  ;;  %v411_v55 = vsel %vm403_vm3, %v2458_v41, %v2462_v45  ;;  %v412_v56 = vsel %vm406_vm6, %v399_v43, 920167782  ;;  %v525_v38 = vand.u32 2147483647, %v2438_v14 }
  0x1a   :  { %v415_v57 = vsel %vm403_vm3, %v2462_v45, %v2467_v50  ;;  %v413_v59 = vsel %vm405_vm4, %v2467_v50, %v412_v56  ;;  %v416_v60 = vsel %vm406_vm6, %v402_v53, 1326507024  ;;  %v2515_v32 = vadd.s32 1, %v2328_v15 }
  0x1b   :  { %v53_v35 = vmul.f32 %v2368_v13, %v52_v24  ;;  %v417_v62 = vsel %vm405_vm4, %v399_v43, %v416_v60  ;;  %v414_v1 = vsel %vm404_vm5, %v411_v55, %v413_v59 }
  0x1c   :  { %v418_v2 = vsel %vm404_vm5, %v415_v57, %v417_v62  ;;  %v444_v13 = vand.u32 65535, %v414_v1  ;;  %vm536_vm15 = vcmp.gt.s32.totalorder %v2515_v32, 0 }
  0x1d   :  { %v54_v44 = vmul.f32 %v53_v35, %v47_v8  ;;  %v422_v9 = vand.u32 65535, %v418_v2  ;;  %v423_v10 = vshrl.u32 %v418_v2, 16 }
  0x1e   :  { %v2521_v40 = vmul.u32 %v444_v13, %v420_v7 }
  0x1f   :  { %v56_v52 = vsel %vm55_vm1, %v47_v8, %v54_v44  ;;  %v421_v8 = vshrl.u32 %v2492_v61, 16  ;;  %v424_v16 = vmul.u32 %v422_v9, %v420_v7  ;;  %v2506_v17 = vmul.u32 %v423_v10, %v420_v7 }
  0x20   :  { %v59_v54 = vsel %vm57_vm2, %v58_v19, %v56_v52  ;;  %v445_v19 = vshrl.u32 %v414_v1, 16 }
  0x21   :  { %v2485_v58 = vmul.f32 %v59_v54, %v36_v49  ;;  %v2508_v18 = vmul.u32 %v422_v9, %v421_v8  ;;  %v428_v24 = vshll.u32 %v2506_v17, 16  ;;  %v2518_v36 = vmul.u32 %v444_v13, %v421_v8 }
  0x22   :  { %v2511_v26 = vmul.u32 %v445_v19, %v420_v7  ;;  %v427_v39 = vmul.u32 %v423_v10, %v421_v8  ;;  %v2523_v43 = vmul.u32 %v445_v19, %v421_v8  ;;  %v429_v52 = vshrl.u32 %v2506_v17, 16 }
  0x23   :  { %v61_v63 = vand.u32 2147483647, %v2485_v58  ;;  %v64_v0 = vand.u32 2139095040, %v2485_v58  ;;  %v430_v34 = vshll.u32 %v2508_v18, 16  ;;  %v434_v35 = vadd.s32 %v428_v24, %v424_v16 }
  0x24   :  { %vm432_vm8 = vc.u32 %v424_v16, %v428_v24  ;;  %v450_v44 = vshll.u32 %v2511_v26, 16  ;;  %v451_v46 = vshrl.u32 %v2511_v26, 16  ;;  %v2412_v54 = vmov 0  }
  0x25   :  { %v65_v11 = vshrl.u32 %v64_v0, 23  ;;  %v68_v12 = vand.u32 8388607, %v61_v63  ;;  %v433_v55 = vsel %vm432_vm8, 1, %v2412_v54  ;;  %vm2535_vm9 = vc.u32 %v434_v35, %v430_v34 }
  0x26   :  { %v452_v57 = vshll.u32 %v2518_v36, 16  ;;  %v387_v7 = vshrl.u32 %v2408_v31, %v2441_v22  ;;  %v431_v8 = vshrl.u32 %v2508_v18, 16  ;;  %v437_v16 = vsel %vm2535_vm9, 1, %v2412_v54 }
  0x27   :  { %v2319_v20 = vadd.s32 4294967169, %v65_v11  ;;  %v69_v21 = vor.u32 8388608, %v68_v12  ;;  %v435_v12 = vadd.s32 %v433_v55, %v427_v39  ;;  %vm2586_vm14 = vc.u32 %v2521_v40, %v450_v44 }
  0x29   :  { %v71_v28 = vadd.s32 1, %v2319_v20  ;;  %v2513_v29 = vshll.u32 %v69_v21, 8  ;;  %v408_v21 = vsel %vm406_vm6, %v2467_v50, 2102212464 }
  0x2b   :  { %vm72_vm7 = vcmp.gt.s32.totalorder %v71_v28, 0  ;;  %v110_v49 = vand.u32 65535, %v2513_v29  ;;  %v2529_v51 = vshrl.u32 %v2513_v29, 16 }
  0x2c   :  { %v73_v42 = vsel %vm72_vm7, %v71_v28, 0 }
  0x2d   :  { %v75_v48 = vand.u32 31, %v73_v42  ;;  %v2532_v53 = vshrl.u32 %v73_v42, 5  ;;  %v407_v42 = vsel %vm403_vm3, %v387_v7, %v2458_v41  ;;  %v453_v41 = vshrl.u32 %v2518_v36, 16 }
  0x2e   :  { %v532_v36 = vand.u32 8388607, %v525_v38 }
  0x2f   :  { %v76_v59 = vsub.s32 32, %v75_v48  ;;  %v78_v60 = vshll.u32 %v2408_v31, %v75_v48  ;;  %v81_v62 = vshll.u32 %v2409_v33, %v75_v48  ;;  %v84_v0 = vshll.u32 %v2410_v37, %v75_v48 }
  0x30   :  { %v87_v1 = vshll.u32 %v2406_v25, %v75_v48  ;;  %v90_v2 = vshll.u32 %v2407_v27, %v75_v48  ;;  %vm93_vm10 = vcmp.lt.s32.totalorder %v2532_v53, 1  ;;  %vm96_vm11 = vcmp.lt.s32.totalorder %v2532_v53, 4 }
  0x31   :  { %v79_v9 = vshrl.u32 %v2409_v33, %v76_v59  ;;  %v82_v10 = vshrl.u32 %v2410_v37, %v76_v59  ;;  %v85_v11 = vshrl.u32 %v2406_v25, %v76_v59  ;;  %v88_v13 = vshrl.u32 %v2407_v27, %v76_v59 }
  0x32   :  { %v91_v15 = vshrl.u32 %v2411_v47, %v76_v59  ;;  %vm95_vm12 = vcmp.lt.s32.totalorder %v2532_v53, 3  ;;  %v77_v24 = vshrl.u32 %v2408_v31, %v76_v59  ;;  %vm94_vm13 = vcmp.lt.s32.totalorder %v2532_v53, 2 }
  0x33   :  { %v80_v22 = vor.u32 %v79_v9, %v78_v60  ;;  %v83_v17 = vor.u32 %v82_v10, %v81_v62  ;;  %v86_v18 = vor.u32 %v85_v11, %v84_v0  ;;  %v89_v19 = vor.u32 %v88_v13, %v87_v1 }
  0x34   :  { %v92_v20 = vor.u32 %v91_v15, %v90_v2  ;;  %v439_v48 = vadd.s32 %v437_v16, %v435_v12  ;;  %v409_v59 = vsel %vm405_vm4, %v2462_v45, %v408_v21 }
  0x35   :  { %v101_v28 = vsel %vm93_vm10, %v80_v22, %v83_v17  ;;  %v105_v34 = vsel %vm93_vm10, %v83_v17, %v86_v18  ;;  %v102_v35 = vsel %vm96_vm11, %v89_v19, 920167782  ;;  %v98_v55 = vsel %vm96_vm11, %v86_v18, 2102212464 }
  0x36   :  { %v106_v39 = vsel %vm96_vm11, %v92_v20, 1326507024  ;;  %v103_v50 = vsel %vm95_vm12, %v86_v18, %v102_v35  ;;  %v97_v45 = vsel %vm93_vm10, %v77_v24, %v80_v22  ;;  %v99_v10 = vsel %vm95_vm12, %v83_v17, %v98_v55 }
  0x37   :  { %v107_v56 = vsel %vm95_vm12, %v89_v19, %v106_v39  ;;  %v104_v60 = vsel %vm94_vm13, %v101_v28, %v103_v50  ;;  %v2597_v11 = vsel %vm404_vm5, %v407_v42, %v409_v59  ;;  %v440_v12 = vadd.s32 %v439_v48, %v429_v52 }
  0x38   :  { %v108_v62 = vsel %vm94_vm13, %v105_v34, %v107_v56  ;;  %v134_v7 = vand.u32 65535, %v104_v60  ;;  %v135_v9 = vshrl.u32 %v104_v60, 16  ;;  %v456_v18 = vadd.s32 %v450_v44, %v2521_v40 }
  0x39   :  { %v112_v1 = vand.u32 65535, %v108_v62  ;;  %v113_v2 = vshrl.u32 %v108_v62, 16  ;;  %v455_v17 = vsel %vm2586_vm14, 1, %v2412_v54  ;;  %v100_v30 = vsel %vm94_vm13, %v97_v45, %v99_v10 }
  0x3a   :  { %v136_v19 = vmul.u32 %v134_v7, %v110_v49  ;;  %v137_v20 = vmul.u32 %v135_v9, %v110_v49  ;;  %v138_v22 = vmul.u32 %v134_v7, %v2529_v51  ;;  %v139_v28 = vmul.u32 %v135_v9, %v2529_v51 }
  0x3b   :  { %v114_v13 = vmul.u32 %v112_v1, %v110_v49  ;;  %v115_v15 = vmul.u32 %v113_v2, %v110_v49  ;;  %v116_v16 = vmul.u32 %v112_v1, %v2529_v51  ;;  %v117_v52 = vmul.u32 %v113_v2, %v2529_v51 }
  0x3c   :  { %v140_v34 = vshll.u32 %v137_v20, 16  ;;  %v142_v35 = vshll.u32 %v138_v22, 16  ;;  %v2611_v40 = vadd.s32 %v440_v12, %v431_v8  ;;  %v457_v49 = vadd.s32 %v455_v17, %v2523_v43 }
  0x3d   :  { %v118_v21 = vshll.u32 %v115_v15, 16  ;;  %v120_v24 = vshll.u32 %v116_v16, 16  ;;  %vm458_vm1 = vc.u32 %v456_v18, %v452_v57  ;;  %v119_v48 = vshrl.u32 %v115_v15, 16 }
  0x3e   :  { %vm144_vm2 = vc.u32 %v136_v19, %v140_v34  ;;  %v146_v39 = vadd.s32 %v140_v34, %v136_v19  ;;  %v459_v42 = vsel %vm458_vm1, 1, %v2412_v54  ;;  %v141_v50 = vshrl.u32 %v137_v20, 16 }
  0x3f   :  { %vm122_vm0 = vc.u32 %v114_v13, %v118_v21  ;;  %v124_v44 = vadd.s32 %v118_v21, %v114_v13  ;;  %v145_v51 = vsel %vm144_vm2, 1, %v2412_v54  ;;  %v121_v43 = vshrl.u32 %v116_v16, 16 }
  0x40   :  { %v123_v53 = vsel %vm122_vm0, 1, %v2412_v54  ;;  %v147_v56 = vadd.s32 %v145_v51, %v139_v28  ;;  %vm148_vm4 = vc.u32 %v146_v39, %v142_v35  ;;  %v461_v62 = vadd.s32 %v459_v42, %v457_v49 }
  0x41   :  { %v125_v55 = vadd.s32 %v123_v53, %v117_v52  ;;  %vm126_vm3 = vc.u32 %v124_v44, %v120_v24  ;;  %v149_v60 = vsel %vm148_vm4, 1, %v2412_v54  ;;  %v143_v0 = vshrl.u32 %v138_v22, 16 }
  0x42   :  { %v127_v8 = vsel %vm126_vm3, 1, %v2412_v54  ;;  %v151_v1 = vadd.s32 %v149_v60, %v147_v56  ;;  %v2623_v2 = vadd.s32 %v456_v18, %v452_v57  ;;  %v537_v7 = vsel %vm536_vm15, %v2515_v32, 0 }
  0x43   :  { %v129_v59 = vadd.s32 %v127_v8, %v125_v55  ;;  %v2628_v45 = vadd.s32 %v146_v39, %v142_v35  ;;  %v462_v10 = vadd.s32 %v461_v62, %v451_v46  ;;  %v539_v12 = vand.u32 31, %v537_v7 }
  0x44   :  { %v152_v13 = vadd.s32 %v151_v1, %v141_v50  ;;  %v154_v19 = vmul.u32 %v2513_v29, %v100_v30  ;;  %v464_v32 = vmul.u32 %v2492_v61, %v2597_v11  ;;  %vm466_vm5 = vc.u32 %v2611_v40, %v2623_v2 }
  0x45   :  { %v130_v9 = vadd.s32 %v129_v59, %v119_v48  ;;  %v463_v16 = vadd.s32 %v462_v10, %v453_v41  ;;  %v2636_v57 = vsub.s32 32, %v539_v12  ;;  %v545_v46 = vshll.u32 %v2409_v33, %v539_v12 }
  0x46   :  { %v153_v18 = vadd.s32 %v152_v13, %v143_v0  ;;  %v548_v41 = vshll.u32 %v2410_v37, %v539_v12  ;;  %v2647_v22 = vshrl.u32 %v537_v7, 5  ;;  %v533_v17 = vor.u32 8388608, %v532_v36 }
  0x47   :  { %v2632_v15 = vadd.s32 %v130_v9, %v121_v43  ;;  %v467_v26 = vadd.s32 1, %v463_v16  ;;  %v546_v29 = vshrl.u32 %v2410_v37, %v2636_v57  ;;  %v549_v61 = vshrl.u32 %v2406_v25, %v2636_v57 }
  0x48   :  { %v157_v20 = vadd.s32 1, %v153_v18  ;;  %v554_v30 = vshll.u32 %v2407_v27, %v539_v12  ;;  %v551_v24 = vshll.u32 %v2406_v25, %v539_v12  ;;  %v552_v28 = vshrl.u32 %v2407_v27, %v2636_v57 }
  0x49   :  { %vm156_vm6 = vc.u32 %v2632_v15, %v2628_v45  ;;  %v468_v11 = vsel %vm466_vm5, %v467_v26, %v463_v16  ;;  %v2657_v35 = vor.u32 %v546_v29, %v545_v46  ;;  %v2659_v44 = vor.u32 %v549_v61, %v548_v41 }
  0x4a   :  { %v158_v52 = vsel %vm156_vm6, %v157_v20, %v153_v18  ;;  %v469_v21 = vadd.s32 %v468_v11, %v464_v32  ;;  %v555_v49 = vshrl.u32 %v2411_v47, %v2636_v57  ;;  %vm557_vm7 = vcmp.lt.s32.totalorder %v2647_v22, 1 }
  0x4b   :  { %v159_v34 = vadd.s32 %v158_v52, %v154_v19  ;;  %vm560_vm8 = vcmp.lt.s32.totalorder %v2647_v22, 4  ;;  %v2665_v48 = vshll.u32 %v533_v17, 8  ;;  %v542_v51 = vshll.u32 %v2408_v31, %v539_v12 }
  0x4c   :  { %v470_v53 = vadd.s32 536870912, %v469_v21  ;;  %v556_v42 = vor.u32 %v555_v49, %v554_v30  ;;  %v543_v8 = vshrl.u32 %v2409_v33, %v2636_v57  ;;  %vm559_vm9 = vcmp.lt.s32.totalorder %v2647_v22, 3 }
  0x4d   :  { %v160_v39 = vadd.s32 536870912, %v159_v34  ;;  %v553_v56 = vor.u32 %v552_v28, %v551_v24  ;;  %vm558_vm10 = vcmp.lt.s32.totalorder %v2647_v22, 2  ;;  %v569_v43 = vsel %vm557_vm7, %v2657_v35, %v2659_v44 }
  0x4e   :  { %v2667_v55 = vshrl.u32 %v470_v53, 30  ;;  %v570_v60 = vsel %vm560_vm8, %v556_v42, 1326507024  ;;  %v2688_v7 = vor.u32 %v543_v8, %v542_v51  ;;  %v574_v10 = vand.u32 65535, %v2665_v48 }
  0x4f   :  { %v2673_v50 = vshrl.u32 %v160_v39, 30  ;;  %v571_v0 = vsel %vm559_vm9, %v553_v56, %v570_v60  ;;  %v566_v13 = vsel %vm560_vm8, %v553_v56, 920167782  ;;  %v575_v61 = vshrl.u32 %v2665_v48, 16 }
  0x50   :  { %v472_v59 = vshll.u32 %v2667_v55, 30  ;;  %v572_v9 = vsel %vm558_vm10, %v569_v43, %v571_v0  ;;  %v565_v26 = vsel %vm557_vm7, %v2688_v7, %v2657_v35  ;;  %v567_v29 = vsel %vm559_vm9, %v2659_v44, %v566_v13 }
  0x51   :  { %v162_v62 = vshll.u32 %v2673_v50, 30  ;;  %v576_v36 = vand.u32 65535, %v572_v9  ;;  %v577_v18 = vshrl.u32 %v572_v9, 16  ;;  %v568_v24 = vsel %vm558_vm10, %v565_v26, %v567_v29 }
  0x52   :  { %v2686_v1 = vsub.s32 %v469_v21, %v472_v59  ;;  %v465_v53 = vadd.s32 %v2623_v2, %v2611_v40  ;;  %v599_v42 = vshrl.u32 %v568_v24, 16  ;;  %v598_v0 = vand.u32 65535, %v568_v24 }
  0x53   :  { %v163_v12 = vsub.s32 %v159_v34, %v162_v62  ;;  %v2702_v46 = vmul.u32 %v577_v18, %v574_v10  ;;  %v578_v17 = vmul.u32 %v576_v36, %v574_v10  ;;  %v2711_v28 = vmul.u32 %v576_v36, %v575_v61  ;;  %v2719_v36 = vld [vmem:[#allocation2 + $0x28] sm:$0xff] }
  0x54   :  { %vm474_vm11 = vcmp.lt.s32.totalorder %v2686_v1, 0  ;;  %v475_v16 = vsub.s32 0, %v2686_v1  ;;  %v155_v34 = vadd.s32 %v2628_v45, %v2632_v15  ;;  %v581_v43 = vmul.u32 %v577_v18, %v575_v61 }
  0x55   :  { %vm164_vm12 = vcmp.lt.s32.totalorder %v163_v12, 0  ;;  %v165_v19 = vsub.s32 0, %v163_v12  ;;  %v582_v30 = vshll.u32 %v2702_v46, 16  ;;  %v584_v59 = vshll.u32 %v2711_v28, 16 }
  0x56   :  { %v476_v32 = vsel %vm474_vm11, %v475_v16, %v2686_v1  ;;  %v601_v16 = vmul.u32 %v599_v42, %v574_v10  ;;  %v602_v18 = vmul.u32 %v598_v0, %v575_v61  ;;  %vm63_vm3 = vcmp.lt.s32.totalorder %v2485_v58, 0 }
  0x57   :  { %v166_v41 = vsel %vm164_vm12, %v165_v19, %v163_v12  ;;  %v477_v20 = vclz %v476_v32  ;;  %vm586_vm15 = vc.u32 %v578_v17, %v582_v30  ;;  %v588_v62 = vadd.s32 %v582_v30, %v578_v17 }
  0x58   :  { %v167_v11 = vclz %v166_v41  ;;  %v587_v60 = vsel %vm586_vm15, 1, %v2412_v54  ;;  %v604_v30 = vshll.u32 %v601_v16, 16  ;;  %vm2748_vm5 = vcmp.le.f32.partialorder %v61_v63, 0.7853982 }
  0x59   :  { %v2326_v52 = vadd.s32 4294967294, %v477_v20  ;;  %v589_v32 = vadd.s32 %v587_v60, %v581_v43  ;;  %vm590_vm0 = vc.u32 %v588_v62, %v584_v59  ;;  %v585_v59 = vshrl.u32 %v2711_v28, 16 }
  0x5a   :  { %v2320_v21 = vadd.s32 4294967294, %v167_v11  ;;  %v583_v11 = vshrl.u32 %v2702_v46, 16  ;;  %v591_v17 = vsel %vm590_vm0, 1, %v2412_v54  ;;  %vm527_vm15 = vcmp.lt.s32.totalorder %v2438_v14, 0 }
  0x5b   :  { %vm2327_vm13 = vcmp.lt.s32.totalorder %v2326_v52, 0  ;;  %vm2858_vm0 = vcmp.le.f32.partialorder %v525_v38, 0.7853982 }
  0x5c   :  { %vm2321_vm14 = vcmp.lt.s32.totalorder %v2320_v21, 0  ;;  %v480_v39 = vsel %vm2327_vm13, 0, %v2326_v52  ;;  %v682_v52 = vand.u32 2139095040, %v2719_v36 }
  0x5d   :  { %v170_v49 = vsel %vm2321_vm14, 0, %v2320_v21  ;;  %v481_v15 = vsub.s32 32, %v480_v39  ;;  %v485_v13 = vsub.s32 4294967266, %v480_v39  ;;  %v482_v41 = vshll.u32 %v2686_v1, %v480_v39 }
  0x5e   :  { %v171_v51 = vsub.s32 32, %v170_v49  ;;  %v172_v8 = vshll.u32 %v163_v12, %v170_v49  ;;  %v175_v56 = vsub.s32 4294967266, %v170_v49  ;;  %v600_v12 = vmul.u32 %v598_v0, %v574_v10 }
  0x5f   :  { %v486_v19 = vadd.s32 127, %v485_v13  ;;  %v483_v20 = vshrl.u32 %v465_v53, %v481_v15  ;;  %v603_v49 = vmul.u32 %v599_v42, %v575_v61  ;;  %v541_v10 = vshrl.u32 %v2408_v31, %v2636_v57 }
  0x60   :  { %v173_v9 = vshrl.u32 %v155_v34, %v171_v51  ;;  %v176_v45 = vadd.s32 127, %v175_v56  ;;  %v593_v34 = vadd.s32 %v591_v17, %v589_v32  ;;  %v606_v51 = vshll.u32 %v602_v18, 16 }
  0x61   :  { %v487_v29 = vshll.u32 %v486_v19, 23  ;;  %vm608_vm1 = vc.u32 %v600_v12, %v604_v30  ;;  %v562_v1 = vsel %vm560_vm8, %v2659_v44, 2102212464  ;;  %v610_v53 = vadd.s32 %v604_v30, %v600_v12 }
  0x62   :  { %v174_v40 = vor.u32 %v173_v9, %v172_v8  ;;  %v177_v2 = vshll.u32 %v176_v45, 23  ;;  %v484_v8 = vor.u32 %v483_v20, %v482_v41  ;;  %v609_v46 = vsel %vm608_vm1, 1, %v2412_v54 }
  0x63   :  { %v488_v56 = vor.u32 4788187, %v487_v29  ;;  %v683_v39 = vshrl.u32 %v682_v52, 23  ;;  %v594_v60 = vadd.s32 %v593_v34, %v583_v11  ;;  %v611_v61 = vadd.s32 %v609_v46, %v603_v49 }
  0x64   :  { %v178_v26 = vor.u32 4788187, %v177_v2  ;;  %v181_v24 = vcvt.s32.f32 %v174_v40  ;;  %v561_v57 = vsel %vm557_vm7, %v541_v10, %v2688_v7  ;;  %v605_v42 = vshrl.u32 %v601_v16, 16 }
  0x65   :  { %vm612_vm2 = vc.u32 %v610_v53, %v606_v51  ;;  %v2331_v62 = vadd.s32 4294967169, %v683_v39  ;;  %v489_v0 = vand.u32 2147483647, %v488_v56  ;;  %v491_v9 = vcvt.s32.f32 %v484_v8 }
  0x66   :  { %v179_v21 = vand.u32 2147483647, %v178_v26  ;;  %v563_v44 = vsel %vm559_vm9, %v2657_v35, %v562_v1  ;;  %v613_v45 = vsel %vm612_vm2, 1, %v2412_v54  ;;  %v607_v15 = vshrl.u32 %v602_v18, 16 }
  0x67   :  { %v615_v13 = vadd.s32 %v613_v45, %v611_v61  ;;  %v2739_v40 = vadd.s32 %v594_v60, %v585_v59  ;;  %v2741_v2 = vadd.s32 %v610_v53, %v606_v51  ;;  %v689_v19 = vadd.s32 1, %v2331_v62 }
  0x68   :  { %v182_v43 = vmul.f32 %v181_v24, %v179_v21  ;;  %v564_v7 = vsel %vm558_vm10, %v561_v57, %v563_v44  ;;  %v492_v32 = vmul.f32 %v491_v9, %v489_v0  ;;  %vm373_vm7 = vcmp.lt.s32.totalorder %v2432_v6, 0 }
  0x69   :  { %v616_v16 = vadd.s32 %v615_v13, %v605_v42  ;;  %vm690_vm4 = vcmp.gt.s32.totalorder %v689_v19, 0  ;;  %v618_v26 = vmul.u32 %v2665_v48, %v564_v7  ;;  %vm620_vm6 = vc.u32 %v2739_v40, %v2741_v2 }
  0x6a   :  { %v183_v28 = vxor.u32 2147483648, %v182_v43  ;;  %v493_v41 = vxor.u32 2147483648, %v492_v32  ;;  %v691_v20 = vsel %vm690_vm4, %v689_v19, 0  ;;  %v679_v11 = vand.u32 2147483647, %v2719_v36 }
  0x6b   :  { %v617_v12 = vadd.s32 %v616_v16, %v607_v15  ;;  %v185_v30 = vsub.s32 4, %v2673_v50  ;;  %v693_v48 = vand.u32 31, %v691_v20  ;;  %vm2771_vm8 = vcmp.le.f32.partialorder %v371_v23, 0.7853982 }
  0x6c   :  { %v184_v18 = vsel %vm63_vm3, %v183_v28, %v182_v43  ;;  %v494_v24 = vsel %vm373_vm7, %v493_v41, %v492_v32  ;;  %v686_v49 = vand.u32 8388607, %v679_v11  ;;  %v495_v15 = vsub.s32 4, %v2667_v55 }
  0x6d   :  { %v621_v22 = vadd.s32 1, %v617_v12  ;;  %v2760_v29 = vsel %vm2748_vm5, %v2485_v58, %v184_v18  ;;  %v186_v8 = vsel %vm63_vm3, %v185_v30, %v2673_v50  ;;  %v2788_v23 = vsel %vm2771_vm8, %v2432_v6, %v494_v24 }
  0x6e   :  { %v2767_v52 = vmul.f32 %v2760_v29, %v2760_v29  ;;  %v694_v56 = vsub.s32 32, %v693_v48  ;;  %v687_v53 = vor.u32 8388608, %v686_v49  ;;  %v2794_v39 = vsel %vm2748_vm5, 0, %v186_v8 }
  0x6f   :  { %v622_v63 = vsel %vm620_vm6, %v621_v22, %v617_v12  ;;  %v2798_v59 = vmul.f32 %v2788_v23, %v2788_v23  ;;  %v696_v50 = vshll.u32 %v2408_v31, %v693_v48  ;;  %v699_v57 = vshll.u32 %v2409_v33, %v693_v48 }
  0x70   :  { %v623_v17 = vadd.s32 %v622_v63, %v618_v26  ;;  %v190_v10 = vmul.f32 -0.001358992, %v2767_v52  ;;  %v197_v46 = vmul.f32 -0.00019511016, %v2767_v52  ;;  %v697_v61 = vshrl.u32 %v2409_v33, %v694_v56 }
  0x71   :  { %v705_v42 = vshll.u32 %v2406_v25, %v693_v48  ;;  %v700_v62 = vshrl.u32 %v2410_v37, %v694_v56  ;;  %v702_v0 = vshll.u32 %v2410_v37, %v693_v48  ;;  %v703_v9 = vshrl.u32 %v2406_v25, %v694_v56 }
  0x72   :  { %v624_v34 = vadd.s32 536870912, %v623_v17  ;;  %v191_v43 = vadd.f32 0.041655596, %v190_v10  ;;  %v706_v44 = vshrl.u32 %v2407_v27, %v694_v56  ;;  %v198_v45 = vadd.f32 0.008332121, %v197_v46 }
  0x73   :  { %v2811_v13 = vshrl.u32 %v691_v20, 5  ;;  %v2813_v28 = vshll.u32 %v687_v53, 8  ;;  %v500_v19 = vmul.f32 -0.001358992, %v2798_v59  ;;  %v507_v33 = vmul.f32 -0.00019511016, %v2798_v59 }
  0x74   :  { %v2780_v51 = vshrl.u32 %v624_v34, 30  ;;  %v192_v37 = vmul.f32 %v191_v43, %v2767_v52  ;;  %v698_v25 = vor.u32 %v697_v61, %v696_v50  ;;  %v707_v16 = vor.u32 %v706_v44, %v705_v42 }
  0x75   :  { %v708_v32 = vshll.u32 %v2407_v27, %v693_v48  ;;  %v701_v35 = vor.u32 %v700_v62, %v699_v57  ;;  %v704_v18 = vor.u32 %v703_v9, %v702_v0  ;;  %v709_v26 = vshrl.u32 %v2411_v47, %v694_v56 }
  0x76   :  { %v626_v1 = vshll.u32 %v2780_v51, 30  ;;  %v199_v22 = vmul.f32 %v198_v45, %v2767_v52  ;;  %vm711_vm10 = vcmp.lt.s32.totalorder %v2811_v13, 1  ;;  %vm713_vm11 = vcmp.lt.s32.totalorder %v2811_v13, 3 }
  0x77   :  { %v501_v20 = vadd.f32 0.041655596, %v500_v19  ;;  %v619_v63 = vadd.s32 %v2741_v2, %v2739_v40  ;;  %vm714_vm12 = vcmp.lt.s32.totalorder %v2811_v13, 4  ;;  %v508_v27 = vadd.f32 0.008332121, %v507_v33 }
  0x78   :  { %v2801_v60 = vsub.s32 %v623_v17, %v626_v1  ;;  %v710_v17 = vor.u32 %v709_v26, %v708_v32  ;;  %v720_v48 = vsel %vm714_vm12, %v707_v16, 920167782  ;;  %v728_v47 = vand.u32 65535, %v2813_v28 }
  0x79   :  { %vm712_vm13 = vcmp.lt.s32.totalorder %v2811_v13, 2  ;;  %v719_v24 = vsel %vm711_vm10, %v698_v25, %v701_v35  ;;  %v721_v34 = vsel %vm713_vm11, %v704_v18, %v720_v48  ;;  %v193_v2 = vadd.f32 -0.4999988, %v192_v37 }
  0x7a   :  { %vm628_vm9 = vcmp.lt.s32.totalorder %v2801_v60, 0  ;;  %v629_v7 = vsub.s32 0, %v2801_v60  ;;  %v724_v40 = vsel %vm714_vm12, %v710_v17, 1326507024  ;;  %v200_v49 = vadd.f32 -0.16666654, %v199_v22 }
  0x7b   :  { %v723_v10 = vsel %vm711_vm10, %v701_v35, %v704_v18  ;;  %v502_v8 = vmul.f32 %v501_v20, %v2798_v59  ;;  %v725_v46 = vsel %vm713_vm11, %v707_v16, %v724_v40  ;;  %v729_v53 = vshrl.u32 %v2813_v28, 16 }
  0x7c   :  { %v630_v12 = vsel %vm628_vm9, %v629_v7, %v2801_v60  ;;  %v722_v57 = vsel %vm712_vm13, %v719_v24, %v721_v34  ;;  %v509_v42 = vmul.f32 %v508_v27, %v2798_v59  ;;  %v695_v62 = vshrl.u32 %v2408_v31, %v694_v56 }
  0x7d   :  { %v631_v41 = vclz %v630_v12  ;;  %v726_v0 = vsel %vm712_vm13, %v723_v10, %v725_v46  ;;  %v752_v9 = vand.u32 65535, %v722_v57  ;;  %v201_v7 = vmul.f32 %v200_v49, %v2767_v52 }
  0x7e   :  { %v730_v19 = vand.u32 65535, %v726_v0  ;;  %v731_v33 = vshrl.u32 %v726_v0, 16  ;;  %v753_v37 = vshrl.u32 %v722_v57, 16  ;;  %v715_v22 = vsel %vm711_vm10, %v695_v62, %v698_v25 }
  0x7f   :  { %v2329_v30 = vadd.s32 4294967294, %v631_v41  ;;  %v756_v16 = vmul.u32 %v752_v9, %v729_v53  ;;  %v754_v20 = vmul.u32 %v752_v9, %v728_v47 }
  0x80   :  { %v732_v12 = vmul.u32 %v730_v19, %v728_v47  ;;  %v733_v26 = vmul.u32 %v731_v33, %v728_v47  ;;  %v734_v41 = vmul.u32 %v730_v19, %v729_v53  ;;  %v735_v27 = vmul.u32 %v731_v33, %v729_v53 }
  0x81   :  { %vm2330_vm14 = vcmp.lt.s32.totalorder %v2329_v30, 0  ;;  %v757_v24 = vmul.u32 %v753_v37, %v729_v53  ;;  %v760_v10 = vshll.u32 %v756_v16, 16  ;;  %v761_v19 = vshrl.u32 %v756_v16, 16 }
  0x82   :  { %v634_v1 = vsel %vm2330_vm14, 0, %v2329_v30  ;;  %v736_v30 = vshll.u32 %v733_v26, 16  ;;  %v738_v48 = vshll.u32 %v734_v41, 16  ;;  %v739_v62 = vshrl.u32 %v734_v41, 16 }
  0x83   :  { %v635_v43 = vsub.s32 32, %v634_v1  ;;  %v636_v50 = vshll.u32 %v2801_v60, %v634_v1  ;;  %v639_v61 = vsub.s32 4294967266, %v634_v1  ;;  %v716_v60 = vsel %vm714_vm12, %v704_v18, 2102212464 }
  0x84   :  { %v717_v38 = vsel %vm713_vm11, %v701_v35, %v716_v60  ;;  %vm740_vm1 = vc.u32 %v732_v12, %v736_v30  ;;  %v742_v49 = vadd.s32 %v736_v30, %v732_v12  ;;  %v737_v1 = vshrl.u32 %v733_v26, 16 }
  0x85   :  { %v637_v44 = vshrl.u32 %v619_v63, %v635_v43  ;;  %v640_v45 = vadd.s32 127, %v639_v61  ;;  %v755_v63 = vmul.u32 %v753_v37, %v728_v47  ;;  %v741_v25 = vsel %vm740_vm1, 1, %v2412_v54 }
  0x86   :  { %v743_v43 = vadd.s32 %v741_v25, %v735_v27  ;;  %vm744_vm3 = vc.u32 %v742_v49, %v738_v48  ;;  %v503_v60 = vadd.f32 -0.4999988, %v502_v8  ;;  %v202_v12 = vadd.f32 1.0, %v201_v7 }
  0x87   :  { %v638_v56 = vor.u32 %v637_v44, %v636_v50  ;;  %v641_v32 = vshll.u32 %v640_v45, 23  ;;  %v758_v34 = vshll.u32 %v755_v63, 16  ;;  %v745_v61 = vsel %vm744_vm3, 1, %v2412_v54 }
  0x88   :  { %v759_v35 = vshrl.u32 %v755_v63, 16  ;;  %v747_v0 = vadd.s32 %v745_v61, %v743_v43  ;;  %v194_v44 = vmul.f32 %v193_v2, %v2767_v52  ;;  %v510_v45 = vadd.f32 -0.16666654, %v509_v42 }
  0x89   :  { %v642_v17 = vor.u32 4788187, %v641_v32  ;;  %v645_v18 = vcvt.s32.f32 %v638_v56  ;;  %vm762_vm2 = vc.u32 %v754_v20, %v758_v34  ;;  %v764_v46 = vadd.s32 %v758_v34, %v754_v20 }
  0x8a   :  { %v763_v50 = vsel %vm762_vm2, 1, %v2412_v54  ;;  %v748_v56 = vadd.s32 %v747_v0, %v737_v1  ;;  %v205_v2 = vand.u32 3, %v2794_v39  ;;  %v359_v8 = vadd.s32 3, %v2794_v39 }
  0x8b   :  { %v643_v40 = vand.u32 2147483647, %v642_v17  ;;  %v765_v57 = vadd.s32 %v763_v50, %v757_v24  ;;  %vm766_vm4 = vc.u32 %v764_v46, %v760_v10  ;;  %v2873_v32 = vadd.s32 %v764_v46, %v760_v10 }
  0x8c   :  { %v767_v9 = vsel %vm766_vm4, 1, %v2412_v54  ;;  %v718_v54 = vsel %vm712_vm13, %v715_v22, %v717_v38  ;;  %v2886_v16 = vadd.s32 %v748_v56, %v739_v62  ;;  %v195_v41 = vadd.f32 1.0, %v194_v44 }
  0x8d   :  { %v646_v47 = vmul.f32 %v645_v18, %v643_v40  ;;  %v769_v33 = vadd.s32 %v767_v9, %v765_v57  ;;  %v496_v7 = vsel %vm373_vm7, %v495_v15, %v2667_v55  ;;  %v511_v13 = vmul.f32 %v510_v45, %v2798_v59 }
  0x8e   :  { %v772_v17 = vmul.u32 %v2813_v28, %v718_v54  ;;  %vm774_vm5 = vc.u32 %v2886_v16, %v2873_v32  ;;  %v203_v39 = vmul.f32 %v202_v12, %v2760_v29  ;;  %v504_v18 = vmul.f32 %v503_v60, %v2798_v59 }
  0x8f   :  { %v647_v53 = vxor.u32 2147483648, %v646_v47  ;;  %v770_v52 = vadd.s32 %v769_v33, %v759_v35  ;;  %vm210_vm6 = vcmp.eq.s32.totalorder %v205_v2, 2  ;;  %v360_v6 = vand.u32 3, %v359_v8 }
  0x90   :  { %v498_v55 = vsel %vm2771_vm8, 0, %v496_v7  ;;  %v512_v15 = vadd.f32 1.0, %v511_v13  ;;  %v211_v24 = vxor.u32 2147483648, %v195_v41  ;;  %v208_v49 = vxor.u32 2147483648, %v203_v39 }
  0x91   :  { %v648_v37 = vsel %vm527_vm15, %v647_v53, %v646_v47  ;;  %v771_v22 = vadd.s32 %v770_v52, %v761_v19  ;;  %v515_v34 = vand.u32 3, %v498_v55  ;;  %v2901_v10 = vadd.f32 1.0, %v504_v18 }
  0x92   :  { %v2878_v26 = vsel %vm2858_vm0, %v2438_v14, %v648_v37  ;;  %v649_v29 = vsub.s32 4, %v2780_v51  ;;  %vm207_vm7 = vcmp.eq.s32.totalorder %v205_v2, 0  ;;  %vm206_vm9 = vcmp.lt.s32.totalorder %v205_v2, 2 }
  0x93   :  { %v653_v42 = vmul.f32 %v2878_v26, %v2878_v26  ;;  %v775_v27 = vadd.s32 1, %v771_v22  ;;  %vm362_vm10 = vcmp.eq.s32.totalorder %v360_v6, 0  ;;  %vm365_vm11 = vcmp.eq.s32.totalorder %v360_v6, 2 }
  0x94   :  { %v2905_v21 = vmul.f32 %v512_v15, %v2788_v23  ;;  %v212_v46 = vsel %vm210_vm6, %v211_v24, %v203_v39  ;;  %vm361_vm8 = vcmp.lt.s32.totalorder %v360_v6, 2  ;;  %vm520_vm12 = vcmp.eq.s32.totalorder %v515_v34, 2 }
  0x95   :  { %v654_v20 = vmul.f32 -0.001358992, %v653_v42  ;;  %v661_v63 = vmul.f32 -0.00019511016, %v653_v42  ;;  %v776_v48 = vsel %vm774_vm5, %v775_v27, %v771_v22  ;;  %v209_v43 = vsel %vm207_vm7, %v195_v41, %v208_v49  ;;  %v2370_v27 = vld [vmem:[#allocation2 + $0x38] sm:$0xff] }
  0x96   :  { %v777_v40 = vadd.s32 %v776_v48, %v772_v17  ;;  %v521_v50 = vxor.u32 2147483648, %v2901_v10  ;;  %v650_v61 = vsel %vm527_vm15, %v649_v29, %v2780_v51  ;;  %v364_v57 = vsel %vm362_vm10, %v195_v41, %v208_v49  ;;  %v2369_v17 = vld [vmem:[#allocation2 + $0x18] sm:$0xff] }
  0x97   :  { %v655_v30 = vadd.f32 0.041655596, %v654_v20  ;;  %v662_v38 = vadd.f32 0.008332121, %v661_v63  ;;  %v367_v53 = vsel %vm365_vm11, %v211_v24, %v203_v39  ;;  %vm204_vm13 = vweird.f32 %v2485_v58 }
  0x98   :  { %v778_v25 = vadd.s32 536870912, %v777_v40  ;;  %vm516_vm14 = vcmp.lt.s32.totalorder %v515_v34, 2  ;;  %v518_v23 = vxor.u32 2147483648, %v2905_v21  ;;  %v213_v9 = vsel %vm206_vm9, %v209_v43, %v212_v46 }
  0x99   :  { %v663_v28 = vmul.f32 %v662_v38, %v653_v42  ;;  %v656_v59 = vmul.f32 %v655_v30, %v653_v42  ;;  %vm517_vm1 = vcmp.eq.s32.totalorder %v515_v34, 0  ;;  %v652_v44 = vsel %vm2858_vm0, 0, %v650_v61 }
  0x9a   :  { %v779_v47 = vshrl.u32 %v778_v25, 30  ;;  %v368_v14 = vsel %vm361_vm8, %v364_v57, %v367_v53  ;;  %v522_v51 = vsel %vm520_vm12, %v521_v50, %v2905_v21  ;;  %v977_v33 = vadd.s32 3, %v498_v55  ;;  %v2372_v55 = vld [vmem:[#allocation2 + $0x48] sm:$0xff] }
  0x9b   :  { %v664_v1 = vadd.f32 -0.16666654, %v663_v28  ;;  %v657_v35 = vadd.f32 -0.4999988, %v656_v59  ;;  %v2928_v31 = vsel %vm204_vm13, nan, %v213_v9  ;;  %v519_v12 = vsel %vm517_vm1, %v2901_v10, %v518_v23 }
  0x9c   :  { %v780_v0 = vshll.u32 %v779_v47, 30  ;;  %v803_v56 = vsub.s32 4, %v779_v47  ;;  %v2931_v54 = vand.u32 3, %v652_v44  ;;  %v978_v52 = vand.u32 3, %v977_v33 }
  0x9d   :  { %v665_v62 = vmul.f32 %v664_v1, %v653_v42  ;;  %v658_v19 = vmul.f32 %v657_v35, %v653_v42  ;;  %vm2935_vm0 = vcmp.le.f32.partialorder %v679_v11, 0.7853982  ;;  %v1132_v42 = vadd.s32 3, %v652_v44 }
  0x9e   :  { %v2917_v45 = vsub.s32 %v777_v40, %v780_v0  ;;  %v369_v41 = vsel %vm204_vm13, nan, %v368_v14  ;;  %vm681_vm2 = vcmp.lt.s32.totalorder %v2719_v36, 0  ;;  %v370_v22 = vsub.f32 1.0, %v2928_v31 }
  0x9f   :  { %v666_v60 = vadd.f32 1.0, %v665_v62  ;;  %v659_v7 = vadd.f32 1.0, %v658_v19  ;;  %v523_v20 = vsel %vm516_vm14, %v519_v12, %v522_v51  ;;  %v804_v11 = vsel %vm681_vm2, %v803_v56, %v779_v47  ;;  %v2373_v51 = vld [vmem:[#allocation2 + $0x20] sm:$0xff] }
  0xa0   :  { %vm782_vm15 = vcmp.lt.s32.totalorder %v2917_v45, 0  ;;  %v783_v37 = vsub.s32 0, %v2917_v45  ;;  %vm514_vm3 = vweird.f32 %v2369_v17  ;;  %vm671_vm4 = vcmp.eq.s32.totalorder %v2931_v54, 0 }
  0xa1   :  { %v667_v63 = vmul.f32 %v666_v60, %v2878_v26  ;;  %vm674_vm5 = vcmp.eq.s32.totalorder %v2931_v54, 2  ;;  %vm980_vm6 = vcmp.eq.s32.totalorder %v978_v52, 0  ;;  %vm670_vm7 = vcmp.lt.s32.totalorder %v2931_v54, 2  ;;  %v2371_v26 = vld [vmem:[#allocation2 + $0x40] sm:$0xff] }
  0xa2   :  { %v784_v8 = vsel %vm782_vm15, %v783_v37, %v2917_v45  ;;  %v773_v39 = vadd.s32 %v2873_v32, %v2886_v16  ;;  %vm983_vm9 = vcmp.eq.s32.totalorder %v978_v52, 2  ;;  %v1133_v18 = vand.u32 3, %v1132_v42 }
  0xa3   :  { %v785_v13 = vclz %v784_v8  ;;  %v1300_v30 = vmul.f32 %v2371_v26, %v2370_v27  ;;  %v675_v38 = vxor.u32 2147483648, %v659_v7  ;;  %v806_v6 = vsel %vm2935_vm0, 0, %v804_v11 }
  0xa4   :  { %v1304_v15 = vmul.f32 %v2372_v55, %v2370_v27  ;;  %v672_v48 = vxor.u32 2147483648, %v667_v63  ;;  %vm979_vm11 = vcmp.lt.s32.totalorder %v978_v52, 2  ;;  %v982_v34 = vsel %vm980_vm6, %v2901_v10, %v518_v23 }
  0xa5   :  { %v2332_v58 = vadd.s32 4294967294, %v785_v13  ;;  %v985_v40 = vsel %vm983_vm9, %v521_v50, %v2905_v21  ;;  %vm1135_vm8 = vcmp.eq.s32.totalorder %v1133_v18, 0  ;;  %v1301_v49 = vmul.f32 %v1300_v30, %v370_v22 }
  0xa6   :  { %v1302_v29 = vmul.f32 %v2372_v55, %v369_v41  ;;  %v1311_v59 = vmul.f32 %v2372_v55, %v2371_v26  ;;  %vm1138_vm12 = vcmp.eq.s32.totalorder %v1133_v18, 2  ;;  %v1305_v46 = vmul.f32 %v1304_v15, %v370_v22 }
  0xa7   :  { %vm2333_vm10 = vcmp.lt.s32.totalorder %v2332_v58, 0  ;;  %v673_v47 = vsel %vm671_vm4, %v659_v7, %v672_v48  ;;  %v676_v43 = vsel %vm674_vm5, %v675_v38, %v667_v63  ;;  %v986_v61 = vsel %vm979_vm11, %v982_v34, %v985_v40 }
  0xa8   :  { %v788_v24 = vsel %vm2333_vm10, 0, %v2332_v58  ;;  %vm1134_vm13 = vcmp.lt.s32.totalorder %v1133_v18, 2  ;;  %v1137_v21 = vsel %vm1135_vm8, %v659_v7, %v672_v48  ;;  %v1306_v50 = vmul.f32 %v2371_v26, %v369_v41 }
  0xa9   :  { %v789_v28 = vsub.s32 32, %v788_v24  ;;  %v790_v32 = vshll.u32 %v2917_v45, %v788_v24  ;;  %v793_v16 = vsub.s32 4294967266, %v788_v24  ;;  %v1140_v57 = vsel %vm1138_vm12, %v675_v38, %v667_v63 }
  0xaa   :  { %v1309_v53 = vmul.f32 %v370_v22, %v2428_v4  ;;  %v1312_v62 = vmul.f32 %v1311_v59, %v370_v22  ;;  %v1313_v0 = vmul.f32 %v2370_v27, %v369_v41  ;;  %v1303_v44 = vadd.f32 %v1302_v29, %v1301_v49 }
  0xab   :  { %v791_v1 = vshrl.u32 %v773_v39, %v789_v28  ;;  %v794_v25 = vadd.s32 127, %v793_v16  ;;  %v1307_v45 = vsub.f32 %v1305_v46, %v1306_v50  ;;  %v524_v14 = vsel %vm514_vm3, nan, %v523_v20 }
  0xac   :  { %vm668_vm14 = vweird.f32 %v2373_v51  ;;  %v987_v19 = vsel %vm514_vm3, nan, %v986_v61  ;;  %v1317_v33 = vmul.f32 %v370_v22, %v2430_v5  ;;  %v677_v60 = vsel %vm670_vm7, %v673_v47, %v676_v43 }
  0xad   :  { %v792_v10 = vor.u32 %v791_v1, %v790_v32  ;;  %v795_v35 = vshll.u32 %v794_v25, 23  ;;  %v1287_v56 = vadd.s32 3, %v806_v6  ;;  %v1298_v4 = vmul.f32 %v370_v22, %v2426_v3 }
  0xae   :  { %v1141_v12 = vsel %vm1134_vm13, %v1137_v21, %v1140_v57  ;;  %v1310_v52 = vadd.f32 %v1309_v53, %v2928_v31  ;;  %v1314_v8 = vadd.f32 %v1313_v0, %v1312_v62  ;;  %v1316_v42 = vsub.f32 %v1312_v62, %v1313_v0  ;;  %v2997_v21 = vld [vmem:[#allocation2 + $0x8] sm:$0xff] }
  0xaf   :  { %v796_v23 = vor.u32 4788187, %v795_v35  ;;  %v799_v9 = vcvt.s32.f32 %v792_v10  ;;  %v1318_v7 = vadd.f32 %v1317_v33, %v2928_v31  ;;  %v1322_v13 = vmul.f32 %v1303_v44, %v987_v19 }
  0xb0   :  { %v1323_v20 = vmul.f32 %v1307_v45, %v524_v14  ;;  %v678_v5 = vsel %vm668_vm14, nan, %v677_v60  ;;  %v2978_v54 = vand.u32 3, %v806_v6  ;;  %v1299_v11 = vadd.f32 %v1298_v4, %v2928_v31 }
  0xb1   :  { %v797_v37 = vand.u32 2147483647, %v796_v23  ;;  %v1142_v3 = vsel %vm668_vm14, nan, %v1141_v12  ;;  %v2982_v22 = vand.u32 3, %v1287_v56  ;;  %v1340_v17 = vmul.f32 %v1310_v52, %v987_v19 }
  0xb2   :  { %v1341_v58 = vmul.f32 %v1314_v8, %v524_v14  ;;  %v1324_v18 = vadd.f32 %v1323_v20, %v1322_v13  ;;  %v1358_v27 = vmul.f32 %v1316_v42, %v987_v19  ;;  %v1359_v26 = vmul.f32 %v1318_v7, %v524_v14 }
  0xb3   :  { %v800_v41 = vmul.f32 %v799_v9, %v797_v37  ;;  %v1308_v38 = vsub.f32 %v1301_v49, %v1302_v29  ;;  %v1315_v6 = vadd.f32 %v1306_v50, %v1305_v46  ;;  %v1319_v31 = vmul.f32 %v1303_v44, %v524_v14  ;;  %v2993_v29 = vld [vmem:[#allocation2] sm:$0xff]  ;;  %v2999_v50 = vld [vmem:[#allocation2 + $0x10] sm:$0xff] }
  0xb4   :  { %v1320_v15 = vmul.f32 %v1307_v45, %v987_v19  ;;  %v1325_v48 = vmul.f32 %v1299_v11, %v678_v5  ;;  %v1329_v24 = vmul.f32 %v1299_v11, %v1142_v3  ;;  %v1337_v34 = vmul.f32 %v1310_v52, %v524_v14 }
  0xb5   :  { %v801_v63 = vxor.u32 2147483648, %v800_v41  ;;  %v1338_v28 = vmul.f32 %v1314_v8, %v987_v19  ;;  %v1342_v32 = vadd.f32 %v1341_v58, %v1340_v17  ;;  %v1360_v16 = vadd.f32 %v1359_v26, %v1358_v27 }
  0xb6   :  { %v1326_v1 = vmul.f32 %v1324_v18, %v1142_v3  ;;  %v1328_v25 = vmul.f32 %v1324_v18, %v678_v5  ;;  %v1347_v47 = vmul.f32 %v1308_v38, %v1142_v3  ;;  %v1365_v49 = vmul.f32 %v1315_v6, %v1142_v3 }
  0xb7   :  { %v802_v39 = vsel %vm681_vm2, %v801_v63, %v800_v41  ;;  %v1346_v2 = vmul.f32 %v1342_v32, %v678_v5  ;;  %v1364_v43 = vmul.f32 %v1360_v16, %v678_v5  ;;  %v2995_v10 = vsub.f32 %v1319_v31, %v1320_v15 }
  0xb8   :  { %v2989_v30 = vsel %vm2935_vm0, %v2719_v36, %v802_v39  ;;  %v1343_v35 = vmul.f32 %v1308_v38, %v678_v5  ;;  %vm828_vm1 = vcmp.eq.s32.totalorder %v2978_v54, 2  ;;  %vm1293_vm15 = vcmp.eq.s32.totalorder %v2982_v22, 2 }
  0xb9   :  { %v807_v55 = vmul.f32 %v2989_v30, %v2989_v30  ;;  %v3003_v57 = vsub.f32 %v1337_v34, %v1338_v28  ;;  %v1355_v53 = vmul.f32 %v1316_v42, %v524_v14  ;;  %v1356_v62 = vmul.f32 %v1318_v7, %v987_v19 }
  0xba   :  { %v1361_v0 = vmul.f32 %v1315_v6, %v678_v5  ;;  %v3005_v44 = vadd.f32 %v1326_v1, %v1325_v48  ;;  %v3007_v45 = vsub.f32 %v1328_v25, %v1329_v24  ;;  %vm825_vm0 = vcmp.eq.s32.totalorder %v2978_v54, 0 }
  0xbb   :  { %v808_v40 = vmul.f32 -0.001358992, %v807_v55  ;;  %v815_v59 = vmul.f32 -0.00019511016, %v807_v55  ;;  %vm1290_vm2 = vcmp.eq.s32.totalorder %v2982_v22, 0  ;;  %v1344_v51 = vmul.f32 %v1342_v32, %v1142_v3 }
  0xbc   :  { %v3011_v33 = vsub.f32 %v1346_v2, %v1347_v47  ;;  %v3013_v60 = vsub.f32 %v1364_v43, %v1365_v49  ;;  %v3016_v37 = vrot.slane %v2993_v29, 1  ;;  %vm824_vm3 = vcmp.lt.s32.totalorder %v2978_v54, 2 }
  0xbd   :  { %v809_v46 = vadd.f32 0.041655596, %v808_v40  ;;  %v816_v61 = vadd.f32 0.008332121, %v815_v59  ;;  %vm1289_vm4 = vcmp.lt.s32.totalorder %v2982_v22, 2  ;;  %v3021_v56 = vrot.slane %v2997_v21, 1 }
  0xbe   :  { %v3024_v4 = vrot.slane %v2999_v50, 1  ;;  %vm822_vm5 = vweird.f32 %v2719_v36  ;;  %v1362_v12 = vmul.f32 %v1360_v16, %v1142_v3  ;;  %v3028_v52 = vrot.slane %v2997_v21, 7 }
  0xbf   :  { %v810_v23 = vmul.f32 %v809_v46, %v807_v55  ;;  %v817_v9 = vmul.f32 %v816_v61, %v807_v55  ;;  %vm1403_vm6 = vcmask 1040384   ;;  %v1441_v8 = vmul.f32 %v3016_v37, %v3007_v45 }
  0xc0   :  { %v1442_v7 = vmul.f32 %v3021_v56, %v3011_v33  ;;  %v1444_v13 = vmul.f32 %v3024_v4, %v3013_v60  ;;  %v1345_v20 = vadd.f32 %v1344_v51, %v1343_v35  ;;  %v1357_v5 = vsub.f32 %v1355_v53, %v1356_v62 }
  0xc1   :  { %v811_v14 = vadd.f32 -0.4999988, %v810_v23  ;;  %v818_v19 = vadd.f32 -0.16666654, %v817_v9  ;;  %v3037_v63 = vrot.slane %v2999_v50, 6  ;;  %vm1405_vm7 = vcmask 1041408  }
  0xc2   :  { %v1404_v17 = vsel %vm1403_vm6, %v2993_v29, %v3028_v52  ;;  %v1443_v58 = vadd.f32 %v1442_v7, %v1441_v8  ;;  %v1363_v39 = vadd.f32 %v1362_v12, %v1361_v0  ;;  %v3043_v18 = vrot.slane %v3007_v45, 7 }
  0xc3   :  { %v812_v42 = vmul.f32 %v811_v14, %v807_v55  ;;  %v819_v41 = vmul.f32 %v818_v19, %v807_v55  ;;  %3844 = vst [vmem:[#allocation5_spill] sm:$0xff] %v3037_v63  ;;  %v3046_v27 = vrot.slane %v3007_v45, 1  ;;  %v3049_v26 = vrot.slane %v3011_v33, 1 }
  0xc4   :  { %v1445_v31 = vadd.f32 %v1444_v13, %v1443_v58  ;;  %v3053_v55 = vrot.slane %v2993_v29, 4  ;;  %v3056_v15 = vrot.slane %v3011_v33, 6  ;;  %v1406_v48 = vsel %vm1405_vm7, %v1404_v17, %v3037_v63 }
  0xc5   :  { %v813_v11 = vadd.f32 1.0, %v812_v42  ;;  %v820_v3 = vadd.f32 1.0, %v819_v41  ;;  %v3061_v24 = vrot.slane %v3013_v60, 1  ;;  %v3064_v34 = vrot.slane %v2997_v21, 4 }
  0xc6   :  { %3845 = vst [vmem:[#allocation6_spill] sm:$0xff] %v3056_v15  ;;  %v3071_v16 = vrot.slane %v3013_v60, 5  ;;  %vm1407_vm9 = vcmask 1042432   ;;  %vm1409_vm10 = vcmask 1043456   ;;  %v3074_v40 = vadd.f32 %v1445_v31, %v2999_v50 }
  0xc7   :  { %v821_v38 = vmul.f32 %v820_v3, %v2989_v30  ;;  %v829_v6 = vxor.u32 2147483648, %v813_v11  ;;  %v3077_v59 = vrot.slane %v2999_v50, 4  ;;  %v1570_v1 = vmul.f32 %v3053_v55, %v3007_v45 }
  0xc8   :  { %3846 = vst [vmem:[#allocation7_spill] sm:$0xff] %v3071_v16  ;;  %v1571_v25 = vmul.f32 %v3064_v34, %v3011_v33  ;;  %vm1411_vm11 = vcmask 1044480   ;;  %v3089_v43 = vmul.f32 %v3046_v27, %v3013_v60  ;;  %v3093_v49 = vmul.f32 %v3049_v26, %v3013_v60 }
  0xc9   :  { %v826_v28 = vxor.u32 2147483648, %v821_v38  ;;  %v830_v30 = vsel %vm828_vm1, %v829_v6, %v821_v38  ;;  %v1295_v32 = vsel %vm1293_vm15, %v829_v6, %v821_v38  ;;  %vm1413_vm8 = vcmask 1045504  }
  0xca   :  { %v3101_v35 = vmul.f32 %v3061_v24, %v3013_v60  ;;  %v1513_v53 = vrot.slane %v3074_v40, 6  ;;  %vm1415_vm12 = vcmask 1046528   ;;  %v3108_v23 = vadd.f32 %v1571_v25, %v1570_v1 }
  0xcb   :  { %v827_v2 = vsel %vm825_vm0, %v813_v11, %v826_v28  ;;  %v1292_v47 = vsel %vm1290_vm2, %v813_v11, %v826_v28  ;;  %v3112_v54 = vmul.f32 %v3077_v59, %v3013_v60 }
  0xcc   :  { %v831_v46 = vsel %vm824_vm3, %v827_v2, %v830_v30  ;;  %v1296_v61 = vsel %vm1289_vm4, %v1292_v47, %v1295_v32 }
  0xcd   :  { %v832_v62 = vsel %vm822_vm5, nan, %v831_v46  ;;  %v1297_v0 = vsel %vm822_vm5, nan, %v1296_v61 }
  0xce   :  { %v1331_v22 = vmul.f32 %v3005_v44, %v832_v62  ;;  %v1332_v9 = vmul.f32 %v2995_v10, %v1297_v0  ;;  %v1334_v51 = vmul.f32 %v3005_v44, %v1297_v0  ;;  %v1335_v14 = vmul.f32 %v2995_v10, %v832_v62 }
  0xcf   :  { %v1349_v19 = vmul.f32 %v1345_v20, %v832_v62  ;;  %v1350_v12 = vmul.f32 %v3003_v57, %v1297_v0  ;;  %v1352_v36 = vmul.f32 %v1345_v20, %v1297_v0  ;;  %v1353_v8 = vmul.f32 %v3003_v57, %v832_v62 }
  0xd0   :  { %v3120_v42 = vsub.f32 %v1331_v22, %v1332_v9  ;;  %v3122_v41 = vadd.f32 %v1335_v14, %v1334_v51  ;;  %v1367_v7 = vmul.f32 %v1363_v39, %v832_v62  ;;  %v1368_v13 = vmul.f32 %v1357_v5, %v1297_v0 }
  0xd1   :  { %v3124_v11 = vsub.f32 %v1349_v19, %v1350_v12  ;;  %v3126_v3 = vadd.f32 %v1353_v8, %v1352_v36  ;;  %v1370_v17 = vmul.f32 %v1363_v39, %v1297_v0  ;;  %v1371_v44 = vmul.f32 %v1357_v5, %v832_v62 }
  0xd2   :  { %3847 = vst [vmem:[#allocation8_spill] sm:$0xff] %v3122_v41  ;;  %v3128_v58 = vsub.f32 %v1367_v7, %v1368_v13  ;;  %v3131_v10 = vrot.slane %v3120_v42, 5  ;;  %v3134_v20 = vrot.slane %v3122_v41, 2  ;;  %v1425_v57 = vmul.f32 %v3016_v37, %v3120_v42 }
  0xd3   :  { %v3138_v38 = vadd.f32 %v1371_v44, %v1370_v17  ;;  %v3141_v6 = vrot.slane %v3124_v11, 4  ;;  %v1392_v31 = vrot.slane %v3126_v3, 1  ;;  %v1428_v5 = vmul.f32 %v3021_v56, %v3124_v11 }
  0xd4   :  { %3848 = vst [vmem:[#allocation9_spill] sm:$0xff] %v3131_v10  ;;  %v3147_v39 = vrot.slane %v3128_v58, 3  ;;  %v1408_v28 = vsel %vm1407_vm9, %v1406_v48, %v3131_v10  ;;  %v1432_v30 = vmul.f32 %v3024_v4, %v3128_v58  ;;  %v1435_v32 = vmul.f32 %v3016_v37, %v3122_v41 }
  0xd5   :  { %v1410_v1 = vsel %vm1409_vm10, %v1408_v28, %v3141_v6  ;;  %v1417_v25 = vsel %vm1403_vm6, %v3138_v38, %v3043_v18  ;;  %v1429_v2 = vadd.f32 %v1428_v5, %v1425_v57  ;;  %v1436_v47 = vmul.f32 %v3021_v56, %v3126_v3 }
  0xd6   :  { %3849 = vst [vmem:[#allocation10_spill] sm:$0xff] %v3147_v39  ;;  %v1412_v48 = vsel %vm1411_vm11, %v1410_v1, %v3147_v39  ;;  %v1418_v46 = vsel %vm1405_vm7, %v1417_v25, %v3056_v15  ;;  %v1438_v37 = vmul.f32 %v3024_v4, %v3138_v38  ;;  %v1447_v61 = vrot.slane %v3120_v42, 1 }
  0xd7   :  { %v1414_v62 = vsel %vm1413_vm8, %v1412_v48, %v3134_v20  ;;  %v1419_v0 = vsel %vm1407_vm9, %v1418_v46, %v3071_v16  ;;  %v1433_v22 = vadd.f32 %v1432_v30, %v1429_v2  ;;  %v1437_v9 = vadd.f32 %v1436_v47, %v1435_v32 }
  0xd8   :  { %v1416_v56 = vsel %vm1415_vm12, %v1414_v62, %v1392_v31  ;;  %1421 = vst [vmem:[%s3804_s1 + $0x8] sm:$0xf] %v1419_v0  ;;  %v1449_v51 = vmul.f32 %v1447_v61, %v3120_v42  ;;  %v1450_v4 = vrot.slane %v3122_v41, 1  ;;  %v1456_v14 = vmul.f32 %v3046_v27, %v3128_v58 }
  0xd9   :  { %1420 = vst [vmem:[%s3804_s1] sm:$0xff] %v1416_v56  ;;  %v3185_v19 = vadd.f32 %v1433_v22, %v2993_v29  ;;  %v1439_v12 = vadd.f32 %v1438_v37, %v1437_v9  ;;  %v1458_v36 = vrot.slane %v3124_v11, 1  ;;  %v1461_v8 = vmul.f32 %v1392_v31, %v3124_v11 }
  0xda   :  { %v1452_v7 = vmul.f32 %v1450_v4, %v3124_v11  ;;  %v1465_v13 = vmul.f32 %v3049_v26, %v3128_v58  ;;  %v1467_v17 = vrot.slane %v3128_v58, 1  ;;  %v1471_v44 = vrot.slane %v3138_v38, 1 }
  0xdb   :  { %v3195_v57 = vadd.f32 %v1439_v12, %v2997_v21  ;;  %v1460_v5 = vmul.f32 %v1458_v36, %v3120_v42  ;;  %v1477_v28 = vmul.f32 %v3061_v24, %v3128_v58  ;;  %v1479_v30 = vmul.f32 %v1447_v61, %v3122_v41 }
  0xdc   :  { %v1453_v32 = vadd.f32 %v1452_v7, %v1449_v51  ;;  %v1469_v1 = vmul.f32 %v1467_v17, %v3120_v42  ;;  %v1473_v25 = vmul.f32 %v1471_v44, %v3124_v11  ;;  %v1480_v2 = vmul.f32 %v1450_v4, %v3126_v3 }
  0xdd   :  { %v1462_v47 = vadd.f32 %v1461_v8, %v1460_v5  ;;  %v1482_v48 = vmul.f32 %v3046_v27, %v3138_v38  ;;  %v1484_v46 = vmul.f32 %v1458_v36, %v3122_v41  ;;  %v1485_v37 = vmul.f32 %v1392_v31, %v3126_v3 }
  0xde   :  { %v3208_v62 = vadd.f32 %v1456_v14, %v1453_v32  ;;  %v1474_v0 = vadd.f32 %v1473_v25, %v1469_v1  ;;  %v1481_v22 = vadd.f32 %v1480_v2, %v1479_v30  ;;  %v1487_v9 = vmul.f32 %v3049_v26, %v3138_v38 }
  0xdf   :  { %v3212_v56 = vadd.f32 %v1465_v13, %v1462_v47  ;;  %v1486_v51 = vadd.f32 %v1485_v37, %v1484_v46  ;;  %v1489_v12 = vmul.f32 %v1467_v17, %v3122_v41  ;;  %v1490_v8 = vmul.f32 %v1471_v44, %v3126_v3 }
  0xe0   :  { %v3216_v7 = vadd.f32 %v1477_v28, %v1474_v0  ;;  %v3218_v27 = vadd.f32 %v1482_v48, %v1481_v22  ;;  %v1492_v14 = vmul.f32 %v3061_v24, %v3138_v38  ;;  %v1494_v5 = vmul.f32 %v1447_v61, %v3007_v45 }
  0xe1   :  { %v3223_v30 = vadd.f32 %v1487_v9, %v1486_v51  ;;  %v1491_v32 = vadd.f32 %v1490_v8, %v1489_v12  ;;  %v1495_v26 = vmul.f32 %v1450_v4, %v3011_v33  ;;  %v1499_v13 = vmul.f32 %v1458_v36, %v3007_v45 }
  0xe2   :  { %v1500_v1 = vmul.f32 %v1392_v31, %v3011_v33  ;;  %v1504_v25 = vmul.f32 %v1467_v17, %v3007_v45  ;;  %v1505_v28 = vmul.f32 %v1471_v44, %v3011_v33  ;;  %v1510_v2 = vrot.slane %v3195_v57, 7 }
  0xe3   :  { %v3231_v47 = vadd.f32 %v1492_v14, %v1491_v32  ;;  %v1496_v24 = vadd.f32 %v1495_v26, %v1494_v5  ;;  %v1516_v61 = vrot.slane %v3208_v62, 5  ;;  %v1519_v48 = vrot.slane %v3212_v56, 4 }
  0xe4   :  { %v1501_v46 = vadd.f32 %v1500_v1, %v1499_v13  ;;  %v1506_v37 = vadd.f32 %v1505_v28, %v1504_v25  ;;  %v1522_v4 = vrot.slane %v3216_v7, 3  ;;  %v1525_v36 = vrot.slane %v3218_v27, 2 }
  0xe5   :  { %v3238_v31 = vadd.f32 %v3089_v43, %v1496_v24  ;;  %v1528_v17 = vrot.slane %v3223_v30, 1  ;;  %v1539_v44 = vsel %vm1403_vm6, %v3185_v19, %v1510_v2  ;;  %v1554_v0 = vmul.f32 %v3053_v55, %v3120_v42 }
  0xe6   :  { %v3246_v22 = vadd.f32 %v3093_v49, %v1501_v46  ;;  %v3249_v9 = vadd.f32 %v3101_v35, %v1506_v37  ;;  %v1540_v51 = vsel %vm1405_vm7, %v1539_v44, %v1513_v53  ;;  %v1557_v43 = vmul.f32 %v3064_v34, %v3124_v11 }
  0xe7   :  { %v1531_v12 = vrot.slane %v3238_v31, 7  ;;  %v1541_v8 = vsel %vm1407_vm9, %v1540_v51, %v1516_v61  ;;  %v1561_v14 = vmul.f32 %v3077_v59, %v3128_v58  ;;  %v1564_v49 = vmul.f32 %v3053_v55, %v3122_v41 }
  0xe8   :  { %v1534_v35 = vrot.slane %v3246_v22, 6  ;;  %v1537_v5 = vrot.slane %v3249_v9, 5  ;;  %v1542_v32 = vsel %vm1409_vm10, %v1541_v8, %v1519_v48  ;;  %v1558_v53 = vadd.f32 %v1557_v43, %v1554_v0 }
  0xe9   :  { %v1543_v26 = vsel %vm1411_vm11, %v1542_v32, %v1522_v4  ;;  %v1546_v13 = vsel %vm1403_vm6, %v3231_v47, %v1531_v12  ;;  %v1565_v1 = vmul.f32 %v3064_v34, %v3126_v3  ;;  %v1567_v25 = vmul.f32 %v3077_v59, %v3138_v38 }
  0xea   :  { %v1544_v55 = vsel %vm1413_vm8, %v1543_v26, %v1525_v36  ;;  %v1547_v28 = vsel %vm1405_vm7, %v1546_v13, %v1534_v35  ;;  %v1562_v2 = vadd.f32 %v1561_v14, %v1558_v53  ;;  %v1574_v24 = vadd.f32 %v3112_v54, %v3108_v23 }
  0xeb   :  { %v1545_v61 = vsel %vm1415_vm12, %v1544_v55, %v1528_v17  ;;  %v1548_v48 = vsel %vm1407_vm9, %v1547_v28, %v1537_v5  ;;  %v1566_v46 = vadd.f32 %v1565_v1, %v1564_v49  ;;  %v1576_v37 = vrot.slane %v3120_v42, 4 }
  0xec   :  { %2343 = vst [vmem:[%s3804_s1 + $0x10] sm:$0xff] %v1545_v61  ;;  %v3283_v34 = vadd.f32 %v1562_v2, %v2993_v29  ;;  %v3286_v59 = vadd.f32 %v1574_v24, %v2999_v50  ;;  %v1579_v4 = vrot.slane %v3122_v41, 4  ;;  %v1583_v23 = vrot.slane %v3007_v45, 4 }
  0xed   :  { %2344 = vst [vmem:[%s3804_s1 + $0x18] sm:$0xf] %v1548_v48  ;;  %v1568_v54 = vadd.f32 %v1567_v25, %v1566_v46  ;;  %v1578_v36 = vmul.f32 %v1576_v37, %v3120_v42  ;;  %v1587_v17 = vmul.f32 %v3141_v6, %v3120_v42  ;;  %v1588_v44 = vrot.slane %v3126_v3, 4 }
  0xee   :  { %3850 = vst [vmem:[#allocation11_spill] sm:$0xff] %v3283_v34  ;;  %v1581_v0 = vmul.f32 %v1579_v4, %v3124_v11  ;;  %v1585_v51 = vmul.f32 %v1583_v23, %v3128_v58  ;;  %v1592_v43 = vrot.slane %v3011_v33, 4  ;;  %v1596_v12 = vrot.slane %v3128_v58, 4 }
  0xef   :  { %3851 = vst [vmem:[#allocation12_spill] sm:$0xff] %v3286_v59  ;;  %v3302_v8 = vadd.f32 %v1568_v54, %v2997_v21  ;;  %v1590_v14 = vmul.f32 %v1588_v44, %v3124_v11  ;;  %v1599_v49 = vrot.slane %v3138_v38, 4  ;;  %v1603_v35 = vrot.slane %v3013_v60, 4 }
  0xf0   :  { %v1582_v5 = vadd.f32 %v1581_v0, %v1578_v36  ;;  %v1594_v32 = vmul.f32 %v1592_v43, %v3128_v58  ;;  %v1598_v53 = vmul.f32 %v1596_v12, %v3120_v42  ;;  %v1607_v26 = vmul.f32 %v1576_v37, %v3122_v41 }
  0xf1   :  { %3852 = vst [vmem:[#allocation13_spill] sm:$0xff] %v3302_v8  ;;  %v1591_v13 = vadd.f32 %v1590_v14, %v1587_v17  ;;  %v1601_v1 = vmul.f32 %v1599_v49, %v3124_v11  ;;  %v1605_v25 = vmul.f32 %v1603_v35, %v3128_v58  ;;  %v1608_v55 = vmul.f32 %v1579_v4, %v3126_v3 }
  0xf2   :  { %v3313_v28 = vadd.f32 %v1585_v51, %v1582_v5  ;;  %v1610_v2 = vmul.f32 %v1583_v23, %v3138_v38  ;;  %v1612_v24 = vmul.f32 %v3141_v6, %v3122_v41  ;;  %v1613_v61 = vmul.f32 %v1588_v44, %v3126_v3 }
  0xf3   :  { %v3319_v48 = vadd.f32 %v1594_v32, %v1591_v13  ;;  %v1602_v46 = vadd.f32 %v1601_v1, %v1598_v53  ;;  %v1609_v54 = vadd.f32 %v1608_v55, %v1607_v26  ;;  %v1615_v36 = vmul.f32 %v1592_v43, %v3138_v38 }
  0xf4   :  { %v1614_v17 = vadd.f32 %v1613_v61, %v1612_v24  ;;  %v1617_v0 = vmul.f32 %v1596_v12, %v3122_v41  ;;  %v1618_v14 = vmul.f32 %v1599_v49, %v3126_v3  ;;  %v1620_v51 = vmul.f32 %v1603_v35, %v3138_v38 }
  0xf5   :  { %v3325_v5 = vadd.f32 %v1605_v25, %v1602_v46  ;;  %v3327_v15 = vadd.f32 %v1610_v2, %v1609_v54  ;;  %v1622_v63 = vmul.f32 %v1576_v37, %v3007_v45  ;;  %v1623_v32 = vmul.f32 %v1579_v4, %v3011_v33 }
  0xf6   :  { %v3331_v13 = vadd.f32 %v1615_v36, %v1614_v17  ;;  %v1619_v53 = vadd.f32 %v1618_v14, %v1617_v0  ;;  %v1625_v26 = vmul.f32 %v1583_v23, %v3013_v60  ;;  %v1627_v1 = vmul.f32 %v3141_v6, %v3007_v45 }
  0xf7   :  { %3853 = vst [vmem:[#allocation14_spill] sm:$0xff] %v3327_v15  ;;  %v1624_v55 = vadd.f32 %v1623_v32, %v1622_v63  ;;  %v1628_v24 = vmul.f32 %v1588_v44, %v3011_v33  ;;  %v1630_v25 = vmul.f32 %v1592_v43, %v3013_v60  ;;  %v1632_v2 = vmul.f32 %v1596_v12, %v3007_v45 }
  0xf8   :  { %3854 = vst [vmem:[#allocation15_spill] sm:$0xff] %v3331_v13  ;;  %v3339_v61 = vadd.f32 %v1620_v51, %v1619_v53  ;;  %v1633_v37 = vmul.f32 %v1599_v49, %v3011_v33  ;;  %v1635_v4 = vmul.f32 %v1603_v35, %v3013_v60  ;;  %v1638_v46 = vrot.slane %v3302_v8, 7 }
  0xf9   :  { %v3344_v54 = vadd.f32 %v1625_v26, %v1624_v55  ;;  %v1629_v23 = vadd.f32 %v1628_v24, %v1627_v1  ;;  %v1641_v6 = vrot.slane %v3286_v59, 6  ;;  %v1644_v63 = vrot.slane %v3313_v28, 5 }
  0xfa   :  { %3855 = vst [vmem:[#allocation16_spill] sm:$0xff] %v3339_v61  ;;  %v1634_v44 = vadd.f32 %v1633_v37, %v1632_v2  ;;  %v1647_v43 = vrot.slane %v3319_v48, 4  ;;  %v1650_v12 = vrot.slane %v3325_v5, 3  ;;  %v1653_v36 = vrot.slane %v3327_v15, 2 }
  0xfb   :  { %3856 = vst [vmem:[#allocation17_spill] sm:$0xff] %v3344_v54  ;;  %v3351_v17 = vadd.f32 %v1630_v25, %v1629_v23  ;;  %v1656_v49 = vrot.slane %v3331_v13, 1  ;;  %v1659_v35 = vrot.slane %v3344_v54, 7  ;;  %v1667_v0 = vsel %vm1403_vm6, %v3283_v34, %v1638_v46 }
  0xfc   :  { %v3357_v14 = vadd.f32 %v1635_v4, %v1634_v44  ;;  %v1668_v51 = vsel %vm1405_vm7, %v1667_v0, %v1641_v6  ;;  %v1680_v32 = vrot.slane %v2993_v29, 7  ;;  %v1683_v53 = vmul.f32 %v3028_v52, %v3124_v11 }
  0xfd   :  { %3857 = vst [vmem:[#allocation18_spill] sm:$0xff] %v3351_v17  ;;  %v1662_v26 = vrot.slane %v3351_v17, 6  ;;  %v1669_v1 = vsel %vm1407_vm9, %v1668_v51, %v1644_v63  ;;  %v1674_v55 = vsel %vm1403_vm6, %v3339_v61, %v1659_v35  ;;  %v1685_v24 = vrot.slane %v2999_v50, 7 }
  0xfe   :  { %3858 = vst [vmem:[#allocation19_spill] sm:$0xff] %v3357_v14  ;;  %v1665_v25 = vrot.slane %v3357_v14, 5  ;;  %v1670_v2 = vsel %vm1409_vm10, %v1669_v1, %v1647_v43  ;;  %v1682_v37 = vmul.f32 %v1680_v32, %v3120_v42  ;;  %v1690_v4 = vmul.f32 %v1680_v32, %v3122_v41 }
  0xff   :  { %v1671_v46 = vsel %vm1411_vm11, %v1670_v2, %v1650_v12  ;;  %v1675_v23 = vsel %vm1405_vm7, %v1674_v55, %v1662_v26  ;;  %v1687_v6 = vmul.f32 %v1685_v24, %v3128_v58  ;;  %v1691_v63 = vmul.f32 %v3028_v52, %v3126_v3 }
 0x100   :  { %v1672_v44 = vsel %vm1413_vm8, %v1671_v46, %v1653_v36  ;;  %v1676_v35 = vsel %vm1407_vm9, %v1675_v23, %v1665_v25  ;;  %v1684_v0 = vadd.f32 %v1683_v53, %v1682_v37  ;;  %v1693_v43 = vmul.f32 %v1685_v24, %v3138_v38 }
 0x101   :  { %v1673_v51 = vsel %vm1415_vm12, %v1672_v44, %v1656_v49  ;;  %2346 = vst [vmem:[%s3804_s1 + $0x48] sm:$0xf] %v1676_v35  ;;  %v1692_v12 = vadd.f32 %v1691_v63, %v1690_v4  ;;  %v1696_v26 = vmul.f32 %v1680_v32, %v3007_v45  ;;  %v1697_v1 = vmul.f32 %v3028_v52, %v3011_v33 }
 0x102   :  { %2345 = vst [vmem:[%s3804_s1 + $0x40] sm:$0xff] %v1673_v51  ;;  %v1688_v36 = vadd.f32 %v1687_v6, %v1684_v0  ;;  %v1699_v53 = vmul.f32 %v1685_v24, %v3013_v60  ;;  %v1702_v55 = vrot.slane %v3120_v42, 7  ;;  %v1705_v49 = vrot.slane %v3122_v41, 7 }
 0x103   :  { %v1694_v25 = vadd.f32 %v1693_v43, %v1692_v12  ;;  %v1698_v2 = vadd.f32 %v1697_v1, %v1696_v26  ;;  %v1709_v37 = vmul.f32 %v3043_v18, %v3128_v58  ;;  %v1711_v32 = vrot.slane %v3124_v11, 7 }
 0x104   :  { %v1689_v52 = vadd.f32 %v1688_v36, %v2993_v29  ;;  %v1704_v4 = vmul.f32 %v1702_v55, %v3120_v42  ;;  %v1707_v46 = vmul.f32 %v1705_v49, %v3124_v11  ;;  %v1714_v23 = vrot.slane %v3126_v3, 7 }
 0x105   :  { %v1695_v24 = vadd.f32 %v1694_v25, %v2997_v21  ;;  %v1700_v6 = vadd.f32 %v1699_v53, %v1698_v2  ;;  %v1713_v63 = vmul.f32 %v1711_v32, %v3120_v42  ;;  %v1718_v44 = vrot.slane %v3011_v33, 7 }
 0x106   :  { %v1708_v35 = vadd.f32 %v1707_v46, %v1704_v4  ;;  %v1716_v0 = vmul.f32 %v1714_v23, %v3124_v11  ;;  %v1722_v43 = vrot.slane %v3128_v58, 7  ;;  %v1725_v51 = vrot.slane %v3138_v38, 7 }
 0x107   :  { %v1701_v12 = vadd.f32 %v1700_v6, %v2999_v50  ;;  %v1720_v26 = vmul.f32 %v1718_v44, %v3128_v58  ;;  %v1729_v1 = vrot.slane %v3013_v60, 7  ;;  %v1733_v36 = vmul.f32 %v1702_v55, %v3122_v41 }
 0x108   :  { %v1710_v53 = vadd.f32 %v1709_v37, %v1708_v35  ;;  %v1717_v25 = vadd.f32 %v1716_v0, %v1713_v63  ;;  %v1724_v2 = vmul.f32 %v1722_v43, %v3120_v42  ;;  %v1727_v4 = vmul.f32 %v1725_v51, %v3124_v11 }
 0x109   :  { %v1731_v46 = vmul.f32 %v1729_v1, %v3128_v58  ;;  %v1734_v39 = vmul.f32 %v1705_v49, %v3126_v3  ;;  %v1736_v16 = vmul.f32 %v3043_v18, %v3138_v38  ;;  %v1738_v6 = vmul.f32 %v1711_v32, %v3122_v41 }
 0x10a   :  { %v1721_v59 = vadd.f32 %v1720_v26, %v1717_v25  ;;  %v1728_v8 = vadd.f32 %v1727_v4, %v1724_v2  ;;  %v1739_v34 = vmul.f32 %v1714_v23, %v3126_v3  ;;  %v1741_v37 = vmul.f32 %v1718_v44, %v3138_v38 }
 0x10b   :  { %v1735_v63 = vadd.f32 %v1734_v39, %v1733_v36  ;;  %v1743_v35 = vmul.f32 %v1722_v43, %v3122_v41  ;;  %v1744_v0 = vmul.f32 %v1725_v51, %v3126_v3  ;;  %v1746_v10 = vmul.f32 %v1729_v1, %v3138_v38 }
 0x10c   :  { %v1732_v14 = vadd.f32 %v1731_v46, %v1728_v8  ;;  %v1740_v17 = vadd.f32 %v1739_v34, %v1738_v6  ;;  %v1748_v54 = vmul.f32 %v1702_v55, %v3007_v45  ;;  %v1749_v61 = vmul.f32 %v1705_v49, %v3011_v33 }
 0x10d   :  { %v1737_v13 = vadd.f32 %v1736_v16, %v1735_v63  ;;  %v1745_v26 = vadd.f32 %v1744_v0, %v1743_v35  ;;  %v1751_v25 = vmul.f32 %v3043_v18, %v3013_v60  ;;  %v1753_v2 = vmul.f32 %v1711_v32, %v3007_v45 }
 0x10e   :  { %v1742_v39 = vadd.f32 %v1741_v37, %v1740_v17  ;;  %v1750_v36 = vadd.f32 %v1749_v61, %v1748_v54  ;;  %v1754_v4 = vmul.f32 %v1714_v23, %v3011_v33  ;;  %v1756_v41 = vmul.f32 %v1718_v44, %v3013_v60 }
 0x10f   :  { %v1747_v15 = vadd.f32 %v1746_v10, %v1745_v26  ;;  %v1758_v34 = vmul.f32 %v1722_v43, %v3007_v45  ;;  %v1759_v8 = vmul.f32 %v1725_v51, %v3011_v33  ;;  %v1761_v55 = vmul.f32 %v1729_v1, %v3013_v60 }
 0x110   :  { %v1752_v16 = vadd.f32 %v1751_v25, %v1750_v36  ;;  %v1755_v49 = vadd.f32 %v1754_v4, %v1753_v2  ;;  %v1764_v46 = vrot.slane %v1695_v24, 7  ;;  %v1767_v6 = vrot.slane %v1701_v12, 6 }
 0x111   :  { %v1760_v18 = vadd.f32 %v1759_v8, %v1758_v34  ;;  %v1770_v63 = vrot.slane %v1710_v53, 5  ;;  %v1773_v32 = vrot.slane %v1721_v59, 4  ;;  %v1776_v17 = vrot.slane %v1732_v14, 3 }
 0x112   :  { %v1757_v61 = vadd.f32 %v1756_v41, %v1755_v49  ;;  %v1779_v54 = vrot.slane %v1737_v13, 2  ;;  %v1782_v23 = vrot.slane %v1742_v39, 1  ;;  %v1785_v37 = vrot.slane %v1752_v16, 7 }
 0x113   :  { %v1762_v44 = vadd.f32 %v1761_v55, %v1760_v18  ;;  %v1793_v10 = vsel %vm1403_vm6, %v1689_v52, %v1764_v46  ;;  %v1806_v43 = vrot.slane %v2993_v29, 2  ;;  %v1809_v51 = vrot.slane %v2997_v21, 2 }
 0x114   :  { %v1788_v1 = vrot.slane %v1757_v61, 6  ;;  %v1794_v35 = vsel %vm1405_vm7, %v1793_v10, %v1767_v6  ;;  %v1800_v24 = vsel %vm1403_vm6, %v1747_v15, %v1785_v37  ;;  %v1813_v12 = vrot.slane %v2999_v50, 2 }
 0x115   :  { %v1791_v59 = vrot.slane %v1762_v44, 5  ;;  %v1795_v41 = vsel %vm1407_vm9, %v1794_v35, %v1770_v63  ;;  %v1808_v13 = vmul.f32 %v1806_v43, %v3208_v62  ;;  %v1811_v14 = vmul.f32 %v1809_v51, %v3212_v56 }
 0x116   :  { %v1796_v52 = vsel %vm1409_vm10, %v1795_v41, %v1773_v32  ;;  %v1801_v53 = vsel %vm1405_vm7, %v1800_v24, %v1788_v1  ;;  %v1815_v0 = vmul.f32 %v1813_v12, %v3216_v7  ;;  %v1818_v26 = vmul.f32 %v1806_v43, %v3218_v27 }
 0x117   :  { %v1797_v25 = vsel %vm1411_vm11, %v1796_v52, %v1776_v17  ;;  %v1802_v15 = vsel %vm1407_vm9, %v1801_v53, %v1791_v59  ;;  %v1812_v2 = vadd.f32 %v1811_v14, %v1808_v13  ;;  %v1819_v39 = vmul.f32 %v1809_v51, %v3223_v30 }
 0x118   :  { %v1798_v36 = vsel %vm1413_vm8, %v1797_v25, %v1779_v54  ;;  %2348 = vst [vmem:[%s3804_s1 + $0x78] sm:$0xf] %v1802_v15  ;;  %v1821_v4 = vmul.f32 %v1813_v12, %v3231_v47  ;;  %v1824_v34 = vmul.f32 %v1806_v43, %v3238_v31  ;;  %v1825_v8 = vmul.f32 %v1809_v51, %v3246_v22 }
 0x119   :  { %v1799_v55 = vsel %vm1415_vm12, %v1798_v36, %v1782_v23  ;;  %v1816_v16 = vadd.f32 %v1815_v0, %v1812_v2  ;;  %v1820_v49 = vadd.f32 %v1819_v39, %v1818_v26  ;;  %v1827_v46 = vmul.f32 %v1813_v12, %v3249_v9 }
 0x11a   :  { %2347 = vst [vmem:[%s3804_s1 + $0x70] sm:$0xff] %v1799_v55  ;;  %v1826_v6 = vadd.f32 %v1825_v8, %v1824_v34  ;;  %v1830_v18 = vrot.slane %v3120_v42, 2  ;;  %v1833_v63 = vmul.f32 %v3212_v56, %v3134_v20  ;;  %v1835_v32 = vrot.slane %v3007_v45, 2 }
 0x11b   :  { %v3465_v17 = vadd.f32 %v1816_v16, %v3185_v19  ;;  %v1822_v61 = vadd.f32 %v1821_v4, %v1820_v49  ;;  %v1839_v54 = vrot.slane %v3124_v11, 2  ;;  %v1842_v23 = vrot.slane %v3126_v3, 2 }
 0x11c   :  { %v1828_v37 = vadd.f32 %v1827_v46, %v1826_v6  ;;  %v1832_v44 = vmul.f32 %v1830_v18, %v3208_v62  ;;  %v1837_v10 = vmul.f32 %v1835_v32, %v3216_v7  ;;  %v1846_v43 = vrot.slane %v3011_v33, 2 }
 0x11d   :  { %v3473_v51 = vadd.f32 %v1822_v61, %v3195_v57  ;;  %v1841_v1 = vmul.f32 %v1839_v54, %v3208_v62  ;;  %v1844_v19 = vmul.f32 %v1842_v23, %v3212_v56  ;;  %v1850_v35 = vrot.slane %v3128_v58, 2 }
 0x11e   :  { %v3479_v24 = vadd.f32 %v1828_v37, %v3074_v40  ;;  %v1834_v12 = vadd.f32 %v1833_v63, %v1832_v44  ;;  %v1848_v59 = vmul.f32 %v1846_v43, %v3216_v7  ;;  %v1853_v41 = vrot.slane %v3138_v38, 2 }
 0x11f   :  { %v1845_v13 = vadd.f32 %v1844_v19, %v1841_v1  ;;  %v1852_v14 = vmul.f32 %v1850_v35, %v3208_v62  ;;  %v1857_v57 = vrot.slane %v3013_v60, 2  ;;  %v1861_v52 = vmul.f32 %v1830_v18, %v3218_v27 }
 0x120   :  { %v3486_v53 = vadd.f32 %v1837_v10, %v1834_v12  ;;  %v1855_v0 = vmul.f32 %v1853_v41, %v3212_v56  ;;  %v1862_v40 = vmul.f32 %v3223_v30, %v3134_v20  ;;  %v1864_v26 = vmul.f32 %v1835_v32, %v3231_v47 }
 0x121   :  { %v3492_v25 = vadd.f32 %v1848_v59, %v1845_v13  ;;  %v1859_v15 = vmul.f32 %v1857_v57, %v3216_v7  ;;  %v1866_v2 = vmul.f32 %v1839_v54, %v3218_v27  ;;  %v1867_v62 = vmul.f32 %v1842_v23, %v3223_v30 }
 0x122   :  { %v1856_v39 = vadd.f32 %v1855_v0, %v1852_v14  ;;  %v1863_v36 = vadd.f32 %v1862_v40, %v1861_v52  ;;  %v1869_v4 = vmul.f32 %v1846_v43, %v3231_v47  ;;  %v1871_v34 = vmul.f32 %v1850_v35, %v3218_v27 }
 0x123   :  { %v1868_v56 = vadd.f32 %v1867_v62, %v1866_v2  ;;  %v1872_v8 = vmul.f32 %v1853_v41, %v3223_v30  ;;  %v1874_v55 = vmul.f32 %v1857_v57, %v3231_v47  ;;  %v1876_v16 = vmul.f32 %v1830_v18, %v3238_v31 }
 0x124   :  { %v3502_v49 = vadd.f32 %v1859_v15, %v1856_v39  ;;  %v3504_v7 = vadd.f32 %v1864_v26, %v1863_v36  ;;  %v1877_v46 = vmul.f32 %v3246_v22, %v3134_v20  ;;  %v1879_v6 = vmul.f32 %v1835_v32, %v3249_v9 }
 0x125   :  { %v3509_v63 = vadd.f32 %v1869_v4, %v1868_v56  ;;  %v1873_v61 = vadd.f32 %v1872_v8, %v1871_v34  ;;  %v1881_v27 = vmul.f32 %v1839_v54, %v3238_v31  ;;  %v1882_v30 = vmul.f32 %v1842_v23, %v3246_v22  ;;  %v3859_v56 = vld [vmem:[#allocation14_spill] sm:$0xff] }
 0x126   :  { %v1878_v37 = vadd.f32 %v1877_v46, %v1876_v16  ;;  %v1884_v47 = vmul.f32 %v1846_v43, %v3249_v9  ;;  %v1886_v18 = vmul.f32 %v1850_v35, %v3238_v31  ;;  %v1887_v44 = vmul.f32 %v1853_v41, %v3246_v22  ;;  %v3860_v16 = vld [vmem:[#allocation15_spill] sm:$0xff] }
 0x127   :  { %v3516_v10 = vadd.f32 %v1874_v55, %v1873_v61  ;;  %v1883_v1 = vadd.f32 %v1882_v30, %v1881_v27  ;;  %v1889_v20 = vmul.f32 %v1857_v57, %v3249_v9  ;;  %v1892_v32 = vrot.slane %v3473_v51, 7  ;;  %v3862_v30 = vld [vmem:[#allocation17_spill] sm:$0xff] }
 0x128   :  { %v3520_v19 = vadd.f32 %v1879_v6, %v1878_v37  ;;  %v1888_v12 = vadd.f32 %v1887_v44, %v1886_v18  ;;  %v1895_v54 = vrot.slane %v3479_v24, 6  ;;  %v1898_v23 = vrot.slane %v3486_v53, 5  ;;  %v3861_v6 = vld [vmem:[#allocation16_spill] sm:$0xff]  ;;  %v3864_v44 = vld [vmem:[#allocation19_spill] sm:$0xff] }
 0x129   :  { %v3524_v59 = vadd.f32 %v1884_v47, %v1883_v1  ;;  %v1901_v31 = vrot.slane %v3492_v25, 4  ;;  %v1904_v22 = vrot.slane %v3502_v49, 3  ;;  %v1907_v43 = vrot.slane %v3504_v7, 2  ;;  %v3863_v47 = vld [vmem:[#allocation18_spill] sm:$0xff] }
 0x12a   :  { %v3529_v35 = vadd.f32 %v1889_v20, %v1888_v12  ;;  %v1910_v9 = vrot.slane %v3509_v63, 1  ;;  %v1913_v41 = vrot.slane %v3520_v19, 7  ;;  %v1921_v13 = vsel %vm1403_vm6, %v3465_v17, %v1892_v32  ;;  %v3865_v12 = vld [vmem:[#allocation9_spill] sm:$0xff] }
 0x12b   :  { %v1916_v14 = vrot.slane %v3524_v59, 6  ;;  %v1922_v57 = vsel %vm1405_vm7, %v1921_v13, %v1895_v54  ;;  %v1934_v52 = vrot.slane %v2993_v29, 5  ;;  %v1937_v0 = vrot.slane %v2997_v21, 5  ;;  %v3867_v13 = vld [vmem:[#allocation11_spill] sm:$0xff] }
 0x12c   :  { %v1919_v40 = vrot.slane %v3529_v35, 5  ;;  %v1923_v26 = vsel %vm1407_vm9, %v1922_v57, %v1898_v23  ;;  %v1928_v15 = vsel %vm1403_vm6, %v3516_v10, %v1913_v41  ;;  %v1941_v2 = vrot.slane %v2999_v50, 5  ;;  %v3866_v23 = vld [vmem:[#allocation8_spill] sm:$0xff] }
 0x12d   :  { %v1924_v62 = vsel %vm1409_vm10, %v1923_v26, %v1901_v31  ;;  %v1929_v39 = vsel %vm1405_vm7, %v1928_v15, %v1916_v14  ;;  %v1936_v36 = vmul.f32 %v1934_v52, %v3313_v28  ;;  %v1939_v4 = vmul.f32 %v1937_v0, %v3319_v48 }
 0x12e   :  { %v1925_v29 = vsel %vm1411_vm11, %v1924_v62, %v1904_v22  ;;  %v1930_v21 = vsel %vm1407_vm9, %v1929_v39, %v1919_v40  ;;  %v1943_v34 = vmul.f32 %v1941_v2, %v3325_v5  ;;  %v1946_v8 = vmul.f32 %v1934_v52, %v3859_v56  ;;  %v3868_v62 = vld [vmem:[#allocation13_spill] sm:$0xff] }
 0x12f   :  { %v1926_v55 = vsel %vm1413_vm8, %v1925_v29, %v1907_v43  ;;  %2350 = vst [vmem:[%s3804_s1 + $0x28] sm:$0xf] %v1930_v21  ;;  %v1940_v50 = vadd.f32 %v1939_v4, %v1936_v36  ;;  %v1947_v46 = vmul.f32 %v1937_v0, %v3860_v16  ;;  %v1949_v61 = vmul.f32 %v1941_v2, %v3861_v6  ;;  %v3869_v21 = vld [vmem:[#allocation12_spill] sm:$0xff] }
 0x130   :  { %v1927_v27 = vsel %vm1415_vm12, %v1926_v55, %v1910_v9  ;;  %v1952_v37 = vmul.f32 %v1934_v52, %v3862_v30  ;;  %v1953_v18 = vmul.f32 %v1937_v0, %v3863_v47  ;;  %v1955_v1 = vmul.f32 %v1941_v2, %v3864_v44 }
 0x131   :  { %2349 = vst [vmem:[%s3804_s1 + $0x20] sm:$0xff] %v1927_v27  ;;  %v1944_v20 = vadd.f32 %v1943_v34, %v1940_v50  ;;  %v1948_v32 = vadd.f32 %v1947_v46, %v1946_v8  ;;  %v1958_v54 = vmul.f32 %v3313_v28, %v3865_v12  ;;  %v1959_v31 = vrot.slane %v3866_v23, 5  ;;  %v3870_v50 = vld [vmem:[#allocation7_spill] sm:$0xff] }
 0x132   :  { %v1954_v22 = vadd.f32 %v1953_v18, %v1952_v37  ;;  %v1963_v43 = vrot.slane %v3007_v45, 5  ;;  %v1967_v9 = vrot.slane %v3124_v11, 5  ;;  %v1970_v41 = vrot.slane %v3126_v3, 5 }
 0x133   :  { %v3572_v14 = vadd.f32 %v1944_v20, %v3867_v13  ;;  %v1950_v57 = vadd.f32 %v1949_v61, %v1948_v32  ;;  %v1961_v52 = vmul.f32 %v1959_v31, %v3319_v48  ;;  %v1974_v0 = vrot.slane %v3011_v33, 5 }
 0x134   :  { %v1956_v40 = vadd.f32 %v1955_v1, %v1954_v22  ;;  %v1965_v26 = vmul.f32 %v1963_v43, %v3325_v5  ;;  %v1969_v15 = vmul.f32 %v1967_v9, %v3313_v28  ;;  %v1972_v2 = vmul.f32 %v1970_v41, %v3319_v48 }
 0x135   :  { %v3580_v39 = vadd.f32 %v1950_v57, %v3868_v62  ;;  %v1962_v36 = vadd.f32 %v1961_v52, %v1958_v54  ;;  %v1976_v4 = vmul.f32 %v1974_v0, %v3325_v5  ;;  %v1978_v29 = vrot.slane %v3128_v58, 5 }
 0x136   :  { %v3585_v34 = vadd.f32 %v1956_v40, %v3869_v21  ;;  %v1973_v8 = vadd.f32 %v1972_v2, %v1969_v15  ;;  %v1981_v55 = vrot.slane %v3138_v38, 5  ;;  %v1985_v46 = vmul.f32 %v3325_v5, %v3870_v50 }
 0x137   :  { %v3590_v61 = vadd.f32 %v1965_v26, %v1962_v36  ;;  %v1980_v27 = vmul.f32 %v1978_v29, %v3313_v28  ;;  %v1987_v37 = vmul.f32 %v3859_v56, %v3865_v12  ;;  %v1988_v18 = vmul.f32 %v1959_v31, %v3860_v16 }
 0x138   :  { %v3596_v1 = vadd.f32 %v1976_v4, %v1973_v8  ;;  %v1983_v20 = vmul.f32 %v1981_v55, %v3319_v48  ;;  %v1990_v32 = vmul.f32 %v1963_v43, %v3861_v6  ;;  %v1992_v54 = vmul.f32 %v1967_v9, %v3859_v56 }
 0x139   :  { %v1989_v22 = vadd.f32 %v1988_v18, %v1987_v37  ;;  %v1993_v5 = vmul.f32 %v1970_v41, %v3860_v16  ;;  %v1995_v13 = vmul.f32 %v1974_v0, %v3861_v6  ;;  %v1997_v28 = vmul.f32 %v1978_v29, %v3859_v56 }
 0x13a   :  { %v1984_v57 = vadd.f32 %v1983_v20, %v1980_v27  ;;  %v1998_v52 = vmul.f32 %v1981_v55, %v3860_v16  ;;  %v2000_v40 = vmul.f32 %v3861_v6, %v3870_v50  ;;  %v2002_v48 = vmul.f32 %v3862_v30, %v3865_v12 }
 0x13b   :  { %v3609_v26 = vadd.f32 %v1990_v32, %v1989_v22  ;;  %v1994_v15 = vadd.f32 %v1993_v5, %v1992_v54  ;;  %v2003_v2 = vmul.f32 %v1959_v31, %v3863_v47  ;;  %v2005_v62 = vmul.f32 %v1963_v43, %v3864_v44  ;;  %v3644_v5 = vld [vmem:[#allocation2] sm:$0xff] }
 0x13c   :  { %v3613_v36 = vadd.f32 %v1985_v46, %v1984_v57  ;;  %v1999_v4 = vadd.f32 %v1998_v52, %v1997_v28  ;;  %v2007_v56 = vmul.f32 %v1967_v9, %v3862_v30  ;;  %v2008_v16 = vmul.f32 %v1970_v41, %v3863_v47  ;;  %v3650_v52 = vld [vmem:[#allocation2 + $0x8] sm:$0xff] }
 0x13d   :  { %v3617_v21 = vadd.f32 %v1995_v13, %v1994_v15  ;;  %v2004_v6 = vadd.f32 %v2003_v2, %v2002_v48  ;;  %v2010_v8 = vmul.f32 %v1974_v0, %v3864_v44  ;;  %v2012_v12 = vmul.f32 %v1978_v29, %v3862_v30  ;;  %v2376_v48 = vld [vmem:[#allocation2 + $0x10] sm:$0xff] }
 0x13e   :  { %v3621_v27 = vadd.f32 %v2000_v40, %v1999_v4  ;;  %v2009_v37 = vadd.f32 %v2008_v16, %v2007_v56  ;;  %v2013_v31 = vmul.f32 %v1981_v55, %v3863_v47  ;;  %v2015_v43 = vmul.f32 %v3864_v44, %v3870_v50 }
 0x13f   :  { %v3626_v46 = vadd.f32 %v2005_v62, %v2004_v6  ;;  %v2018_v9 = vrot.slane %v3580_v39, 7  ;;  %v2021_v41 = vrot.slane %v3585_v34, 6  ;;  %v2024_v18 = vrot.slane %v3590_v61, 5 }
 0x140   :  { %v3631_v20 = vadd.f32 %v2010_v8, %v2009_v37  ;;  %v2014_v0 = vadd.f32 %v2013_v31, %v2012_v12  ;;  %v2027_v30 = vrot.slane %v3596_v1, 4  ;;  %v2030_v29 = vrot.slane %v3613_v36, 3 }
 0x141   :  { %v2033_v47 = vrot.slane %v3609_v26, 2  ;;  %v2036_v55 = vrot.slane %v3617_v21, 1  ;;  %v2039_v44 = vrot.slane %v3626_v46, 7  ;;  %v2047_v50 = vsel %vm1403_vm6, %v3572_v14, %v2018_v9 }
 0x142   :  { %v3640_v32 = vadd.f32 %v2015_v43, %v2014_v0  ;;  %v2042_v54 = vrot.slane %v3631_v20, 6  ;;  %v2048_v22 = vsel %vm1405_vm7, %v2047_v50, %v2021_v41  ;;  %v2060_v13 = vrot.slane %v3644_v5, 3 }
 0x143   :  { %v2049_v28 = vsel %vm1407_vm9, %v2048_v22, %v2024_v18  ;;  %v2054_v57 = vsel %vm1403_vm6, %v3621_v27, %v2039_v44  ;;  %v2063_v40 = vrot.slane %v3650_v52, 3  ;;  %v2067_v15 = vrot.slane %v2376_v48, 3 }
 0x144   :  { %v2045_v2 = vrot.slane %v3640_v32, 5  ;;  %v2050_v62 = vsel %vm1409_vm10, %v2049_v28, %v2027_v30  ;;  %v2055_v4 = vsel %vm1405_vm7, %v2054_v57, %v2042_v54  ;;  %v2062_v56 = vmul.f32 %v2060_v13, %v3486_v53 }
 0x145   :  { %v2051_v16 = vsel %vm1411_vm11, %v2050_v62, %v2030_v29  ;;  %v2065_v6 = vmul.f32 %v2063_v40, %v3492_v25  ;;  %v2069_v8 = vmul.f32 %v2067_v15, %v3502_v49  ;;  %v2072_v12 = vmul.f32 %v2060_v13, %v3504_v7 }
 0x146   :  { %v2052_v37 = vsel %vm1413_vm8, %v2051_v16, %v2033_v47  ;;  %v2056_v31 = vsel %vm1407_vm9, %v2055_v4, %v2045_v2  ;;  %v2073_v43 = vmul.f32 %v2063_v40, %v3509_v63  ;;  %v2075_v9 = vmul.f32 %v2067_v15, %v3516_v10 }
 0x147   :  { %v2053_v41 = vsel %vm1415_vm12, %v2052_v37, %v2036_v55  ;;  %2352 = vst [vmem:[%s3804_s1 + $0x58] sm:$0xf] %v2056_v31  ;;  %v2066_v18 = vadd.f32 %v2065_v6, %v2062_v56  ;;  %v2078_v0 = vmul.f32 %v2060_v13, %v3520_v19  ;;  %v2079_v30 = vmul.f32 %v2063_v40, %v3524_v59  ;;  %v3871_v37 = vld [vmem:[#allocation10_spill] sm:$0xff] }
 0x148   :  { %2351 = vst [vmem:[%s3804_s1 + $0x50] sm:$0xff] %v2053_v41  ;;  %v2074_v29 = vadd.f32 %v2073_v43, %v2072_v12  ;;  %v2081_v47 = vmul.f32 %v2067_v15, %v3529_v35  ;;  %v2084_v44 = vrot.slane %v3120_v42, 3  ;;  %v2087_v55 = vrot.slane %v3866_v23, 3 }
 0x149   :  { %v2070_v50 = vadd.f32 %v2069_v8, %v2066_v18  ;;  %v2080_v54 = vadd.f32 %v2079_v30, %v2078_v0  ;;  %v2091_v22 = vrot.slane %v3007_v45, 3  ;;  %v2095_v28 = vrot.slane %v3124_v11, 3 }
 0x14a   :  { %v2076_v13 = vadd.f32 %v2075_v9, %v2074_v29  ;;  %v2086_v57 = vmul.f32 %v2084_v44, %v3486_v53  ;;  %v2089_v40 = vmul.f32 %v2087_v55, %v3492_v25  ;;  %v2098_v48 = vrot.slane %v3126_v3, 3 }
 0x14b   :  { %v2071_v2 = vadd.f32 %v2070_v50, %v3465_v17  ;;  %v2082_v15 = vadd.f32 %v2081_v47, %v2080_v54  ;;  %v2093_v62 = vmul.f32 %v2091_v22, %v3502_v49  ;;  %v2097_v4 = vmul.f32 %v2095_v28, %v3486_v53 }
 0x14c   :  { %v2077_v56 = vadd.f32 %v2076_v13, %v3473_v51  ;;  %v2090_v16 = vadd.f32 %v2089_v40, %v2086_v57  ;;  %v2100_v6 = vmul.f32 %v2098_v48, %v3492_v25  ;;  %v2102_v8 = vrot.slane %v3011_v33, 3 }
 0x14d   :  { %v2083_v12 = vadd.f32 %v2082_v15, %v3479_v24  ;;  %v2106_v31 = vmul.f32 %v3486_v53, %v3871_v37  ;;  %v2107_v43 = vrot.slane %v3138_v38, 3  ;;  %v2111_v17 = vrot.slane %v3013_v60, 3 }
 0x14e   :  { %v2094_v9 = vadd.f32 %v2093_v62, %v2090_v16  ;;  %v2101_v41 = vadd.f32 %v2100_v6, %v2097_v4  ;;  %v2104_v18 = vmul.f32 %v2102_v8, %v3502_v49  ;;  %v2115_v51 = vmul.f32 %v2084_v44, %v3504_v7 }
 0x14f   :  { %v2109_v0 = vmul.f32 %v2107_v43, %v3492_v25  ;;  %v2113_v30 = vmul.f32 %v2111_v17, %v3502_v49  ;;  %v2116_v33 = vmul.f32 %v2087_v55, %v3509_v63  ;;  %v2118_v24 = vmul.f32 %v2091_v22, %v3516_v10 }
 0x150   :  { %v2105_v29 = vadd.f32 %v2104_v18, %v2101_v41  ;;  %v2120_v53 = vmul.f32 %v2095_v28, %v3504_v7  ;;  %v2121_v47 = vmul.f32 %v2098_v48, %v3509_v63  ;;  %v2123_v50 = vmul.f32 %v2102_v8, %v3516_v10 }
 0x151   :  { %v2110_v54 = vadd.f32 %v2109_v0, %v2106_v31  ;;  %v2117_v13 = vadd.f32 %v2116_v33, %v2115_v51  ;;  %v2125_v57 = vmul.f32 %v3504_v7, %v3871_v37  ;;  %v2126_v25 = vmul.f32 %v2107_v43, %v3509_v63 }
 0x152   :  { %v2122_v40 = vadd.f32 %v2121_v47, %v2120_v53  ;;  %v2128_v49 = vmul.f32 %v2111_v17, %v3516_v10  ;;  %v2130_v15 = vmul.f32 %v2084_v44, %v3520_v19  ;;  %v2131_v62 = vmul.f32 %v2087_v55, %v3524_v59 }
 0x153   :  { %v2114_v4 = vadd.f32 %v2113_v30, %v2110_v54  ;;  %v2119_v16 = vadd.f32 %v2118_v24, %v2117_v13  ;;  %v2127_v6 = vadd.f32 %v2126_v25, %v2125_v57  ;;  %v2133_v41 = vmul.f32 %v2091_v22, %v3529_v35 }
 0x154   :  { %v2124_v18 = vadd.f32 %v2123_v50, %v2122_v40  ;;  %v2132_v31 = vadd.f32 %v2131_v62, %v2130_v15  ;;  %v2135_v51 = vmul.f32 %v2095_v28, %v3520_v19  ;;  %v2136_v7 = vmul.f32 %v2098_v48, %v3524_v59 }
 0x155   :  { %v2129_v0 = vadd.f32 %v2128_v49, %v2127_v6  ;;  %v2138_v63 = vmul.f32 %v2102_v8, %v3529_v35  ;;  %v2140_v10 = vmul.f32 %v3520_v19, %v3871_v37  ;;  %v2141_v44 = vmul.f32 %v2107_v43, %v3524_v59 }
 0x156   :  { %v2134_v55 = vadd.f32 %v2133_v41, %v2132_v31  ;;  %v2137_v30 = vadd.f32 %v2136_v7, %v2135_v51  ;;  %v2143_v33 = vmul.f32 %v2111_v17, %v3529_v35  ;;  %v2146_v24 = vrot.slane %v2077_v56, 7  ;;  %v3872_v56 = vld [vmem:[#allocation5_spill] sm:$0xff] }
 0x157   :  { %v2142_v22 = vadd.f32 %v2141_v44, %v2140_v10  ;;  %v2149_v53 = vrot.slane %v2083_v12, 6  ;;  %v2152_v47 = vrot.slane %v2094_v9, 5  ;;  %v2155_v50 = vrot.slane %v2105_v29, 4 }
 0x158   :  { %v2139_v28 = vadd.f32 %v2138_v63, %v2137_v30  ;;  %v2158_v54 = vrot.slane %v2114_v4, 3  ;;  %v2161_v48 = vrot.slane %v2119_v16, 2  ;;  %v2164_v13 = vrot.slane %v2124_v18, 1 }
 0x159   :  { %v2144_v57 = vadd.f32 %v2143_v33, %v2142_v22  ;;  %v2167_v8 = vrot.slane %v2134_v55, 7  ;;  %v2175_v25 = vsel %vm1403_vm6, %v2071_v2, %v2146_v24  ;;  %v2188_v19 = vrot.slane %v3644_v5, 6 }
 0x15a   :  { %v2170_v59 = vrot.slane %v2139_v28, 6  ;;  %v2176_v37 = vsel %vm1405_vm7, %v2175_v25, %v2149_v53  ;;  %v2191_v35 = vrot.slane %v3650_v52, 6  ;;  %v2195_v12 = vmul.f32 %v3613_v36, %v3872_v56 }
 0x15b   :  { %v2173_v43 = vrot.slane %v2144_v57, 5  ;;  %v2177_v17 = vsel %vm1407_vm9, %v2176_v37, %v2152_v47  ;;  %v2182_v9 = vsel %vm1403_vm6, %v2129_v0, %v2167_v8  ;;  %v2190_v29 = vmul.f32 %v2188_v19, %v3590_v61 }
 0x15c   :  { %v2178_v40 = vsel %vm1409_vm10, %v2177_v17, %v2155_v50  ;;  %v2183_v2 = vsel %vm1405_vm7, %v2182_v9, %v2170_v59  ;;  %v2193_v5 = vmul.f32 %v2191_v35, %v3596_v1  ;;  %v2198_v49 = vmul.f32 %v2188_v19, %v3609_v26 }
 0x15d   :  { %v2179_v52 = vsel %vm1411_vm11, %v2178_v40, %v2158_v54  ;;  %v2184_v15 = vsel %vm1407_vm9, %v2183_v2, %v2173_v43  ;;  %v2199_v62 = vmul.f32 %v2191_v35, %v3617_v21  ;;  %v2201_v4 = vmul.f32 %v3621_v27, %v3872_v56  ;;  %v3873_v54 = vld [vmem:[#allocation6_spill] sm:$0xff] }
 0x15e   :  { %v2180_v16 = vsel %vm1413_vm8, %v2179_v52, %v2161_v48  ;;  %2354 = vst [vmem:[%s3804_s1 + $0x38] sm:$0xf] %v2184_v15  ;;  %v2194_v6 = vadd.f32 %v2193_v5, %v2190_v29  ;;  %v2204_v41 = vmul.f32 %v2188_v19, %v3626_v46  ;;  %v2205_v18 = vmul.f32 %v2191_v35, %v3631_v20 }
 0x15f   :  { %v2181_v31 = vsel %vm1415_vm12, %v2180_v16, %v2164_v13  ;;  %v2200_v51 = vadd.f32 %v2199_v62, %v2198_v49  ;;  %v2207_v7 = vmul.f32 %v3640_v32, %v3872_v56  ;;  %v2210_v0 = vrot.slane %v3120_v42, 6 }
 0x160   :  { %2353 = vst [vmem:[%s3804_s1 + $0x30] sm:$0xff] %v2181_v31  ;;  %v2196_v63 = vadd.f32 %v2195_v12, %v2194_v6  ;;  %v2206_v10 = vadd.f32 %v2205_v18, %v2204_v41  ;;  %v2213_v44 = vrot.slane %v3866_v23, 6  ;;  %v2217_v55 = vrot.slane %v3007_v45, 6 }
 0x161   :  { %v2202_v30 = vadd.f32 %v2201_v4, %v2200_v51  ;;  %v2212_v33 = vmul.f32 %v2210_v0, %v3590_v61  ;;  %v2221_v24 = vrot.slane %v3124_v11, 6  ;;  %v2224_v22 = vrot.slane %v3126_v3, 6 }
 0x162   :  { %v2197_v53 = vadd.f32 %v2196_v63, %v3572_v14  ;;  %v2208_v42 = vadd.f32 %v2207_v7, %v2206_v10  ;;  %v2215_v47 = vmul.f32 %v2213_v44, %v3596_v1  ;;  %v2219_v50 = vmul.f32 %v2217_v55, %v3613_v36 }
 0x163   :  { %v2203_v28 = vadd.f32 %v2202_v30, %v3580_v39  ;;  %v2223_v23 = vmul.f32 %v2221_v24, %v3590_v61  ;;  %v2226_v45 = vmul.f32 %v2224_v22, %v3596_v1  ;;  %v2228_v48 = vmul.f32 %v3613_v36, %v3873_v54 }
 0x164   :  { %v2209_v11 = vadd.f32 %v2208_v42, %v3585_v34  ;;  %v2216_v13 = vadd.f32 %v2215_v47, %v2212_v33  ;;  %v2230_v3 = vrot.slane %v3128_v58, 6  ;;  %v2233_v14 = vrot.slane %v3138_v38, 6 }
 0x165   :  { %v2227_v57 = vadd.f32 %v2226_v45, %v2223_v23  ;;  %v2237_v8 = vrot.slane %v3013_v60, 6  ;;  %v2241_v25 = vmul.f32 %v2210_v0, %v3609_v26  ;;  %v2242_v39 = vmul.f32 %v2213_v44, %v3617_v21 }
 0x166   :  { %v2220_v19 = vadd.f32 %v2219_v50, %v2216_v13  ;;  %v2232_v59 = vmul.f32 %v2230_v3, %v3590_v61  ;;  %v2235_v37 = vmul.f32 %v2233_v14, %v3596_v1  ;;  %v2244_v35 = vmul.f32 %v2217_v55, %v3621_v27 }
 0x167   :  { %v2229_v34 = vadd.f32 %v2228_v48, %v2227_v57  ;;  %v2239_v56 = vmul.f32 %v2237_v8, %v3613_v36  ;;  %v2243_v58 = vadd.f32 %v2242_v39, %v2241_v25  ;;  %v2246_v38 = vmul.f32 %v2221_v24, %v3609_v26 }
 0x168   :  { %v2236_v12 = vadd.f32 %v2235_v37, %v2232_v59  ;;  %v2247_v60 = vmul.f32 %v2224_v22, %v3617_v21  ;;  %v2249_v43 = vmul.f32 %v3621_v27, %v3873_v54  ;;  %v2251_v17 = vmul.f32 %v2230_v3, %v3609_v26 }
 0x169   :  { %v2245_v9 = vadd.f32 %v2244_v35, %v2243_v58  ;;  %v2252_v61 = vmul.f32 %v2233_v14, %v3617_v21  ;;  %v2254_v1 = vmul.f32 %v2237_v8, %v3621_v27  ;;  %v2256_v29 = vmul.f32 %v2210_v0, %v3626_v46 }
 0x16a   :  { %v2240_v40 = vadd.f32 %v2239_v56, %v2236_v12  ;;  %v2248_v36 = vadd.f32 %v2247_v60, %v2246_v38  ;;  %v2257_v2 = vmul.f32 %v2213_v44, %v3631_v20  ;;  %v2259_v5 = vmul.f32 %v2217_v55, %v3640_v32 }
 0x16b   :  { %v2253_v49 = vadd.f32 %v2252_v61, %v2251_v17  ;;  %v2261_v52 = vmul.f32 %v2221_v24, %v3626_v46  ;;  %v2262_v15 = vmul.f32 %v2224_v22, %v3631_v20  ;;  %v2264_v26 = vmul.f32 %v3640_v32, %v3873_v54 }
 0x16c   :  { %v2250_v62 = vadd.f32 %v2249_v43, %v2248_v36  ;;  %v2258_v21 = vadd.f32 %v2257_v2, %v2256_v29  ;;  %v2266_v27 = vmul.f32 %v2230_v3, %v3626_v46  ;;  %v2267_v4 = vmul.f32 %v2233_v14, %v3631_v20 }
 0x16d   :  { %v2255_v16 = vadd.f32 %v2254_v1, %v2253_v49  ;;  %v2263_v6 = vadd.f32 %v2262_v15, %v2261_v52  ;;  %v2269_v41 = vmul.f32 %v2237_v8, %v3640_v32  ;;  %v2272_v18 = vrot.slane %v2203_v28, 7 }
 0x16e   :  { %v2260_v31 = vadd.f32 %v2259_v5, %v2258_v21  ;;  %v2268_v51 = vadd.f32 %v2267_v4, %v2266_v27  ;;  %v2275_v7 = vrot.slane %v2209_v11, 6  ;;  %v2278_v0 = vrot.slane %v2220_v19, 5 }
 0x16f   :  { %v2265_v63 = vadd.f32 %v2264_v26, %v2263_v6  ;;  %v2281_v10 = vrot.slane %v2229_v34, 4  ;;  %v2284_v55 = vrot.slane %v2240_v40, 3  ;;  %v2301_v33 = vsel %vm1403_vm6, %v2197_v53, %v2272_v18 }
 0x170   :  { %v2270_v44 = vadd.f32 %v2269_v41, %v2268_v51  ;;  %v2293_v30 = vrot.slane %v2260_v31, 7  ;;  %v2287_v24 = vrot.slane %v2245_v9, 2  ;;  %v2302_v20 = vsel %vm1405_vm7, %v2301_v33, %v2275_v7 }
 0x171   :  { %v2296_v46 = vrot.slane %v2265_v63, 6  ;;  %v2290_v22 = vrot.slane %v2250_v62, 1  ;;  %v2303_v32 = vsel %vm1407_vm9, %v2302_v20, %v2278_v0 }
 0x172   :  { %v2299_v42 = vrot.slane %v2270_v44, 5  ;;  %v2308_v47 = vsel %vm1403_vm6, %v2255_v16, %v2293_v30  ;;  %v2304_v50 = vsel %vm1409_vm10, %v2303_v32, %v2281_v10 }
 0x173   :  { %v2309_v28 = vsel %vm1405_vm7, %v2308_v47, %v2296_v46  ;;  %v2305_v23 = vsel %vm1411_vm11, %v2304_v50, %v2284_v55 }
 0x174   :  { %v2310_v45 = vsel %vm1407_vm9, %v2309_v28, %v2299_v42  ;;  %v2306_v53 = vsel %vm1413_vm8, %v2305_v23, %v2287_v24 }
 0x175   :  { %2356 = vst [vmem:[%s3804_s1 + $0x68] sm:$0xf] %v2310_v45  ;;  %v2307_v54 = vsel %vm1415_vm12, %v2306_v53, %v2290_v22 }
 0x176   :  { %2355 = vst [vmem:[%s3804_s1 + $0x60] sm:$0xff] %v2307_v54 }
 0x177   :  { %2318 = vsyncpa [#allocation3], 1 }

</bundles_post_ra>
